<compile_context>
chip_gen: v7x
topology: tpu7x:2x2x1
jax: 0.10.0
libtpu: 0.0.40
codegen_flags: <defaults>
</compile_context>

<pallas_src>
import functools

import jax
import jax.numpy as jnp
import numpy as np
from jax.experimental import pallas as pl
from jax.experimental.pallas import tpu as pltpu

# ----------------------------- problem sizes ---------------------------------
N_BATCH = 2                 # N frames
F_IN = 2048                 # resnet50 pooled feature width (linear1 in_features)
H1 = 1024                   # hidden_size
H2 = 256
NUM_OUTPUTS = 6             # num_outputs (>=4 so both loss column slices are exercised)
LN_EPS = 1e-5               # nn.LayerNorm default eps

TILE_M = 8                  # frame-block (sublane) tile; x/out stay f32 so 8 is legal
P_PAD = 128                 # lane-pad num_outputs for the final matmul / output


# ----------------------------- Pallas kernel ---------------------------------
def _head_kernel(x_ref, w1_ref, w2_ref, w3_ref, ln1_ref, ln2_ref, b3_ref,
                 tgt_ref, out_ref, loss_ref, acc_ref,
                 *, n_valid, num_outputs, inv_denom, tile_m):
    """Fused head: (fc1 -> LN -> relu -> fc2 -> LN -> relu -> fc3) + weighted MSE."""
    i = pl.program_id(0)

    @pl.when(i == 0)
    def _init():
        acc_ref[0, 0] = 0.0

    def layernorm(h, b, g, be):
        h = h + b                                   # linear bias (added before LN)
        mu = jnp.mean(h, axis=-1, keepdims=True)
        d = h - mu
        var = jnp.mean(d * d, axis=-1, keepdims=True)
        return d * jax.lax.rsqrt(var + LN_EPS) * g + be   # rsqrt -> EUP slot (free)

    ln1 = ln1_ref[...]                              # (3, H1): [bias1, gamma1, beta1]
    ln2 = ln2_ref[...]                              # (3, H2): [bias2, gamma2, beta2]

    # layer 1: bf16 x bf16 MXU matmul, f32 accumulation
    x = x_ref[...].astype(jnp.bfloat16)
    h = jnp.dot(x, w1_ref[...], preferred_element_type=jnp.float32)
    h = jnp.maximum(layernorm(h, ln1[0:1], ln1[1:2], ln1[2:3]), 0.0)

    # layer 2
    h = jnp.dot(h.astype(jnp.bfloat16), w2_ref[...], preferred_element_type=jnp.float32)
    h = jnp.maximum(layernorm(h, ln2[0:1], ln2[1:2], ln2[2:3]), 0.0)

    # layer 3 (lane-padded to 128 output columns; padded weight columns are zeros)
    out = jnp.dot(h.astype(jnp.bfloat16), w3_ref[...],
                  preferred_element_type=jnp.float32) + b3_ref[...]
    out_ref[...] = out

    # column-weighted MSE over real (unpadded) elements; mask built in-kernel.
    rows = jax.lax.broadcasted_iota(jnp.int32, out.shape, 0) + i * tile_m
    cols = jax.lax.broadcasted_iota(jnp.int32, out.shape, 1)
    col_w = jnp.where(cols == 0, 1.0, jnp.where(cols < 3, 2.0, 2.5))
    w = jnp.where((rows < n_valid) & (cols < num_outputs), col_w, 0.0)
    d = out - tgt_ref[...]
    acc_ref[0, 0] += jnp.sum(d * d * w) * inv_denom
    loss_ref[0, 0] = acc_ref[0, 0]


def resnet_mc_head(features, params, targets=None):
    """features: (N, 2048) pooled backbone features.  Returns (output, loss)."""
    n = features.shape[0]
    num_blocks = int(pl.cdiv(n, TILE_M))
    m_pad = num_blocks * TILE_M

    x = features.reshape(n, -1).astype(jnp.float32)          # torch x.view(N, -1)
    x = jnp.pad(x, ((0, m_pad - n), (0, 0)))

    if targets is not None:
        tgt = jnp.pad(targets.astype(jnp.float32),
                      ((0, m_pad - n), (0, P_PAD - NUM_OUTPUTS)))
    else:
        tgt = jnp.zeros((m_pad, P_PAD), jnp.float32)

    kernel = functools.partial(
        _head_kernel,
        n_valid=n, num_outputs=NUM_OUTPUTS,
        inv_denom=1.0 / float(n * NUM_OUTPUTS), tile_m=TILE_M)

    # weights use constant index_maps -> VMEM-resident across the frame-block grid
    resident = lambda i: (0, 0)
    per_block = lambda i: (i, 0)

    out_pad, loss = pl.pallas_call(
        kernel,
        grid=(num_blocks,),
        out_shape=(jax.ShapeDtypeStruct((m_pad, P_PAD), jnp.float32),
                   jax.ShapeDtypeStruct((1, 1), jnp.float32)),
        in_specs=[
            pl.BlockSpec((TILE_M, F_IN), per_block),      # x (f32)
            pl.BlockSpec((F_IN, H1), resident),           # w1 (bf16, resident)
            pl.BlockSpec((H1, H2), resident),             # w2 (bf16, resident)
            pl.BlockSpec((H2, P_PAD), resident),          # w3 (bf16, lane-padded)
            pl.BlockSpec((3, H1), resident),              # [b1, g1, be1] (f32)
            pl.BlockSpec((3, H2), resident),              # [b2, g2, be2] (f32)
            pl.BlockSpec((1, P_PAD), resident),           # b3 (f32, lane-padded)
            pl.BlockSpec((TILE_M, P_PAD), per_block),     # targets
        ],
        out_specs=(
            pl.BlockSpec((TILE_M, P_PAD), per_block),     # predictions
            pl.BlockSpec((1, 1), lambda i: (0, 0),
                         memory_space=pltpu.MemorySpace.SMEM),   # loss scalar
        ),
        scratch_shapes=[pltpu.SMEM((1, 1), jnp.float32)], # loss accumulator
        compiler_params=pltpu.CompilerParams(
            dimension_semantics=("arbitrary",),           # loss reduction axis
            vmem_limit_bytes=32 * 1024 * 1024),
    )(x, params["w1"], params["w2"], params["w3"],
      params["ln1"], params["ln2"], params["b3"], tgt)

    output = out_pad[:n, :NUM_OUTPUTS]
    return output, (loss[0, 0] if targets is not None else None)


# ----------------------------- parameters ------------------------------------
def init_params(key):
    """nn.Linear-style uniform init; nn.LayerNorm default (gamma=1, beta=0)."""
    ks = jax.random.split(key, 6)

    def uni(k, shape, fan_in):
        bound = 1.0 / np.sqrt(fan_in)
        return jax.random.uniform(k, shape, jnp.float32, -bound, bound)

    w1 = uni(ks[0], (F_IN, H1), F_IN)
    b1 = uni(ks[1], (H1,), F_IN)
    w2 = uni(ks[2], (H1, H2), H1)
    b2 = uni(ks[3], (H2,), H1)
    w3 = uni(ks[4], (H2, NUM_OUTPUTS), H2)
    b3 = uni(ks[5], (NUM_OUTPUTS,), H2)
    g1 = jnp.ones((H1,), jnp.float32)
    be1 = jnp.zeros((H1,), jnp.float32)
    g2 = jnp.ones((H2,), jnp.float32)
    be2 = jnp.zeros((H2,), jnp.float32)

    # bf16 weight storage (halves the dominant 8 MiB HBM stream); biases/LN stay f32.
    w1_q = w1.astype(jnp.bfloat16)
    w2_q = w2.astype(jnp.bfloat16)
    w3_q = jnp.pad(w3, ((0, 0), (0, P_PAD - NUM_OUTPUTS))).astype(jnp.bfloat16)

    params = {
        "w1": w1_q,
        "w2": w2_q,
        "w3": w3_q,                                       # (H2, P_PAD) bf16
        "ln1": jnp.stack([b1, g1, be1], axis=0),          # (3, H1) f32
        "ln2": jnp.stack([b2, g2, be2], axis=0),          # (3, H2) f32
        "b3": jnp.pad(b3, ((0, P_PAD - NUM_OUTPUTS),)).reshape(1, P_PAD),
    }
    # f32 dequantized copies for the precision-aware reference
    ref = {
        "w1": w1_q.astype(jnp.float32), "b1": b1, "g1": g1, "be1": be1,
        "w2": w2_q.astype(jnp.float32), "b2": b2, "g2": g2, "be2": be2,
        "w3": w3_q[:, :NUM_OUTPUTS].astype(jnp.float32), "b3": b3,
    }
    return params, ref


# ----------------------------- pure-JAX reference ------------------------------
def reference_forward(features, ref, targets):
    """f32 reference using the same bf16-quantized matmul inputs as the kernel."""

    def layernorm(h, g, b):
        mu = jnp.mean(h, axis=-1, keepdims=True)
        var = jnp.mean((h - mu) ** 2, axis=-1, keepdims=True)
        return (h - mu) / jnp.sqrt(var + LN_EPS) * g + b

    def q(a):   # mirror the kernel: matmul LHS is quantized to bf16
        return a.astype(jnp.bfloat16).astype(jnp.float32)

    n = features.shape[0]
    x = features.reshape(n, -1).astype(jnp.float32)
    h = jnp.maximum(layernorm(q(x) @ ref["w1"] + ref["b1"], ref["g1"], ref["be1"]), 0.0)
    h = jnp.maximum(layernorm(q(h) @ ref["w2"] + ref["b2"], ref["g2"], ref["be2"]), 0.0)
    out = q(h) @ ref["w3"] + ref["b3"]
    l = (out - targets) ** 2
    l = l.at[:, 1:3].multiply(2.0)
    l = l.at[:, 3:].multiply(2.5)
    return out, jnp.mean(l)


# ----------------------------- main -------------------------------------------
if __name__ == "__main__":
    key = jax.random.PRNGKey(0)
    k_param, k_feat, k_tgt = jax.random.split(key, 3)

    params, ref = init_params(k_param)
    # stand-in for the resnet50 backbone's pooled (N, 2048) feature vector
    features = jax.random.normal(k_feat, (N_BATCH, F_IN), jnp.float32) * 0.5
    targets = jax.random.normal(k_tgt, (N_BATCH, NUM_OUTPUTS), jnp.float32)

    output, loss = resnet_mc_head(features, params, targets)
    output = jax.block_until_ready(output)
    loss = jax.block_until_ready(loss)

    ref_out, ref_loss = reference_forward(features, ref, targets)
    np.testing.assert_allclose(np.asarray(output), np.asarray(ref_out),
                               rtol=2e-3, atol=2e-3)
    np.testing.assert_allclose(float(loss), float(ref_loss),
                               rtol=2e-3, atol=2e-3)

    assert output.shape == (N_BATCH, NUM_OUTPUTS)
    print("KERNEL_OK")
</pallas_src>

<mosaic_0001>
module attributes {stable_mosaic.version = 11 : i64} {
  func.func @_head_kernel(%arg0: i32, %arg1: memref<8x2048xf32, #tpu.memory_space<vmem>>, %arg2: memref<2048x1024xbf16, #tpu.memory_space<vmem>>, %arg3: memref<1024x256xbf16, #tpu.memory_space<vmem>>, %arg4: memref<256x128xbf16, #tpu.memory_space<vmem>>, %arg5: memref<3x1024xf32, #tpu.memory_space<vmem>>, %arg6: memref<3x256xf32, #tpu.memory_space<vmem>>, %arg7: memref<1x128xf32, #tpu.memory_space<vmem>>, %arg8: memref<8x128xf32, #tpu.memory_space<vmem>>, %arg9: memref<8x128xf32, #tpu.memory_space<vmem>>, %arg10: memref<1x1xf32, #tpu.memory_space<smem>>, %arg11: memref<1x1xf32, #tpu.memory_space<smem>>) attributes {dimension_semantics = [#tpu.dimension_semantics<arbitrary>], iteration_bounds = array<i64: 1>, scalar_prefetch = 0 : i64, scratch_operands = 1 : i64, tpu.core_type = #tpu.core_type<tc>, window_params = [{transform_indices = @transform_0, window_bounds = array<i64: 8, 2048>}, {pipeline_mode = #tpu.pipeline_mode<synchronous>, transform_indices = @transform_1, window_bounds = array<i64: 2048, 1024>}, {pipeline_mode = #tpu.pipeline_mode<synchronous>, transform_indices = @transform_2, window_bounds = array<i64: 1024, 256>}, {pipeline_mode = #tpu.pipeline_mode<synchronous>, transform_indices = @transform_3, window_bounds = array<i64: 256, 128>}, {pipeline_mode = #tpu.pipeline_mode<synchronous>, transform_indices = @transform_4, window_bounds = array<i64: 3, 1024>}, {pipeline_mode = #tpu.pipeline_mode<synchronous>, transform_indices = @transform_5, window_bounds = array<i64: 3, 256>}, {pipeline_mode = #tpu.pipeline_mode<synchronous>, transform_indices = @transform_6, window_bounds = array<i64: 1, 128>}, {transform_indices = @transform_7, window_bounds = array<i64: 8, 128>}, {transform_indices = @transform_8, window_bounds = array<i64: 8, 128>}, {transform_indices = @transform_9, window_bounds = array<i64: 1, 1>}]} {
    %c0_i32 = arith.constant 0 : i32
    %0 = arith.cmpi eq, %arg0, %c0_i32 : i32
    %1 = arith.extui %0 : i1 to i32
    %c0_i32_0 = arith.constant 0 : i32
    %2 = arith.cmpi ne, %1, %c0_i32_0 : i32
    scf.if %2 {
      %cst_47 = arith.constant 0.000000e+00 : f32
      %c0_48 = arith.constant 0 : index
      %c0_49 = arith.constant 0 : index
      %108 = memref.load %arg11[%c0_48, %c0_49] : memref<1x1xf32, #tpu.memory_space<smem>>
      memref.store %cst_47, %arg11[%c0_48, %c0_49] : memref<1x1xf32, #tpu.memory_space<smem>>
    } else {
    }
    %c0 = arith.constant 0 : index
    %c0_1 = arith.constant 0 : index
    %3 = vector.load %arg5[%c0, %c0_1] : memref<3x1024xf32, #tpu.memory_space<vmem>>, vector<3x1024xf32>
    %c0_2 = arith.constant 0 : index
    %c0_3 = arith.constant 0 : index
    %4 = vector.load %arg6[%c0_2, %c0_3] : memref<3x256xf32, #tpu.memory_space<vmem>>, vector<3x256xf32>
    %c0_4 = arith.constant 0 : index
    %c0_5 = arith.constant 0 : index
    %5 = vector.load %arg1[%c0_4, %c0_5] : memref<8x2048xf32, #tpu.memory_space<vmem>>, vector<8x2048xf32>
    %6 = arith.truncf %5 : vector<8x2048xf32> to vector<8x2048xbf16>
    %c0_6 = arith.constant 0 : index
    %c0_7 = arith.constant 0 : index
    %7 = vector.load %arg2[%c0_6, %c0_7] : memref<2048x1024xbf16, #tpu.memory_space<vmem>>, vector<2048x1024xbf16>
    %cst = arith.constant dense<0.000000e+00> : vector<8x1024xf32>
    %8 = tpu.matmul %6, %7, %cst {dimension_numbers = #tpu.dot_dimension_numbers<[1], [0], [0], [1], [0, 0, 1, 1], [], []>} : vector<8x2048xbf16>, vector<2048x1024xbf16>, vector<8x1024xf32> -> vector<8x1024xf32>
    %9 = vector.extract_strided_slice %3 {offsets = [0, 0], sizes = [1, 1024], strides = [1, 1]} : vector<3x1024xf32> to vector<1x1024xf32>
    %10 = vector.extract_strided_slice %3 {offsets = [1, 0], sizes = [1, 1024], strides = [1, 1]} : vector<3x1024xf32> to vector<1x1024xf32>
    %11 = vector.extract_strided_slice %3 {offsets = [2, 0], sizes = [1, 1024], strides = [1, 1]} : vector<3x1024xf32> to vector<1x1024xf32>
    %12 = vector.broadcast %9 : vector<1x1024xf32> to vector<8x1024xf32>
    %13 = arith.addf %8, %12 : vector<8x1024xf32>
    %cst_8 = arith.constant dense<0.000000e+00> : vector<8xf32>
    %14 = vector.multi_reduction <add>, %13, %cst_8 [1] : vector<8x1024xf32> to vector<8xf32>
    %15 = vector.shape_cast %14 : vector<8xf32> to vector<8x1xf32>
    %cst_9 = arith.constant 1.024000e+03 : f32
    %16 = vector.broadcast %cst_9 : f32 to vector<8x1xf32>
    %17 = arith.divf %15, %16 : vector<8x1xf32>
    %18 = vector.broadcast %17 : vector<8x1xf32> to vector<8x1024xf32>
    %19 = arith.subf %13, %18 : vector<8x1024xf32>
    %20 = arith.mulf %19, %19 : vector<8x1024xf32>
    %cst_10 = arith.constant dense<0.000000e+00> : vector<8xf32>
    %21 = vector.multi_reduction <add>, %20, %cst_10 [1] : vector<8x1024xf32> to vector<8xf32>
    %22 = vector.shape_cast %21 : vector<8xf32> to vector<8x1xf32>
    %cst_11 = arith.constant 1.024000e+03 : f32
    %23 = vector.broadcast %cst_11 : f32 to vector<8x1xf32>
    %24 = arith.divf %22, %23 : vector<8x1xf32>
    %cst_12 = arith.constant 9.99999974E-6 : f32
    %25 = vector.broadcast %cst_12 : f32 to vector<8x1xf32>
    %26 = arith.addf %24, %25 : vector<8x1xf32>
    %27 = math.rsqrt %26 : vector<8x1xf32>
    %28 = vector.broadcast %27 : vector<8x1xf32> to vector<8x1024xf32>
    %29 = arith.mulf %19, %28 : vector<8x1024xf32>
    %30 = vector.broadcast %10 : vector<1x1024xf32> to vector<8x1024xf32>
    %31 = arith.mulf %29, %30 : vector<8x1024xf32>
    %32 = vector.broadcast %11 : vector<1x1024xf32> to vector<8x1024xf32>
    %33 = arith.addf %31, %32 : vector<8x1024xf32>
    %cst_13 = arith.constant 0.000000e+00 : f32
    %34 = vector.broadcast %cst_13 : f32 to vector<8x1024xf32>
    %35 = arith.maximumf %33, %34 : vector<8x1024xf32>
    %36 = arith.truncf %35 : vector<8x1024xf32> to vector<8x1024xbf16>
    %c0_14 = arith.constant 0 : index
    %c0_15 = arith.constant 0 : index
    %37 = vector.load %arg3[%c0_14, %c0_15] : memref<1024x256xbf16, #tpu.memory_space<vmem>>, vector<1024x256xbf16>
    %cst_16 = arith.constant dense<0.000000e+00> : vector<8x256xf32>
    %38 = tpu.matmul %36, %37, %cst_16 {dimension_numbers = #tpu.dot_dimension_numbers<[1], [0], [0], [1], [0, 0, 1, 1], [], []>} : vector<8x1024xbf16>, vector<1024x256xbf16>, vector<8x256xf32> -> vector<8x256xf32>
    %39 = vector.extract_strided_slice %4 {offsets = [0, 0], sizes = [1, 256], strides = [1, 1]} : vector<3x256xf32> to vector<1x256xf32>
    %40 = vector.extract_strided_slice %4 {offsets = [1, 0], sizes = [1, 256], strides = [1, 1]} : vector<3x256xf32> to vector<1x256xf32>
    %41 = vector.extract_strided_slice %4 {offsets = [2, 0], sizes = [1, 256], strides = [1, 1]} : vector<3x256xf32> to vector<1x256xf32>
    %42 = vector.broadcast %39 : vector<1x256xf32> to vector<8x256xf32>
    %43 = arith.addf %38, %42 : vector<8x256xf32>
    %cst_17 = arith.constant dense<0.000000e+00> : vector<8xf32>
    %44 = vector.multi_reduction <add>, %43, %cst_17 [1] : vector<8x256xf32> to vector<8xf32>
    %45 = vector.shape_cast %44 : vector<8xf32> to vector<8x1xf32>
    %cst_18 = arith.constant 2.560000e+02 : f32
    %46 = vector.broadcast %cst_18 : f32 to vector<8x1xf32>
    %47 = arith.divf %45, %46 : vector<8x1xf32>
    %48 = vector.broadcast %47 : vector<8x1xf32> to vector<8x256xf32>
    %49 = arith.subf %43, %48 : vector<8x256xf32>
    %50 = arith.mulf %49, %49 : vector<8x256xf32>
    %cst_19 = arith.constant dense<0.000000e+00> : vector<8xf32>
    %51 = vector.multi_reduction <add>, %50, %cst_19 [1] : vector<8x256xf32> to vector<8xf32>
    %52 = vector.shape_cast %51 : vector<8xf32> to vector<8x1xf32>
    %cst_20 = arith.constant 2.560000e+02 : f32
    %53 = vector.broadcast %cst_20 : f32 to vector<8x1xf32>
    %54 = arith.divf %52, %53 : vector<8x1xf32>
    %cst_21 = arith.constant 9.99999974E-6 : f32
    %55 = vector.broadcast %cst_21 : f32 to vector<8x1xf32>
    %56 = arith.addf %54, %55 : vector<8x1xf32>
    %57 = math.rsqrt %56 : vector<8x1xf32>
    %58 = vector.broadcast %57 : vector<8x1xf32> to vector<8x256xf32>
    %59 = arith.mulf %49, %58 : vector<8x256xf32>
    %60 = vector.broadcast %40 : vector<1x256xf32> to vector<8x256xf32>
    %61 = arith.mulf %59, %60 : vector<8x256xf32>
    %62 = vector.broadcast %41 : vector<1x256xf32> to vector<8x256xf32>
    %63 = arith.addf %61, %62 : vector<8x256xf32>
    %cst_22 = arith.constant 0.000000e+00 : f32
    %64 = vector.broadcast %cst_22 : f32 to vector<8x256xf32>
    %65 = arith.maximumf %63, %64 : vector<8x256xf32>
    %66 = arith.truncf %65 : vector<8x256xf32> to vector<8x256xbf16>
    %c0_23 = arith.constant 0 : index
    %c0_24 = arith.constant 0 : index
    %67 = vector.load %arg4[%c0_23, %c0_24] : memref<256x128xbf16, #tpu.memory_space<vmem>>, vector<256x128xbf16>
    %cst_25 = arith.constant dense<0.000000e+00> : vector<8x128xf32>
    %68 = tpu.matmul %66, %67, %cst_25 {dimension_numbers = #tpu.dot_dimension_numbers<[1], [0], [0], [1], [0, 0, 1, 1], [], []>} : vector<8x256xbf16>, vector<256x128xbf16>, vector<8x128xf32> -> vector<8x128xf32>
    %c0_26 = arith.constant 0 : index
    %c0_27 = arith.constant 0 : index
    %69 = vector.load %arg7[%c0_26, %c0_27] : memref<1x128xf32, #tpu.memory_space<vmem>>, vector<1x128xf32>
    %70 = vector.broadcast %69 : vector<1x128xf32> to vector<8x128xf32>
    %71 = arith.addf %68, %70 : vector<8x128xf32>
    %c0_28 = arith.constant 0 : index
    %c0_29 = arith.constant 0 : index
    %72 = vector.load %arg9[%c0_28, %c0_29] : memref<8x128xf32, #tpu.memory_space<vmem>>, vector<8x128xf32>
    tpu.vector_store %arg9[%c0_28, %c0_29], %71 {strides = array<i32>} : memref<8x128xf32, #tpu.memory_space<vmem>>, vector<8x128xf32>,
    %73 = tpu.iota {dimensions = array<i32: 0>} : vector<8x128xi32>
    %c8_i32 = arith.constant 8 : i32
    %74 = arith.muli %arg0, %c8_i32 : i32
    %75 = vector.broadcast %74 : i32 to vector<8x128xi32>
    %76 = arith.addi %73, %75 : vector<8x128xi32>
    %77 = tpu.iota {dimensions = array<i32: 1>} : vector<8x128xi32>
    %c0_i32_30 = arith.constant 0 : i32
    %78 = vector.broadcast %c0_i32_30 : i32 to vector<8x128xi32>
    %79 = arith.cmpi eq, %77, %78 : vector<8x128xi32>
    %c3_i32 = arith.constant 3 : i32
    %80 = vector.broadcast %c3_i32 : i32 to vector<8x128xi32>
    %81 = arith.cmpi slt, %77, %80 : vector<8x128xi32>
    %cst_31 = arith.constant 2.000000e+00 : f32
    %cst_32 = arith.constant 2.500000e+00 : f32
    %82 = vector.broadcast %cst_31 : f32 to vector<8x128xf32>
    %83 = vector.broadcast %cst_32 : f32 to vector<8x128xf32>
    %84 = arith.select %81, %82, %83 : vector<8x128xi1>, vector<8x128xf32>
    %cst_33 = arith.constant 1.000000e+00 : f32
    %85 = vector.broadcast %cst_33 : f32 to vector<8x128xf32>
    %86 = arith.select %79, %85, %84 : vector<8x128xi1>, vector<8x128xf32>
    %c2_i32 = arith.constant 2 : i32
    %87 = vector.broadcast %c2_i32 : i32 to vector<8x128xi32>
    %88 = arith.cmpi slt, %76, %87 : vector<8x128xi32>
    %c6_i32 = arith.constant 6 : i32
    %89 = vector.broadcast %c6_i32 : i32 to vector<8x128xi32>
    %90 = arith.cmpi slt, %77, %89 : vector<8x128xi32>
    %91 = arith.andi %88, %90 : vector<8x128xi1>
    %cst_34 = arith.constant 0.000000e+00 : f32
    %92 = vector.broadcast %cst_34 : f32 to vector<8x128xf32>
    %93 = arith.select %91, %86, %92 : vector<8x128xi1>, vector<8x128xf32>
    %c0_35 = arith.constant 0 : index
    %c0_36 = arith.constant 0 : index
    %94 = vector.load %arg8[%c0_35, %c0_36] : memref<8x128xf32, #tpu.memory_space<vmem>>, vector<8x128xf32>
    %95 = arith.subf %71, %94 : vector<8x128xf32>
    %c0_37 = arith.constant 0 : index
    %c0_38 = arith.constant 0 : index
    %96 = memref.load %arg11[%c0_37, %c0_38] : memref<1x1xf32, #tpu.memory_space<smem>>
    %97 = arith.mulf %95, %95 : vector<8x128xf32>
    %98 = arith.mulf %97, %93 : vector<8x128xf32>
    %99 = vector.shape_cast %98 : vector<8x128xf32> to vector<1x8x128xf32>
    %cst_39 = arith.constant dense<0.000000e+00> : vector<1xf32>
    %100 = vector.multi_reduction <add>, %99, %cst_39 [1, 2] : vector<1x8x128xf32> to vector<1xf32>
    %101 = vector.shape_cast %100 : vector<1xf32> to vector<1x1x1xf32>
    %102 = vector.extract %101[0, 0, 0] : f32 from vector<1x1x1xf32>
    %cst_40 = arith.constant 0.0833333358 : f32
    %103 = arith.mulf %102, %cst_40 : f32
    %104 = arith.addf %96, %103 : f32
    %c0_41 = arith.constant 0 : index
    %c0_42 = arith.constant 0 : index
    %105 = memref.load %arg11[%c0_41, %c0_42] : memref<1x1xf32, #tpu.memory_space<smem>>
    memref.store %104, %arg11[%c0_41, %c0_42] : memref<1x1xf32, #tpu.memory_space<smem>>
    %c0_43 = arith.constant 0 : index
    %c0_44 = arith.constant 0 : index
    %106 = memref.load %arg11[%c0_43, %c0_44] : memref<1x1xf32, #tpu.memory_space<smem>>
    %c0_45 = arith.constant 0 : index
    %c0_46 = arith.constant 0 : index
    %107 = memref.load %arg10[%c0_45, %c0_46] : memref<1x1xf32, #tpu.memory_space<smem>>
    memref.store %106, %arg10[%c0_45, %c0_46] : memref<1x1xf32, #tpu.memory_space<smem>>
    return
  }
  func.func @transform_0(%arg0: i32) -> (i32, i32) {
    %c0_i32 = arith.constant 0 : i32
    %c0_i32_0 = arith.constant 0 : i32
    return %arg0, %c0_i32 : i32, i32
  }
  func.func @transform_1(%arg0: i32) -> (i32, i32) {
    %c0_i32 = arith.constant 0 : i32
    %c0_i32_0 = arith.constant 0 : i32
    %c0_i32_1 = arith.constant 0 : i32
    return %c0_i32, %c0_i32_0 : i32, i32
  }
  func.func @transform_2(%arg0: i32) -> (i32, i32) {
    %c0_i32 = arith.constant 0 : i32
    %c0_i32_0 = arith.constant 0 : i32
    %c0_i32_1 = arith.constant 0 : i32
    return %c0_i32, %c0_i32_0 : i32, i32
  }
  func.func @transform_3(%arg0: i32) -> (i32, i32) {
    %c0_i32 = arith.constant 0 : i32
    %c0_i32_0 = arith.constant 0 : i32
    %c0_i32_1 = arith.constant 0 : i32
    return %c0_i32, %c0_i32_0 : i32, i32
  }
  func.func @transform_4(%arg0: i32) -> (i32, i32) {
    %c0_i32 = arith.constant 0 : i32
    %c0_i32_0 = arith.constant 0 : i32
    %c0_i32_1 = arith.constant 0 : i32
    return %c0_i32, %c0_i32_0 : i32, i32
  }
  func.func @transform_5(%arg0: i32) -> (i32, i32) {
    %c0_i32 = arith.constant 0 : i32
    %c0_i32_0 = arith.constant 0 : i32
    %c0_i32_1 = arith.constant 0 : i32
    return %c0_i32, %c0_i32_0 : i32, i32
  }
  func.func @transform_6(%arg0: i32) -> (i32, i32) {
    %c0_i32 = arith.constant 0 : i32
    %c0_i32_0 = arith.constant 0 : i32
    %c0_i32_1 = arith.constant 0 : i32
    return %c0_i32, %c0_i32_0 : i32, i32
  }
  func.func @transform_7(%arg0: i32) -> (i32, i32) {
    %c0_i32 = arith.constant 0 : i32
    %c0_i32_0 = arith.constant 0 : i32
    return %arg0, %c0_i32 : i32, i32
  }
  func.func @transform_8(%arg0: i32) -> (i32, i32) {
    %c0_i32 = arith.constant 0 : i32
    %c0_i32_0 = arith.constant 0 : i32
    return %arg0, %c0_i32 : i32, i32
  }
  func.func @transform_9(%arg0: i32) -> (i32, i32) {
    %c0_i32 = arith.constant 0 : i32
    %c0_i32_0 = arith.constant 0 : i32
    %c0_i32_1 = arith.constant 0 : i32
    return %c0_i32, %c0_i32_0 : i32, i32
  }
}

</mosaic_0001>

<bundles_post_ra>
// kernel: tpu_custom_call.1
= control target key start
LH: loop header
LB: loop body
LE: loop exit
PB: predicated region body
PF: predicated region fallthrough
CT: control target
= control target key end

     0   :  { %15 = vsyncpa [#allocation4], 0  ;;  %s11458_s0 = inlined_call_operand.hbm [shape: f32[8,2048], index: 0, kind: input, shape index: {}]   ;;  %s11459_s1 = inlined_call_operand.hbm [shape: bf16[2048,1024], index: 1, kind: input, shape index: {}]   ;;  %s11460_s2 = inlined_call_operand.hbm [shape: bf16[1024,256], index: 2, kind: input, shape index: {}]   ;;  %s11461_s3 = inlined_call_operand.hbm [shape: bf16[256,128], index: 3, kind: input, shape index: {}]   ;;  %s11462_s4 = inlined_call_operand.hbm [shape: f32[3,1024], index: 4, kind: input, shape index: {}]   ;;  %s11463_s5 = inlined_call_operand.hbm [shape: f32[3,256], index: 5, kind: input, shape index: {}]   ;;  %s11464_s6 = inlined_call_operand.hbm [shape: f32[1,128], index: 6, kind: input, shape index: {}]   ;;  %s11465_s7 = inlined_call_operand.hbm [shape: f32[8,128], index: 7, kind: input, shape index: {}]   ;;  %s11466_s8 = inlined_call_operand.hbm [shape: f32[8,128], index: 8, kind: output, shape index: {0}]   ;;  %s11467_s9 = inlined_call_operand.hbm [shape: f32[1,1], index: 9, kind: output, shape index: {1}]  }
   0x1   :  { %16 = vsyncpa [#allocation8], 0 }
   0x2   :  { %17 = vsyncpa [#allocation11], 0 }
   0x3   :  { %18 = vsyncpa [#allocation14], 0 }
   0x4   :  { %19 = vsyncpa [#allocation17], 0 }
   0x5   :  { %20 = vsyncpa [#allocation5], 0 }
   0x6   :  { %21 = vsyncpa [#allocation6], 0  ;;  %s10964_s30 = smov [#allocation7]   ;;  %s10742_s13 = scalar_lea.hbm %s11459_s1, 131072 }
   0x7   :  { %s37_s10 = sshll.u32 %s10964_s30, 4  ;;  %p10743_p0 = scmp.ne.s32.totalorder %s11459_s1, %s10742_s13  ;;  %s38_s10 = int_to_ptr.vmem [resolvable:$true] %s37_s10 }
   0x8   :  { %p10746_p1 = scmp.lt.u32.totalorder %s10742_s13, %s11459_s1 }
   0xa   :  { %p10748_p2 = pnand %p10746_p1, %p10743_p0 }
   0xc   :  { %10751 = shalt.err (!%p10748_p2)
}
   0xd   :  { %s10752_s18 = scalar_lea.vmem %s38_s10, 131072  ;;  %p10757_p4 = scmp.lt.s32.totalorder %s38_s10, %s38_s10 }
   0xe   :  { %p10753_p3 = scmp.ne.s32.totalorder %s38_s10, %s10752_s18  ;;  %p10758_p5 = scmp.lt.s32.totalorder %s10752_s18, %s10752_s18 }
  0x10   :  { %p10759_p6 = por %p10758_p5, %p10757_p4 }
  0x12   :  { %p10760_p7 = pnand %p10759_p6, %p10753_p3 }
  0x14   :  { %10763 = shalt.err (!%p10760_p7)
}
  0x15   :  { %s10965_s19 = smov 512   ;;  %s10966_s20 = smov 32  }
  0x16   :  { %43 = dma.hbm_to_vmem [thread:$0]  %s11459_s1, 131072, %s38_s10, [#allocation8], %s10965_s19, %s10965_s19, %s10966_s20  }
  0x17   :  { %s10967_s23 = smov [#allocation10]   ;;  %s10764_s27 = scalar_lea.hbm %s11461_s3, 2048 }
  0x18   :  { %s61_s24 = sshll.u32 %s10967_s23, 4  ;;  %p10765_p8 = scmp.ne.s32.totalorder %s11461_s3, %s10764_s27  ;;  %s62_s24 = int_to_ptr.vmem [resolvable:$true] %s61_s24 }
  0x19   :  { %p10768_p9 = scmp.lt.u32.totalorder %s10764_s27, %s11461_s3 }
  0x1b   :  { %p10770_p10 = pnand %p10768_p9, %p10765_p8 }
  0x1d   :  { %10773 = shalt.err (!%p10770_p10)
}
  0x1e   :  { %s10774_s12 = scalar_lea.vmem %s62_s24, 2048  ;;  %p10779_p12 = scmp.lt.s32.totalorder %s62_s24, %s62_s24 }
  0x1f   :  { %p10775_p11 = scmp.ne.s32.totalorder %s62_s24, %s10774_s12  ;;  %p10780_p13 = scmp.lt.s32.totalorder %s10774_s12, %s10774_s12 }
  0x21   :  { %p10781_p0 = por %p10780_p13, %p10779_p12 }
  0x23   :  { %p10782_p1 = pnand %p10781_p0, %p10775_p11 }
  0x25   :  { %10785 = shalt.err (!%p10782_p1)
}
  0x26   :  { %s10968_s1 = smov 64   ;;  %s10969_s10 = smov 4  }
  0x27   :  { %67 = dma.hbm_to_vmem [thread:$0]  %s11461_s3, 2048, %s62_s24, [#allocation11], %s10968_s1, %s10968_s1, %s10969_s10  }
  0x28   :  { %s10970_s15 = smov [#allocation13]   ;;  %s10971_s17 = smov [#allocation3]  }
  0x29   :  { %s84_s16 = sshll.u32 %s10970_s15, 4  ;;  %s28_s18 = sshll.u32 %s10971_s17, 4  ;;  %s85_s16 = int_to_ptr.vmem [resolvable:$true] %s84_s16  ;;  %s29_s18 = int_to_ptr.vmem [resolvable:$true] %s28_s18 }
  0x2a   :  { %s10786_s21 = scalar_lea.hbm %s11463_s5, 128 }
  0x2b   :  { %p10787_p2 = scmp.ne.s32.totalorder %s11463_s5, %s10786_s21  ;;  %p10790_p3 = scmp.lt.u32.totalorder %s10786_s21, %s11463_s5 }
  0x2d   :  { %p10792_p4 = pnand %p10790_p3, %p10787_p2 }
  0x2f   :  { %10795 = shalt.err (!%p10792_p4)
}
  0x30   :  { %s10796_s3 = scalar_lea.vmem %s85_s16, 128  ;;  %p10801_p6 = scmp.lt.s32.totalorder %s85_s16, %s85_s16 }
  0x31   :  { %p10797_p5 = scmp.ne.s32.totalorder %s85_s16, %s10796_s3  ;;  %p10802_p7 = scmp.lt.s32.totalorder %s10796_s3, %s10796_s3 }
  0x33   :  { %p10803_p8 = por %p10802_p7, %p10801_p6 }
  0x35   :  { %p10804_p9 = pnand %p10803_p8, %p10797_p5 }
  0x37   :  { %10807 = shalt.err (!%p10804_p9)
}
  0x38   :  { %87 = dma.hbm_to_vmem [thread:$0]  %s11463_s5, 128, %s85_s16, [#allocation14]  }
  0x39   :  { %s10808_s30 = scalar_lea.hbm %s11458_s0, 2048 }
  0x3a   :  { %p10809_p10 = scmp.ne.s32.totalorder %s11458_s0, %s10808_s30  ;;  %p10812_p11 = scmp.lt.u32.totalorder %s10808_s30, %s11458_s0 }
  0x3c   :  { %p10814_p12 = pnand %p10812_p11, %p10809_p10 }
  0x3e   :  { %10817 = shalt.err (!%p10814_p12)
}
  0x3f   :  { %s10818_s13 = scalar_lea.vmem %s29_s18, 2048  ;;  %p10823_p0 = scmp.lt.s32.totalorder %s29_s18, %s29_s18 }
  0x40   :  { %p10819_p13 = scmp.ne.s32.totalorder %s29_s18, %s10818_s13  ;;  %p10824_p1 = scmp.lt.s32.totalorder %s10818_s13, %s10818_s13 }
  0x42   :  { %p10825_p2 = por %p10824_p1, %p10823_p0 }
  0x44   :  { %p10826_p3 = pnand %p10825_p2, %p10819_p13 }
  0x46   :  { %10829 = shalt.err (!%p10826_p3)
}
  0x47   :  { %31 = dma.hbm_to_vmem [thread:$0]  %s11458_s0, 2048, %s29_s18, [#allocation4]  }
  0x48   :  { %s10972_s15 = smov [#allocation9]   ;;  %s10830_s20 = scalar_lea.hbm %s11460_s2, 16384 }
  0x49   :  { %s49_s16 = sshll.u32 %s10972_s15, 4  ;;  %p10831_p4 = scmp.ne.s32.totalorder %s11460_s2, %s10830_s20  ;;  %s50_s16 = int_to_ptr.vmem [resolvable:$true] %s49_s16 }
  0x4a   :  { %p10834_p5 = scmp.lt.u32.totalorder %s10830_s20, %s11460_s2 }
  0x4c   :  { %p10836_p6 = pnand %p10834_p5, %p10831_p4 }
  0x4e   :  { %10839 = shalt.err (!%p10836_p6)
}
  0x4f   :  { %s10840_s26 = scalar_lea.vmem %s50_s16, 16384  ;;  %p10845_p8 = scmp.lt.s32.totalorder %s50_s16, %s50_s16 }
  0x50   :  { %p10841_p7 = scmp.ne.s32.totalorder %s50_s16, %s10840_s26  ;;  %p10846_p9 = scmp.lt.s32.totalorder %s10840_s26, %s10840_s26 }
  0x52   :  { %p10847_p10 = por %p10846_p9, %p10845_p8 }
  0x54   :  { %p10848_p11 = pnand %p10847_p10, %p10841_p7 }
  0x56   :  { %10851 = shalt.err (!%p10848_p11)
}
  0x57   :  { %s10973_s0 = smov 128   ;;  %s10974_s18 = smov 8  }
  0x58   :  { %55 = dma.hbm_to_vmem [thread:$0]  %s11460_s2, 16384, %s50_s16, [#allocation8], %s10973_s0, %s10973_s0, %s10974_s18  }
  0x59   :  { %s10975_s27 = smov [#allocation12]   ;;  %s10976_s29 = smov [#allocation15]  }
  0x5a   :  { %s74_s28 = sshll.u32 %s10975_s27, 4  ;;  %s94_s30 = sshll.u32 %s10976_s29, 4  ;;  %s75_s28 = int_to_ptr.vmem [resolvable:$true] %s74_s28  ;;  %s95_s30 = int_to_ptr.vmem [resolvable:$true] %s94_s30 }
  0x5b   :  { %s10852_s1 = scalar_lea.hbm %s11462_s4, 512 }
  0x5c   :  { %p10853_p12 = scmp.ne.s32.totalorder %s11462_s4, %s10852_s1  ;;  %p10856_p13 = scmp.lt.u32.totalorder %s10852_s1, %s11462_s4 }
  0x5e   :  { %p10858_p0 = pnand %p10856_p13, %p10853_p12 }
  0x60   :  { %10861 = shalt.err (!%p10858_p0)
}
  0x61   :  { %s10862_s2 = scalar_lea.vmem %s75_s28, 512  ;;  %p10867_p2 = scmp.lt.s32.totalorder %s75_s28, %s75_s28 }
  0x62   :  { %p10863_p1 = scmp.ne.s32.totalorder %s75_s28, %s10862_s2  ;;  %p10868_p3 = scmp.lt.s32.totalorder %s10862_s2, %s10862_s2 }
  0x64   :  { %p10869_p4 = por %p10868_p3, %p10867_p2 }
  0x66   :  { %p10870_p5 = pnand %p10869_p4, %p10863_p1 }
  0x68   :  { %10873 = shalt.err (!%p10870_p5)
}
  0x69   :  { %77 = dma.hbm_to_vmem [thread:$0]  %s11462_s4, 512, %s75_s28, [#allocation11]  }
  0x6a   :  { %s10874_s20 = scalar_lea.hbm %s11464_s6, 16 }
  0x6b   :  { %p10875_p6 = scmp.ne.s32.totalorder %s11464_s6, %s10874_s20  ;;  %p10878_p7 = scmp.lt.u32.totalorder %s10874_s20, %s11464_s6 }
  0x6d   :  { %p10880_p8 = pnand %p10878_p7, %p10875_p6 }
  0x6f   :  { %10883 = shalt.err (!%p10880_p8)
}
  0x70   :  { %s10884_s26 = scalar_lea.vmem %s95_s30, 16  ;;  %s10888_s0 = scalar_lea.vmem %s95_s30, 32 }
  0x71   :  { %p10885_p9 = scmp.ne.s32.totalorder %s95_s30, %s10884_s26  ;;  %p10889_p10 = scmp.lt.s32.totalorder %s95_s30, %s95_s30 }
  0x72   :  { %p10890_p11 = scmp.lt.s32.totalorder %s10888_s0, %s10884_s26 }
  0x74   :  { %p10891_p12 = por %p10890_p11, %p10889_p10 }
  0x76   :  { %p10892_p13 = pnand %p10891_p12, %p10885_p9 }
  0x78   :  { %10895 = shalt.err (!%p10892_p13)
}
  0x79   :  { %97 = dma.hbm_to_vmem [thread:$0]  %s11464_s6, 16, %s95_s30, [#allocation14]  }
  0x7a   :  { %s10977_s3 = smov [#allocation16]   ;;  %s10896_s29 = scalar_lea.hbm %s11465_s7, 128 }
  0x7b   :  { %s104_s24 = sshll.u32 %s10977_s3, 4  ;;  %p10897_p0 = scmp.ne.s32.totalorder %s11465_s7, %s10896_s29  ;;  %s105_s24 = int_to_ptr.vmem [resolvable:$true] %s104_s24 }
  0x7c   :  { %p10900_p1 = scmp.lt.u32.totalorder %s10896_s29, %s11465_s7 }
  0x7e   :  { %p10902_p2 = pnand %p10900_p1, %p10897_p0 }
  0x80   :  { %10905 = shalt.err (!%p10902_p2)
}
  0x81   :  { %s10906_s13 = scalar_lea.vmem %s105_s24, 128  ;;  %p10911_p4 = scmp.lt.s32.totalorder %s105_s24, %s105_s24 }
  0x82   :  { %p10907_p3 = scmp.ne.s32.totalorder %s105_s24, %s10906_s13  ;;  %p10912_p5 = scmp.lt.s32.totalorder %s10906_s13, %s10906_s13 }
  0x84   :  { %p10913_p6 = por %p10912_p5, %p10911_p4 }
  0x86   :  { %p10914_p7 = pnand %p10913_p6, %p10907_p3 }
  0x88   :  { %10917 = shalt.err (!%p10914_p7)
}
  0x89   :  { %107 = dma.hbm_to_vmem [thread:$0]  %s11465_s7, 128, %s105_s24, [#allocation17]  }
  0x8a   :  { %10950 = dma.done.wait [#allocation4], 2048  }
  0x8b   :  { %10951 = vsyncadd [#allocation4], 4294965248 }
  0x8c   :  { %10952 = dma.done.wait [#allocation8], 147456  }
  0x8d   :  { %10953 = vsyncadd [#allocation8], 4294819840 }
  0x8e   :  { %10954 = dma.done.wait [#allocation11], 2560  }
  0x8f   :  { %10955 = vsyncadd [#allocation11], 4294964736 }
  0x90   :  { %10956 = dma.done.wait [#allocation14], 144  }
  0x91   :  { %10957 = vsyncadd [#allocation14], 4294967152 }
  0x92   :  { %10958 = dma.done.wait [#allocation17], 128  }
  0x93   :  { %10959 = vsyncadd [#allocation17], 4294967168  ;;  %v176_v0 = vld [vmem:[#allocation7] sm:$0xff]  ;;  %v145_v53 = vld [vmem:[#allocation3 + $0x8] sm:$0xff]  ;;  %s10979_s7 = smov [#allocation18]  }
  0x94   :  { %v180_v1 = vld [vmem:[#allocation7 + $0x20] sm:$0xff]  ;;  %v11127_v57 = vpack.c.bf16 %v145_v53, %v145_v53  ;;  %v149_v58 = vld [vmem:[#allocation3 + $0x28] sm:$0xff]  ;;  %s9161_s5 = sshll.u32 %s10979_s7, 4  ;;  %s9162_s5 = int_to_ptr.vmem [resolvable:$true] %s9161_s5 }
  0x95   :  { %v432_v2 = vld [vmem:[#allocation7 + $0x800] sm:$0xff]  ;;  %v9188_v3 = vcombine.high %v176_v0, %v180_v1  ;;  %v9187_v5 = vcombine.low %v176_v0, %v180_v1  ;;  %v11129_v61 = vpack.c.bf16 %v149_v58, %v149_v58  ;;  %s10918_s14 = scalar_lea.vmem %s9162_s5, 128  ;;  %p10923_p9 = scmp.lt.s32.totalorder %s9162_s5, %s9162_s5 }
  0x96   :  { %v436_v4 = vld [vmem:[#allocation7 + $0x820] sm:$0xff]  ;;  %6428 = vmatprep.mubr.bf16.mxu1 %v11127_v57  ;;  %p10919_p8 = scmp.ne.s32.totalorder %s9162_s5, %s10918_s14  ;;  %p10924_p10 = scmp.lt.s32.totalorder %s10918_s14, %s10918_s14 }
  0x97   :  { %v184_v6 = vld [vmem:[#allocation7 + $0x40] sm:$0xff]  ;;  %v9444_v8 = vcombine.high %v432_v2, %v436_v4  ;;  %v9443_v9 = vcombine.low %v432_v2, %v436_v4  ;;  %6396 = vmatprep.subr.bf16.mxu1 %v9188_v3  ;;  %6510 = vmatprep.mubr.bf16.mxu0 %v11129_v61 }
  0x98   :  { %v188_v7 = vld [vmem:[#allocation7 + $0x60] sm:$0xff]  ;;  %6397 = vmatpush1.bf16.msra.mxu1 %v9187_v5  ;;  %p10925_p11 = por %p10924_p10, %p10923_p9 }
  0x99   :  { %v9196_v10 = vcombine.high %v184_v6, %v188_v7  ;;  %v440_v11 = vld [vmem:[#allocation7 + $0x840] sm:$0xff]  ;;  %6478 = vmatprep.subr.bf16.mxu0 %v9444_v8  ;;  %v9195_v18 = vcombine.low %v184_v6, %v188_v7 }
  0x9a   :  { %v444_v12 = vld [vmem:[#allocation7 + $0x860] sm:$0xff]  ;;  %6479 = vmatpush1.bf16.msra.mxu0 %v9443_v9  ;;  %p10926_p12 = pnand %p10925_p11, %p10919_p8 }
  0x9b   :  { %v192_v13 = vld [vmem:[#allocation7 + $0x80] sm:$0xff]  ;;  %v9452_v14 = vcombine.high %v440_v11, %v444_v12  ;;  %6398 = vmatprep.subr.bf16.mxu1 %v9196_v10  ;;  %v9451_v19 = vcombine.low %v440_v11, %v444_v12 }
  0x9c   :  { %v196_v15 = vld [vmem:[#allocation7 + $0xa0] sm:$0xff]  ;;  %6399 = vmatpush1.bf16.msra.mxu1 %v9195_v18 }
  0x9d   :  { %v448_v16 = vld [vmem:[#allocation7 + $0x880] sm:$0xff]  ;;  %v9204_v20 = vcombine.high %v192_v13, %v196_v15  ;;  %6480 = vmatprep.subr.bf16.mxu0 %v9452_v14  ;;  %v9203_v26 = vcombine.low %v192_v13, %v196_v15 }
  0x9e   :  { %v452_v17 = vld [vmem:[#allocation7 + $0x8a0] sm:$0xff]  ;;  %6481 = vmatpush1.bf16.msra.mxu0 %v9451_v19 }
  0x9f   :  { %v9460_v21 = vcombine.high %v448_v16, %v452_v17  ;;  %v200_v22 = vld [vmem:[#allocation7 + $0xc0] sm:$0xff]  ;;  %6400 = vmatprep.subr.bf16.mxu1 %v9204_v20  ;;  %v9459_v27 = vcombine.low %v448_v16, %v452_v17 }
  0xa0   :  { %v204_v23 = vld [vmem:[#allocation7 + $0xe0] sm:$0xff]  ;;  %6401 = vmatpush1.bf16.msra.mxu1 %v9203_v26 }
  0xa1   :  { %v456_v24 = vld [vmem:[#allocation7 + $0x8c0] sm:$0xff]  ;;  %v9212_v28 = vcombine.high %v200_v22, %v204_v23  ;;  %6482 = vmatprep.subr.bf16.mxu0 %v9460_v21  ;;  %v9211_v34 = vcombine.low %v200_v22, %v204_v23 }
  0xa2   :  { %v460_v25 = vld [vmem:[#allocation7 + $0x8e0] sm:$0xff]  ;;  %6483 = vmatpush1.bf16.msra.mxu0 %v9459_v27 }
  0xa3   :  { %v9468_v29 = vcombine.high %v456_v24, %v460_v25  ;;  %v208_v30 = vld [vmem:[#allocation7 + $0x100] sm:$0xff]  ;;  %6402 = vmatprep.subr.bf16.mxu1 %v9212_v28  ;;  %v9467_v35 = vcombine.low %v456_v24, %v460_v25 }
  0xa4   :  { %v212_v31 = vld [vmem:[#allocation7 + $0x120] sm:$0xff]  ;;  %6403 = vmatpush1.bf16.msra.mxu1 %v9211_v34 }
  0xa5   :  { %v464_v32 = vld [vmem:[#allocation7 + $0x900] sm:$0xff]  ;;  %v9220_v36 = vcombine.high %v208_v30, %v212_v31  ;;  %6484 = vmatprep.subr.bf16.mxu0 %v9468_v29  ;;  %v9219_v42 = vcombine.low %v208_v30, %v212_v31 }
  0xa6   :  { %v468_v33 = vld [vmem:[#allocation7 + $0x920] sm:$0xff]  ;;  %6485 = vmatpush1.bf16.msra.mxu0 %v9467_v35 }
  0xa7   :  { %v9476_v37 = vcombine.high %v464_v32, %v468_v33  ;;  %v216_v38 = vld [vmem:[#allocation7 + $0x140] sm:$0xff]  ;;  %6404 = vmatprep.subr.bf16.mxu1 %v9220_v36  ;;  %v9475_v43 = vcombine.low %v464_v32, %v468_v33 }
  0xa8   :  { %v220_v39 = vld [vmem:[#allocation7 + $0x160] sm:$0xff]  ;;  %6405 = vmatpush1.bf16.msra.mxu1 %v9219_v42 }
  0xa9   :  { %v472_v40 = vld [vmem:[#allocation7 + $0x940] sm:$0xff]  ;;  %v9228_v44 = vcombine.high %v216_v38, %v220_v39  ;;  %6486 = vmatprep.subr.bf16.mxu0 %v9476_v37  ;;  %v9227_v50 = vcombine.low %v216_v38, %v220_v39 }
  0xaa   :  { %v476_v41 = vld [vmem:[#allocation7 + $0x960] sm:$0xff]  ;;  %6487 = vmatpush1.bf16.msra.mxu0 %v9475_v43 }
  0xab   :  { %v9484_v45 = vcombine.high %v472_v40, %v476_v41  ;;  %v224_v46 = vld [vmem:[#allocation7 + $0x180] sm:$0xff]  ;;  %6406 = vmatprep.subr.bf16.mxu1 %v9228_v44  ;;  %v9483_v51 = vcombine.low %v472_v40, %v476_v41 }
  0xac   :  { %v228_v47 = vld [vmem:[#allocation7 + $0x1a0] sm:$0xff]  ;;  %6407 = vmatpush1.bf16.msra.mxu1 %v9227_v50 }
  0xad   :  { %v480_v48 = vld [vmem:[#allocation7 + $0x980] sm:$0xff]  ;;  %v9236_v52 = vcombine.high %v224_v46, %v228_v47  ;;  %6488 = vmatprep.subr.bf16.mxu0 %v9484_v45  ;;  %v9235_v62 = vcombine.low %v224_v46, %v228_v47 }
  0xae   :  { %v484_v49 = vld [vmem:[#allocation7 + $0x9a0] sm:$0xff]  ;;  %6489 = vmatpush1.bf16.msra.mxu0 %v9483_v51 }
  0xaf   :  { %v9492_v54 = vcombine.high %v480_v48, %v484_v49  ;;  %v232_v55 = vld [vmem:[#allocation7 + $0x1c0] sm:$0xff]  ;;  %6408 = vmatprep.subr.bf16.mxu1 %v9236_v52  ;;  %v9491_v63 = vcombine.low %v480_v48, %v484_v49 }
  0xb0   :  { %v236_v56 = vld [vmem:[#allocation7 + $0x1e0] sm:$0xff]  ;;  %6409 = vmatpush1.bf16.msra.mxu1 %v9235_v62 }
  0xb1   :  { %v488_v59 = vld [vmem:[#allocation7 + $0x9c0] sm:$0xff]  ;;  %v9244_v0 = vcombine.high %v232_v55, %v236_v56  ;;  %6490 = vmatprep.subr.bf16.mxu0 %v9492_v54  ;;  %v9243_v6 = vcombine.low %v232_v55, %v236_v56 }
  0xb2   :  { %v492_v60 = vld [vmem:[#allocation7 + $0x9e0] sm:$0xff]  ;;  %6491 = vmatpush1.bf16.msra.mxu0 %v9491_v63 }
  0xb3   :  { %v9500_v1 = vcombine.high %v488_v59, %v492_v60  ;;  %v240_v2 = vld [vmem:[#allocation7 + $0x200] sm:$0xff]  ;;  %6410 = vmatprep.subr.bf16.mxu1 %v9244_v0  ;;  %v9499_v7 = vcombine.low %v488_v59, %v492_v60 }
  0xb4   :  { %v244_v3 = vld [vmem:[#allocation7 + $0x220] sm:$0xff]  ;;  %6411 = vmatpush1.bf16.msra.mxu1 %v9243_v6 }
  0xb5   :  { %v496_v4 = vld [vmem:[#allocation7 + $0xa00] sm:$0xff]  ;;  %v9252_v8 = vcombine.high %v240_v2, %v244_v3  ;;  %6492 = vmatprep.subr.bf16.mxu0 %v9500_v1  ;;  %v9251_v14 = vcombine.low %v240_v2, %v244_v3 }
  0xb6   :  { %v500_v5 = vld [vmem:[#allocation7 + $0xa20] sm:$0xff]  ;;  %6493 = vmatpush1.bf16.msra.mxu0 %v9499_v7 }
  0xb7   :  { %v9508_v9 = vcombine.high %v496_v4, %v500_v5  ;;  %v248_v10 = vld [vmem:[#allocation7 + $0x240] sm:$0xff]  ;;  %6412 = vmatprep.subr.bf16.mxu1 %v9252_v8  ;;  %v9507_v15 = vcombine.low %v496_v4, %v500_v5 }
  0xb8   :  { %v252_v11 = vld [vmem:[#allocation7 + $0x260] sm:$0xff]  ;;  %6413 = vmatpush1.bf16.msra.mxu1 %v9251_v14 }
  0xb9   :  { %v504_v12 = vld [vmem:[#allocation7 + $0xa40] sm:$0xff]  ;;  %v9260_v16 = vcombine.high %v248_v10, %v252_v11  ;;  %6494 = vmatprep.subr.bf16.mxu0 %v9508_v9  ;;  %v9259_v22 = vcombine.low %v248_v10, %v252_v11 }
  0xba   :  { %v508_v13 = vld [vmem:[#allocation7 + $0xa60] sm:$0xff]  ;;  %6495 = vmatpush1.bf16.msra.mxu0 %v9507_v15 }
  0xbb   :  { %v9516_v17 = vcombine.high %v504_v12, %v508_v13  ;;  %v256_v18 = vld [vmem:[#allocation7 + $0x280] sm:$0xff]  ;;  %6414 = vmatprep.subr.bf16.mxu1 %v9260_v16  ;;  %v9515_v23 = vcombine.low %v504_v12, %v508_v13 }
  0xbc   :  { %v260_v19 = vld [vmem:[#allocation7 + $0x2a0] sm:$0xff]  ;;  %6415 = vmatpush1.bf16.msra.mxu1 %v9259_v22  ;;  %v151_v22 = vld [vmem:[#allocation3 + $0x38] sm:$0xff] }
  0xbd   :  { %v512_v20 = vld [vmem:[#allocation7 + $0xa80] sm:$0xff]  ;;  %v9268_v24 = vcombine.high %v256_v18, %v260_v19  ;;  %6496 = vmatprep.subr.bf16.mxu0 %v9516_v17  ;;  %v9267_v30 = vcombine.low %v256_v18, %v260_v19  ;;  %v147_v19 = vld [vmem:[#allocation3 + $0x18] sm:$0xff] }
  0xbe   :  { %v516_v21 = vld [vmem:[#allocation7 + $0xaa0] sm:$0xff]  ;;  %6497 = vmatpush1.bf16.msra.mxu0 %v9515_v23 }
  0xbf   :  { %v9524_v25 = vcombine.high %v512_v20, %v516_v21  ;;  %v264_v26 = vld [vmem:[#allocation7 + $0x2c0] sm:$0xff]  ;;  %6416 = vmatprep.subr.bf16.mxu1 %v9268_v24  ;;  %v9523_v31 = vcombine.low %v512_v20, %v516_v21 }
  0xc0   :  { %v268_v27 = vld [vmem:[#allocation7 + $0x2e0] sm:$0xff]  ;;  %6417 = vmatpush1.bf16.msra.mxu1 %v9267_v30 }
  0xc1   :  { %v520_v28 = vld [vmem:[#allocation7 + $0xac0] sm:$0xff]  ;;  %v9276_v32 = vcombine.high %v264_v26, %v268_v27  ;;  %6498 = vmatprep.subr.bf16.mxu0 %v9524_v25  ;;  %v9275_v38 = vcombine.low %v264_v26, %v268_v27 }
  0xc2   :  { %v524_v29 = vld [vmem:[#allocation7 + $0xae0] sm:$0xff]  ;;  %6499 = vmatpush1.bf16.msra.mxu0 %v9523_v31  ;;  %v11140_v31 = vpack.c.bf16 %v151_v22, %v151_v22 }
  0xc3   :  { %v9532_v33 = vcombine.high %v520_v28, %v524_v29  ;;  %v272_v34 = vld [vmem:[#allocation7 + $0x300] sm:$0xff]  ;;  %6418 = vmatprep.subr.bf16.mxu1 %v9276_v32  ;;  %v9531_v39 = vcombine.low %v520_v28, %v524_v29  ;;  %v11137_v28 = vpack.c.bf16 %v147_v19, %v147_v19 }
  0xc4   :  { %v276_v35 = vld [vmem:[#allocation7 + $0x320] sm:$0xff]  ;;  %6419 = vmatpush1.bf16.msra.mxu1 %v9275_v38 }
  0xc5   :  { %v528_v36 = vld [vmem:[#allocation7 + $0xb00] sm:$0xff]  ;;  %v9284_v40 = vcombine.high %v272_v34, %v276_v35  ;;  %6500 = vmatprep.subr.bf16.mxu0 %v9532_v33  ;;  %v9283_v46 = vcombine.low %v272_v34, %v276_v35 }
  0xc6   :  { %v532_v37 = vld [vmem:[#allocation7 + $0xb20] sm:$0xff]  ;;  %6501 = vmatpush1.bf16.msra.mxu0 %v9531_v39 }
  0xc7   :  { %v9540_v41 = vcombine.high %v528_v36, %v532_v37  ;;  %v280_v42 = vld [vmem:[#allocation7 + $0x340] sm:$0xff]  ;;  %6420 = vmatprep.subr.bf16.mxu1 %v9284_v40  ;;  %v9539_v47 = vcombine.low %v528_v36, %v532_v37 }
  0xc8   :  { %v284_v43 = vld [vmem:[#allocation7 + $0x360] sm:$0xff]  ;;  %6421 = vmatpush1.bf16.msra.mxu1 %v9283_v46 }
  0xc9   :  { %v536_v44 = vld [vmem:[#allocation7 + $0xb40] sm:$0xff]  ;;  %v9292_v48 = vcombine.high %v280_v42, %v284_v43  ;;  %6502 = vmatprep.subr.bf16.mxu0 %v9540_v41  ;;  %v9291_v54 = vcombine.low %v280_v42, %v284_v43 }
  0xca   :  { %v540_v45 = vld [vmem:[#allocation7 + $0xb60] sm:$0xff]  ;;  %6503 = vmatpush1.bf16.msra.mxu0 %v9539_v47 }
  0xcb   :  { %v9548_v49 = vcombine.high %v536_v44, %v540_v45  ;;  %v288_v50 = vld [vmem:[#allocation7 + $0x380] sm:$0xff]  ;;  %6422 = vmatprep.subr.bf16.mxu1 %v9292_v48  ;;  %v9547_v55 = vcombine.low %v536_v44, %v540_v45 }
  0xcc   :  { %v292_v51 = vld [vmem:[#allocation7 + $0x3a0] sm:$0xff]  ;;  %6423 = vmatpush1.bf16.msra.mxu1 %v9291_v54 }
  0xcd   :  { %v544_v52 = vld [vmem:[#allocation7 + $0xb80] sm:$0xff]  ;;  %v9300_v56 = vcombine.high %v288_v50, %v292_v51  ;;  %6504 = vmatprep.subr.bf16.mxu0 %v9548_v49  ;;  %v9299_v0 = vcombine.low %v288_v50, %v292_v51 }
  0xce   :  { %v548_v53 = vld [vmem:[#allocation7 + $0xba0] sm:$0xff]  ;;  %6505 = vmatpush1.bf16.msra.mxu0 %v9547_v55 }
  0xcf   :  { %v9556_v58 = vcombine.high %v544_v52, %v548_v53  ;;  %v296_v59 = vld [vmem:[#allocation7 + $0x3c0] sm:$0xff]  ;;  %6424 = vmatprep.subr.bf16.mxu1 %v9300_v56  ;;  %v9555_v1 = vcombine.low %v544_v52, %v548_v53 }
  0xd0   :  { %v300_v60 = vld [vmem:[#allocation7 + $0x3e0] sm:$0xff]  ;;  %6425 = vmatpush1.bf16.msra.mxu1 %v9299_v0 }
  0xd1   :  { %v552_v62 = vld [vmem:[#allocation7 + $0xbc0] sm:$0xff]  ;;  %v9308_v2 = vcombine.high %v296_v59, %v300_v60  ;;  %6506 = vmatprep.subr.bf16.mxu0 %v9556_v58  ;;  %v9307_v8 = vcombine.low %v296_v59, %v300_v60 }
  0xd2   :  { %v556_v63 = vld [vmem:[#allocation7 + $0xbe0] sm:$0xff]  ;;  %6507 = vmatpush1.bf16.msra.mxu0 %v9555_v1 }
  0xd3   :  { %v9564_v3 = vcombine.high %v552_v62, %v556_v63  ;;  %v304_v4 = vld [vmem:[#allocation7 + $0x400] sm:$0xff]  ;;  %6426 = vmatprep.subr.bf16.mxu1 %v9308_v2  ;;  %v9563_v10 = vcombine.low %v552_v62, %v556_v63 }
  0xd4   :  { %v308_v5 = vld [vmem:[#allocation7 + $0x420] sm:$0xff]  ;;  %6427 = vmatpush1.bf16.msra.mxu1 %v9307_v8 }
  0xd5   :  { %v560_v6 = vld [vmem:[#allocation7 + $0xc00] sm:$0xff]  ;;  %v9316_v11 = vcombine.high %v304_v4, %v308_v5  ;;  %6508 = vmatprep.subr.bf16.mxu0 %v9564_v3  ;;  %v9315_v20 = vcombine.low %v304_v4, %v308_v5 }
  0xd6   :  { %v564_v7 = vld [vmem:[#allocation7 + $0xc20] sm:$0xff]  ;;  %6509 = vmatpush1.bf16.msra.mxu0 %v9563_v10 }
  0xd7   :  { %v144_v9 = vld [vmem:[#allocation3] sm:$0xff]  ;;  %v9572_v13 = vcombine.high %v560_v6, %v564_v7  ;;  %6437 = vmatprep.subr.bf16.mxu1 %v9316_v11  ;;  %v9571_v23 = vcombine.low %v560_v6, %v564_v7 }
  0xd8   :  { %v148_v12 = vld [vmem:[#allocation3 + $0x20] sm:$0xff]  ;;  %v11133_v16 = vpack.c.bf16 %v144_v9, %v144_v9 }
  0xd9   :  { %v312_v14 = vld [vmem:[#allocation7 + $0x440] sm:$0xff]  ;;  %v11135_v21 = vpack.c.bf16 %v148_v12, %v148_v12  ;;  %6519 = vmatprep.subr.bf16.mxu0 %v9572_v13 }
  0xda   :  { %v316_v15 = vld [vmem:[#allocation7 + $0x460] sm:$0xff]  ;;  %6429 = vmatmul.mubr.bf16.vlgmr.msra.gmra.mrb[0].mxu1 %v11133_v16 }
  0xdb   :  { %v568_v17 = vld [vmem:[#allocation7 + $0xc40] sm:$0xff]  ;;  %v9324_v24 = vcombine.high %v312_v14, %v316_v15  ;;  %6438 = vmatpush1.bf16.msra.mxu1 %v9315_v20  ;;  %6511 = vmatmul.mubr.bf16.vlgmr.msra.gmra.mrb[0].mxu0 %v11135_v21  ;;  %v9323_v32 = vcombine.low %v312_v14, %v316_v15 }
  0xdc   :  { %v572_v18 = vld [vmem:[#allocation7 + $0xc60] sm:$0xff]  ;;  %6520 = vmatpush1.bf16.msra.mxu0 %v9571_v23  ;;  %6469 = vmatprep.mubr.bf16.mxu1 %v11137_v28 }
  0xdd   :  { %v9580_v25 = vcombine.high %v568_v17, %v572_v18  ;;  %v320_v26 = vld [vmem:[#allocation7 + $0x480] sm:$0xff]  ;;  %6439 = vmatprep.subr.bf16.mxu1 %v9324_v24  ;;  %v9579_v33 = vcombine.low %v568_v17, %v572_v18  ;;  %6551 = vmatprep.mubr.bf16.mxu0 %v11140_v31 }
  0xde   :  { %v324_v27 = vld [vmem:[#allocation7 + $0x4a0] sm:$0xff] }
  0xdf   :  { %v576_v29 = vld [vmem:[#allocation7 + $0xc80] sm:$0xff]  ;;  %v9332_v34 = vcombine.high %v320_v26, %v324_v27  ;;  %6521 = vmatprep.subr.bf16.mxu0 %v9580_v25  ;;  %6440 = vmatpush1.bf16.msra.mxu1 %v9323_v32  ;;  %v9331_v40 = vcombine.low %v320_v26, %v324_v27 }
  0xe0   :  { %v580_v30 = vld [vmem:[#allocation7 + $0xca0] sm:$0xff]  ;;  %6522 = vmatpush1.bf16.msra.mxu0 %v9579_v33 }
  0xe1   :  { %v328_v35 = vld [vmem:[#allocation7 + $0x4c0] sm:$0xff]  ;;  %v9588_v38 = vcombine.high %v576_v29, %v580_v30  ;;  %6441 = vmatprep.subr.bf16.mxu1 %v9332_v34  ;;  %v9587_v41 = vcombine.low %v576_v29, %v580_v30 }
  0xe2   :  { %v332_v36 = vld [vmem:[#allocation7 + $0x4e0] sm:$0xff] }
  0xe3   :  { %v584_v37 = vld [vmem:[#allocation7 + $0xcc0] sm:$0xff]  ;;  %v9340_v42 = vcombine.high %v328_v35, %v332_v36  ;;  %6523 = vmatprep.subr.bf16.mxu0 %v9588_v38  ;;  %6442 = vmatpush1.bf16.msra.mxu1 %v9331_v40  ;;  %v9339_v48 = vcombine.low %v328_v35, %v332_v36 }
  0xe4   :  { %v588_v39 = vld [vmem:[#allocation7 + $0xce0] sm:$0xff]  ;;  %6524 = vmatpush1.bf16.msra.mxu0 %v9587_v41 }
  0xe5   :  { %v336_v43 = vld [vmem:[#allocation7 + $0x500] sm:$0xff]  ;;  %v9596_v46 = vcombine.high %v584_v37, %v588_v39  ;;  %6443 = vmatprep.subr.bf16.mxu1 %v9340_v42  ;;  %v9595_v49 = vcombine.low %v584_v37, %v588_v39 }
  0xe6   :  { %v340_v44 = vld [vmem:[#allocation7 + $0x520] sm:$0xff] }
  0xe7   :  { %v592_v45 = vld [vmem:[#allocation7 + $0xd00] sm:$0xff]  ;;  %v9348_v50 = vcombine.high %v336_v43, %v340_v44  ;;  %6525 = vmatprep.subr.bf16.mxu0 %v9596_v46  ;;  %6444 = vmatpush1.bf16.msra.mxu1 %v9339_v48  ;;  %v9347_v56 = vcombine.low %v336_v43, %v340_v44 }
  0xe8   :  { %v596_v47 = vld [vmem:[#allocation7 + $0xd20] sm:$0xff]  ;;  %6526 = vmatpush1.bf16.msra.mxu0 %v9595_v49 }
  0xe9   :  { %v344_v51 = vld [vmem:[#allocation7 + $0x540] sm:$0xff]  ;;  %v9604_v54 = vcombine.high %v592_v45, %v596_v47  ;;  %6445 = vmatprep.subr.bf16.mxu1 %v9348_v50  ;;  %v9603_v58 = vcombine.low %v592_v45, %v596_v47 }
  0xea   :  { %v348_v52 = vld [vmem:[#allocation7 + $0x560] sm:$0xff] }
  0xeb   :  { %v600_v53 = vld [vmem:[#allocation7 + $0xd40] sm:$0xff]  ;;  %v9356_v59 = vcombine.high %v344_v51, %v348_v52  ;;  %6527 = vmatprep.subr.bf16.mxu0 %v9604_v54  ;;  %6446 = vmatpush1.bf16.msra.mxu1 %v9347_v56  ;;  %v9355_v2 = vcombine.low %v344_v51, %v348_v52 }
  0xec   :  { %v604_v55 = vld [vmem:[#allocation7 + $0xd60] sm:$0xff]  ;;  %6528 = vmatpush1.bf16.msra.mxu0 %v9603_v58 }
  0xed   :  { %v352_v60 = vld [vmem:[#allocation7 + $0x580] sm:$0xff]  ;;  %v9612_v0 = vcombine.high %v600_v53, %v604_v55  ;;  %6447 = vmatprep.subr.bf16.mxu1 %v9356_v59  ;;  %v9611_v3 = vcombine.low %v600_v53, %v604_v55 }
  0xee   :  { %v356_v62 = vld [vmem:[#allocation7 + $0x5a0] sm:$0xff] }
  0xef   :  { %v608_v63 = vld [vmem:[#allocation7 + $0xd80] sm:$0xff]  ;;  %v9364_v4 = vcombine.high %v352_v60, %v356_v62  ;;  %6529 = vmatprep.subr.bf16.mxu0 %v9612_v0  ;;  %6448 = vmatpush1.bf16.msra.mxu1 %v9355_v2  ;;  %v9363_v10 = vcombine.low %v352_v60, %v356_v62 }
  0xf0   :  { %v612_v1 = vld [vmem:[#allocation7 + $0xda0] sm:$0xff]  ;;  %6530 = vmatpush1.bf16.msra.mxu0 %v9611_v3 }
  0xf1   :  { %v360_v5 = vld [vmem:[#allocation7 + $0x5c0] sm:$0xff]  ;;  %v9620_v8 = vcombine.high %v608_v63, %v612_v1  ;;  %6449 = vmatprep.subr.bf16.mxu1 %v9364_v4  ;;  %v9619_v11 = vcombine.low %v608_v63, %v612_v1 }
  0xf2   :  { %v364_v6 = vld [vmem:[#allocation7 + $0x5e0] sm:$0xff] }
  0xf3   :  { %v616_v7 = vld [vmem:[#allocation7 + $0xdc0] sm:$0xff]  ;;  %v9372_v12 = vcombine.high %v360_v5, %v364_v6  ;;  %6531 = vmatprep.subr.bf16.mxu0 %v9620_v8  ;;  %6450 = vmatpush1.bf16.msra.mxu1 %v9363_v10  ;;  %v9371_v19 = vcombine.low %v360_v5, %v364_v6 }
  0xf4   :  { %v620_v9 = vld [vmem:[#allocation7 + $0xde0] sm:$0xff]  ;;  %6532 = vmatpush1.bf16.msra.mxu0 %v9619_v11 }
  0xf5   :  { %v368_v13 = vld [vmem:[#allocation7 + $0x600] sm:$0xff]  ;;  %v9628_v17 = vcombine.high %v616_v7, %v620_v9  ;;  %6451 = vmatprep.subr.bf16.mxu1 %v9372_v12  ;;  %v9627_v20 = vcombine.low %v616_v7, %v620_v9 }
  0xf6   :  { %v372_v14 = vld [vmem:[#allocation7 + $0x620] sm:$0xff] }
  0xf7   :  { %v624_v15 = vld [vmem:[#allocation7 + $0xe00] sm:$0xff]  ;;  %v9380_v22 = vcombine.high %v368_v13, %v372_v14  ;;  %6533 = vmatprep.subr.bf16.mxu0 %v9628_v17  ;;  %6452 = vmatpush1.bf16.msra.mxu1 %v9371_v19  ;;  %v9379_v29 = vcombine.low %v368_v13, %v372_v14 }
  0xf8   :  { %v628_v18 = vld [vmem:[#allocation7 + $0xe20] sm:$0xff]  ;;  %6534 = vmatpush1.bf16.msra.mxu0 %v9627_v20 }
  0xf9   :  { %v376_v23 = vld [vmem:[#allocation7 + $0x640] sm:$0xff]  ;;  %v9636_v26 = vcombine.high %v624_v15, %v628_v18  ;;  %6453 = vmatprep.subr.bf16.mxu1 %v9380_v22  ;;  %v9635_v30 = vcombine.low %v624_v15, %v628_v18 }
  0xfa   :  { %v380_v24 = vld [vmem:[#allocation7 + $0x660] sm:$0xff] }
  0xfb   :  { %v632_v25 = vld [vmem:[#allocation7 + $0xe40] sm:$0xff]  ;;  %v9388_v32 = vcombine.high %v376_v23, %v380_v24  ;;  %6535 = vmatprep.subr.bf16.mxu0 %v9636_v26  ;;  %6454 = vmatpush1.bf16.msra.mxu1 %v9379_v29  ;;  %v9387_v38 = vcombine.low %v376_v23, %v380_v24  ;;  %v177_v23 = vld [vmem:[#allocation7 + $0x8] sm:$0xff] }
  0xfc   :  { %v636_v27 = vld [vmem:[#allocation7 + $0xe60] sm:$0xff]  ;;  %6536 = vmatpush1.bf16.msra.mxu0 %v9635_v30  ;;  %v181_v26 = vld [vmem:[#allocation7 + $0x28] sm:$0xff] }
  0xfd   :  { %v384_v33 = vld [vmem:[#allocation7 + $0x680] sm:$0xff]  ;;  %v9644_v36 = vcombine.high %v632_v25, %v636_v27  ;;  %6455 = vmatprep.subr.bf16.mxu1 %v9388_v32  ;;  %v9643_v39 = vcombine.low %v632_v25, %v636_v27  ;;  %v146_v25 = vld [vmem:[#allocation3 + $0x10] sm:$0xff]  ;;  %v9190_v32 = vcombine.high %v177_v23, %v181_v26 }
  0xfe   :  { %v388_v34 = vld [vmem:[#allocation7 + $0x6a0] sm:$0xff]  ;;  %v150_v27 = vld [vmem:[#allocation3 + $0x30] sm:$0xff] }
  0xff   :  { %v640_v35 = vld [vmem:[#allocation7 + $0xe80] sm:$0xff]  ;;  %v9396_v40 = vcombine.high %v384_v33, %v388_v34  ;;  %6537 = vmatprep.subr.bf16.mxu0 %v9644_v36  ;;  %6456 = vmatpush1.bf16.msra.mxu1 %v9387_v38  ;;  %v9395_v46 = vcombine.low %v384_v33, %v388_v34  ;;  %v189_v36 = vld [vmem:[#allocation7 + $0x68] sm:$0xff] }
 0x100   :  { %v644_v37 = vld [vmem:[#allocation7 + $0xea0] sm:$0xff]  ;;  %6538 = vmatpush1.bf16.msra.mxu0 %v9643_v39  ;;  %v153_v38 = vld [vmem:[#allocation3 + $0x48] sm:$0xff]  ;;  %v11145_v39 = vpack.c.bf16 %v146_v25, %v146_v25 }
 0x101   :  { %v392_v41 = vld [vmem:[#allocation7 + $0x6c0] sm:$0xff]  ;;  %v9652_v44 = vcombine.high %v640_v35, %v644_v37  ;;  %6457 = vmatprep.subr.bf16.mxu1 %v9396_v40  ;;  %v9651_v47 = vcombine.low %v640_v35, %v644_v37  ;;  %v185_v35 = vld [vmem:[#allocation7 + $0x48] sm:$0xff]  ;;  %v9189_v40 = vcombine.low %v177_v23, %v181_v26 }
 0x102   :  { %v396_v42 = vld [vmem:[#allocation7 + $0x6e0] sm:$0xff]  ;;  %v233_v26 = vld [vmem:[#allocation7 + $0x1c8] sm:$0xff] }
 0x103   :  { %v648_v43 = vld [vmem:[#allocation7 + $0xec0] sm:$0xff]  ;;  %v9404_v48 = vcombine.high %v392_v41, %v396_v42  ;;  %6539 = vmatprep.subr.bf16.mxu0 %v9652_v44  ;;  %6458 = vmatpush1.bf16.msra.mxu1 %v9395_v46  ;;  %v9403_v54 = vcombine.low %v392_v41, %v396_v42  ;;  %v11147_v41 = vpack.c.bf16 %v150_v27, %v150_v27  ;;  %v237_v27 = vld [vmem:[#allocation7 + $0x1e8] sm:$0xff] }
 0x104   :  { %v652_v45 = vld [vmem:[#allocation7 + $0xee0] sm:$0xff]  ;;  %6540 = vmatpush1.bf16.msra.mxu0 %v9651_v47  ;;  %v193_v47 = vld [vmem:[#allocation7 + $0x88] sm:$0xff] }
 0x105   :  { %v400_v49 = vld [vmem:[#allocation7 + $0x700] sm:$0xff]  ;;  %v9660_v52 = vcombine.high %v648_v43, %v652_v45  ;;  %6459 = vmatprep.subr.bf16.mxu1 %v9404_v48  ;;  %v9659_v55 = vcombine.low %v648_v43, %v652_v45  ;;  %v9198_v43 = vcombine.high %v185_v35, %v189_v36  ;;  %v197_v48 = vld [vmem:[#allocation7 + $0xa8] sm:$0xff] }
 0x106   :  { %v404_v50 = vld [vmem:[#allocation7 + $0x720] sm:$0xff] }
 0x107   :  { %v656_v51 = vld [vmem:[#allocation7 + $0xf00] sm:$0xff]  ;;  %v9412_v56 = vcombine.high %v400_v49, %v404_v50  ;;  %6541 = vmatprep.subr.bf16.mxu0 %v9660_v52  ;;  %6460 = vmatpush1.bf16.msra.mxu1 %v9403_v54  ;;  %v9411_v0 = vcombine.low %v400_v49, %v404_v50  ;;  %v11149_v49 = vpack.c.bf16 %v153_v38, %v153_v38 }
 0x108   :  { %v660_v53 = vld [vmem:[#allocation7 + $0xf20] sm:$0xff]  ;;  %6542 = vmatpush1.bf16.msra.mxu0 %v9659_v55  ;;  %v9197_v50 = vcombine.low %v185_v35, %v189_v36  ;;  %v9206_v52 = vcombine.high %v193_v47, %v197_v48  ;;  %v201_v55 = vld [vmem:[#allocation7 + $0xc8] sm:$0xff] }
 0x109   :  { %v408_v58 = vld [vmem:[#allocation7 + $0x740] sm:$0xff]  ;;  %v9668_v62 = vcombine.high %v656_v51, %v660_v53  ;;  %6461 = vmatprep.subr.bf16.mxu1 %v9412_v56  ;;  %v9667_v1 = vcombine.low %v656_v51, %v660_v53  ;;  %v241_v36 = vld [vmem:[#allocation7 + $0x208] sm:$0xff] }
 0x10a   :  { %v412_v59 = vld [vmem:[#allocation7 + $0x760] sm:$0xff] }
 0x10b   :  { %v664_v60 = vld [vmem:[#allocation7 + $0xf40] sm:$0xff]  ;;  %v9420_v2 = vcombine.high %v408_v58, %v412_v59  ;;  %6543 = vmatprep.subr.bf16.mxu0 %v9668_v62  ;;  %6462 = vmatpush1.bf16.msra.mxu1 %v9411_v0  ;;  %v9419_v8 = vcombine.low %v408_v58, %v412_v59  ;;  %v205_v58 = vld [vmem:[#allocation7 + $0xe8] sm:$0xff]  ;;  %v9205_v59 = vcombine.low %v193_v47, %v197_v48 }
 0x10c   :  { %v668_v63 = vld [vmem:[#allocation7 + $0xf60] sm:$0xff]  ;;  %6544 = vmatpush1.bf16.msra.mxu0 %v9667_v1  ;;  %v9214_v62 = vcombine.high %v201_v55, %v205_v58  ;;  %v209_v1 = vld [vmem:[#allocation7 + $0x108] sm:$0xff] }
 0x10d   :  { %v416_v3 = vld [vmem:[#allocation7 + $0x780] sm:$0xff]  ;;  %v9676_v6 = vcombine.high %v664_v60, %v668_v63  ;;  %6463 = vmatprep.subr.bf16.mxu1 %v9420_v2  ;;  %v9675_v9 = vcombine.low %v664_v60, %v668_v63  ;;  %v253_v47 = vld [vmem:[#allocation7 + $0x268] sm:$0xff] }
 0x10e   :  { %v420_v4 = vld [vmem:[#allocation7 + $0x7a0] sm:$0xff] }
 0x10f   :  { %v672_v5 = vld [vmem:[#allocation7 + $0xf80] sm:$0xff]  ;;  %v9428_v10 = vcombine.high %v416_v3, %v420_v4  ;;  %6545 = vmatprep.subr.bf16.mxu0 %v9676_v6  ;;  %6464 = vmatpush1.bf16.msra.mxu1 %v9419_v8  ;;  %v9427_v17 = vcombine.low %v416_v3, %v420_v4  ;;  %v213_v3 = vld [vmem:[#allocation7 + $0x128] sm:$0xff]  ;;  %v9213_v4 = vcombine.low %v201_v55, %v205_v58 }
 0x110   :  { %v676_v7 = vld [vmem:[#allocation7 + $0xfa0] sm:$0xff]  ;;  %6546 = vmatpush1.bf16.msra.mxu0 %v9675_v9  ;;  %v9222_v6 = vcombine.high %v209_v1, %v213_v3  ;;  %v217_v9 = vld [vmem:[#allocation7 + $0x148] sm:$0xff] }
 0x111   :  { %v424_v11 = vld [vmem:[#allocation7 + $0x7c0] sm:$0xff]  ;;  %v9684_v14 = vcombine.high %v672_v5, %v676_v7  ;;  %6465 = vmatprep.subr.bf16.mxu1 %v9428_v10  ;;  %v9683_v18 = vcombine.low %v672_v5, %v676_v7  ;;  %v257_v55 = vld [vmem:[#allocation7 + $0x288] sm:$0xff] }
 0x112   :  { %v428_v12 = vld [vmem:[#allocation7 + $0x7e0] sm:$0xff] }
 0x113   :  { %v680_v13 = vld [vmem:[#allocation7 + $0xfc0] sm:$0xff]  ;;  %v9436_v19 = vcombine.high %v424_v11, %v428_v12  ;;  %6547 = vmatprep.subr.bf16.mxu0 %v9684_v14  ;;  %6466 = vmatpush1.bf16.msra.mxu1 %v9427_v17  ;;  %v9435_v29 = vcombine.low %v424_v11, %v428_v12  ;;  %v221_v11 = vld [vmem:[#allocation7 + $0x168] sm:$0xff]  ;;  %v9221_v12 = vcombine.low %v209_v1, %v213_v3 }
 0x114   :  { %v684_v15 = vld [vmem:[#allocation7 + $0xfe0] sm:$0xff]  ;;  %6548 = vmatpush1.bf16.msra.mxu0 %v9683_v18  ;;  %v9230_v14 = vcombine.high %v217_v9, %v221_v11  ;;  %v225_v18 = vld [vmem:[#allocation7 + $0x188] sm:$0xff] }
 0x115   :  { %v688_v20 = vld [vmem:[#allocation7 + $0x1000] sm:$0xff]  ;;  %v9692_v24 = vcombine.high %v680_v13, %v684_v15  ;;  %6467 = vmatprep.subr.bf16.mxu1 %v9436_v19  ;;  %v9691_v30 = vcombine.low %v680_v13, %v684_v15  ;;  %v265_v1 = vld [vmem:[#allocation7 + $0x2c8] sm:$0xff] }
 0x116   :  { %v692_v22 = vld [vmem:[#allocation7 + $0x1020] sm:$0xff] }
 0x117   :  { %v696_v33 = vld [vmem:[#allocation7 + $0x1040] sm:$0xff]  ;;  %6549 = vmatprep.subr.bf16.mxu0 %v9692_v24  ;;  %v9700_v37 = vcombine.high %v688_v20, %v692_v22  ;;  %6468 = vmatpush1.bf16.msra.mxu1 %v9435_v29  ;;  %v9699_v42 = vcombine.low %v688_v20, %v692_v22  ;;  %v229_v20 = vld [vmem:[#allocation7 + $0x1a8] sm:$0xff]  ;;  %v9229_v22 = vcombine.low %v217_v9, %v221_v11 }
 0x118   :  { %v700_v34 = vld [vmem:[#allocation7 + $0x1060] sm:$0xff]  ;;  %6550 = vmatpush1.bf16.msra.mxu0 %v9691_v30  ;;  %6724 = vmatprep.subr.bf16.mxu1 %v9190_v32  ;;  %v9238_v24 = vcombine.high %v225_v18, %v229_v20  ;;  %v9237_v32 = vcombine.low %v225_v18, %v229_v20  ;;  %v273_v9 = vld [vmem:[#allocation7 + $0x308] sm:$0xff] }
 0x119   :  { %v704_v44 = vld [vmem:[#allocation7 + $0x1080] sm:$0xff]  ;;  %6560 = vmatprep.subr.bf16.mxu0 %v9700_v37  ;;  %v9708_v45 = vcombine.high %v696_v33, %v700_v34  ;;  %v9707_v51 = vcombine.low %v696_v33, %v700_v34  ;;  %v9246_v34 = vcombine.high %v233_v26, %v237_v27  ;;  %v245_v37 = vld [vmem:[#allocation7 + $0x228] sm:$0xff] }
 0x11a   :  { %v708_v46 = vld [vmem:[#allocation7 + $0x10a0] sm:$0xff]  ;;  %6470 = vmatmul.mubr.bf16.vlgmr.msra.gmra.mrb[0].mxu1 %v11145_v39  ;;  %v281_v18 = vld [vmem:[#allocation7 + $0x348] sm:$0xff] }
 0x11b   :  { %6552 = vmatmul.mubr.bf16.vlgmr.msra.gmra.mrb[0].mxu0 %v11147_v41  ;;  %6725 = vmatpush1.bf16.msra.mxu1 %v9189_v40  ;;  %v712_v53 = vld [vmem:[#allocation7 + $0x10c0] sm:$0xff]  ;;  %v9716_v56 = vcombine.high %v704_v44, %v708_v46  ;;  %v9715_v60 = vcombine.low %v704_v44, %v708_v46  ;;  %v9254_v44 = vcombine.high %v241_v36, %v245_v37  ;;  %v249_v46 = vld [vmem:[#allocation7 + $0x248] sm:$0xff] }
 0x11c   :  { %6561 = vmatpush1.bf16.msra.mxu0 %v9699_v42  ;;  %6726 = vmatprep.subr.bf16.mxu1 %v9198_v43  ;;  %v716_v54 = vld [vmem:[#allocation7 + $0x10e0] sm:$0xff]  ;;  %v9245_v42 = vcombine.low %v233_v26, %v237_v27  ;;  %v289_v27 = vld [vmem:[#allocation7 + $0x388] sm:$0xff] }
 0x11d   :  { %6562 = vmatprep.subr.bf16.mxu0 %v9708_v45  ;;  %6592 = vmatprep.mubr.bf16.mxu0 %v11149_v49  ;;  %v720_v63 = vld [vmem:[#allocation7 + $0x1100] sm:$0xff]  ;;  %v9724_v2 = vcombine.high %v712_v53, %v716_v54  ;;  %v9723_v5 = vcombine.low %v712_v53, %v716_v54  ;;  %v9262_v53 = vcombine.high %v249_v46, %v253_v47 }
 0x11e   :  { %6756 = vmatprep.mubr.bf16.mxu1 %v11127_v57  ;;  %v724_v0 = vld [vmem:[#allocation7 + $0x1120] sm:$0xff] }
 0x11f   :  { %6727 = vmatpush1.bf16.msra.mxu1 %v9197_v50  ;;  %v728_v7 = vld [vmem:[#allocation7 + $0x1140] sm:$0xff]  ;;  %v9732_v10 = vcombine.high %v720_v63, %v724_v0  ;;  %v9731_v13 = vcombine.low %v720_v63, %v724_v0 }
 0x120   :  { %6563 = vmatpush1.bf16.msra.mxu0 %v9707_v51  ;;  %6728 = vmatprep.subr.bf16.mxu1 %v9206_v52  ;;  %v732_v8 = vld [vmem:[#allocation7 + $0x1160] sm:$0xff]  ;;  %v9253_v51 = vcombine.low %v241_v36, %v245_v37  ;;  %v297_v37 = vld [vmem:[#allocation7 + $0x3c8] sm:$0xff] }
 0x121   :  { %6564 = vmatprep.subr.bf16.mxu0 %v9716_v56  ;;  %v736_v15 = vld [vmem:[#allocation7 + $0x1180] sm:$0xff]  ;;  %v9740_v19 = vcombine.high %v728_v7, %v732_v8  ;;  %v9739_v23 = vcombine.low %v728_v7, %v732_v8  ;;  %v261_v56 = vld [vmem:[#allocation7 + $0x2a8] sm:$0xff] }
 0x122   :  { %v740_v17 = vld [vmem:[#allocation7 + $0x11a0] sm:$0xff]  ;;  %v9270_v63 = vcombine.high %v257_v55, %v261_v56 }
 0x123   :  { %6729 = vmatpush1.bf16.msra.mxu1 %v9205_v59  ;;  %v9748_v25 = vcombine.high %v736_v15, %v740_v17  ;;  %v744_v29 = vld [vmem:[#allocation7 + $0x11c0] sm:$0xff]  ;;  %v9747_v33 = vcombine.low %v736_v15, %v740_v17 }
 0x124   :  { %6565 = vmatpush1.bf16.msra.mxu0 %v9715_v60  ;;  %6730 = vmatprep.subr.bf16.mxu1 %v9214_v62  ;;  %v748_v30 = vld [vmem:[#allocation7 + $0x11e0] sm:$0xff]  ;;  %v9261_v60 = vcombine.low %v249_v46, %v253_v47  ;;  %v305_v47 = vld [vmem:[#allocation7 + $0x408] sm:$0xff] }
 0x125   :  { %6566 = vmatprep.subr.bf16.mxu0 %v9724_v2  ;;  %v9756_v35 = vcombine.high %v744_v29, %v748_v30  ;;  %v752_v38 = vld [vmem:[#allocation7 + $0x1200] sm:$0xff]  ;;  %v9755_v43 = vcombine.low %v744_v29, %v748_v30  ;;  %v269_v2 = vld [vmem:[#allocation7 + $0x2e8] sm:$0xff] }
 0x126   :  { %v756_v40 = vld [vmem:[#allocation7 + $0x1220] sm:$0xff]  ;;  %v9278_v7 = vcombine.high %v265_v1, %v269_v2  ;;  %v293_v29 = vld [vmem:[#allocation7 + $0x3a8] sm:$0xff] }
 0x127   :  { %6731 = vmatpush1.bf16.msra.mxu1 %v9213_v4  ;;  %v9764_v45 = vcombine.high %v752_v38, %v756_v40  ;;  %v760_v48 = vld [vmem:[#allocation7 + $0x1240] sm:$0xff]  ;;  %v9763_v52 = vcombine.low %v752_v38, %v756_v40  ;;  %v301_v38 = vld [vmem:[#allocation7 + $0x3e8] sm:$0xff] }
 0x128   :  { %6567 = vmatpush1.bf16.msra.mxu0 %v9723_v5  ;;  %6732 = vmatprep.subr.bf16.mxu1 %v9222_v6  ;;  %v764_v50 = vld [vmem:[#allocation7 + $0x1260] sm:$0xff]  ;;  %v9269_v5 = vcombine.low %v257_v55, %v261_v56 }
 0x129   :  { %6568 = vmatprep.subr.bf16.mxu0 %v9732_v10  ;;  %v9772_v54 = vcombine.high %v760_v48, %v764_v50  ;;  %v768_v58 = vld [vmem:[#allocation7 + $0x1280] sm:$0xff]  ;;  %v9771_v62 = vcombine.low %v760_v48, %v764_v50  ;;  %v277_v10 = vld [vmem:[#allocation7 + $0x328] sm:$0xff] }
 0x12a   :  { %v772_v59 = vld [vmem:[#allocation7 + $0x12a0] sm:$0xff]  ;;  %v9286_v15 = vcombine.high %v273_v9, %v277_v10  ;;  %v309_v48 = vld [vmem:[#allocation7 + $0x428] sm:$0xff] }
 0x12b   :  { %6733 = vmatpush1.bf16.msra.mxu1 %v9221_v12  ;;  %v9780_v0 = vcombine.high %v768_v58, %v772_v59  ;;  %v776_v3 = vld [vmem:[#allocation7 + $0x12c0] sm:$0xff]  ;;  %v9779_v6 = vcombine.low %v768_v58, %v772_v59  ;;  %v313_v58 = vld [vmem:[#allocation7 + $0x448] sm:$0xff] }
 0x12c   :  { %6569 = vmatpush1.bf16.msra.mxu0 %v9731_v13  ;;  %6734 = vmatprep.subr.bf16.mxu1 %v9230_v14  ;;  %v780_v4 = vld [vmem:[#allocation7 + $0x12e0] sm:$0xff]  ;;  %v9277_v13 = vcombine.low %v265_v1, %v269_v2  ;;  %v317_v59 = vld [vmem:[#allocation7 + $0x468] sm:$0xff] }
 0x12d   :  { %6570 = vmatprep.subr.bf16.mxu0 %v9740_v19  ;;  %v9788_v8 = vcombine.high %v776_v3, %v780_v4  ;;  %v784_v11 = vld [vmem:[#allocation7 + $0x1300] sm:$0xff]  ;;  %v9787_v14 = vcombine.low %v776_v3, %v780_v4  ;;  %v285_v19 = vld [vmem:[#allocation7 + $0x368] sm:$0xff]  ;;  %v9326_v3 = vcombine.high %v313_v58, %v317_v59 }
 0x12e   :  { %v788_v12 = vld [vmem:[#allocation7 + $0x1320] sm:$0xff] }
 0x12f   :  { %6735 = vmatpush1.bf16.msra.mxu1 %v9229_v22  ;;  %v9796_v17 = vcombine.high %v784_v11, %v788_v12  ;;  %v792_v20 = vld [vmem:[#allocation7 + $0x1340] sm:$0xff] }
 0x130   :  { %6571 = vmatpush1.bf16.msra.mxu0 %v9739_v23  ;;  %6736 = vmatprep.subr.bf16.mxu1 %v9238_v24  ;;  %v796_v22 = vld [vmem:[#allocation7 + $0x1360] sm:$0xff]  ;;  %v9285_v23 = vcombine.low %v273_v9, %v277_v10  ;;  %v9795_v24 = vcombine.low %v784_v11, %v788_v12  ;;  %v9325_v10 = vcombine.low %v313_v58, %v317_v59 }
 0x131   :  { %6572 = vmatprep.subr.bf16.mxu0 %v9748_v25  ;;  %v9294_v25 = vcombine.high %v281_v18, %v285_v19  ;;  %v9804_v26 = vcombine.high %v792_v20, %v796_v22  ;;  %v800_v30 = vld [vmem:[#allocation7 + $0x1380] sm:$0xff] }
 0x132   :  { %v808_v40 = vld [vmem:[#allocation7 + $0x13c0] sm:$0xff] }
 0x133   :  { %6737 = vmatpush1.bf16.msra.mxu1 %v9237_v32  ;;  %v804_v32 = vld [vmem:[#allocation7 + $0x13a0] sm:$0xff] }
 0x134   :  { %6573 = vmatpush1.bf16.msra.mxu0 %v9747_v33  ;;  %6738 = vmatprep.subr.bf16.mxu1 %v9246_v34  ;;  %v9293_v33 = vcombine.low %v281_v18, %v285_v19  ;;  %v9803_v34 = vcombine.low %v792_v20, %v796_v22  ;;  %v9812_v36 = vcombine.high %v800_v30, %v804_v32  ;;  %v816_v50 = vld [vmem:[#allocation7 + $0x1400] sm:$0xff] }
 0x135   :  { %6574 = vmatprep.subr.bf16.mxu0 %v9756_v35  ;;  %v9302_v35 = vcombine.high %v289_v27, %v293_v29  ;;  %v152_v55 = vld [vmem:[#allocation3 + $0x40] sm:$0xff] }
 0x136   :  { %v11155_v1 = vpack.c.bf16 %v152_v55, %v152_v55  ;;  %v836_v9 = vld [vmem:[#allocation7 + $0x14a0] sm:$0xff] }
 0x137   :  { %6739 = vmatpush1.bf16.msra.mxu1 %v9245_v42  ;;  %v812_v42 = vld [vmem:[#allocation7 + $0x13e0] sm:$0xff] }
 0x138   :  { %6575 = vmatpush1.bf16.msra.mxu0 %v9755_v43  ;;  %6740 = vmatprep.subr.bf16.mxu1 %v9254_v44  ;;  %v9301_v43 = vcombine.low %v289_v27, %v293_v29  ;;  %v9811_v44 = vcombine.low %v800_v30, %v804_v32  ;;  %v9820_v46 = vcombine.high %v808_v40, %v812_v42  ;;  %v844_v18 = vld [vmem:[#allocation7 + $0x14e0] sm:$0xff] }
 0x139   :  { %6576 = vmatprep.subr.bf16.mxu0 %v9764_v45  ;;  %v9310_v45 = vcombine.high %v297_v37, %v301_v38  ;;  %v852_v27 = vld [vmem:[#allocation7 + $0x1520] sm:$0xff] }
 0x13a   :  { %v872_v55 = vld [vmem:[#allocation7 + $0x15c0] sm:$0xff] }
 0x13b   :  { %6741 = vmatpush1.bf16.msra.mxu1 %v9253_v51  ;;  %v820_v51 = vld [vmem:[#allocation7 + $0x1420] sm:$0xff] }
 0x13c   :  { %6577 = vmatpush1.bf16.msra.mxu0 %v9763_v52  ;;  %6742 = vmatprep.subr.bf16.mxu1 %v9262_v53  ;;  %v9309_v52 = vcombine.low %v297_v37, %v301_v38  ;;  %v9819_v53 = vcombine.low %v808_v40, %v812_v42  ;;  %v9828_v56 = vcombine.high %v816_v50, %v820_v51  ;;  %v860_v37 = vld [vmem:[#allocation7 + $0x1560] sm:$0xff] }
 0x13d   :  { %6578 = vmatprep.subr.bf16.mxu0 %v9772_v54  ;;  %v9318_v54 = vcombine.high %v305_v47, %v309_v48  ;;  %v9827_v2 = vcombine.low %v816_v50, %v820_v51 }
 0x13f   :  { %6743 = vmatpush1.bf16.msra.mxu1 %v9261_v60  ;;  %v824_v60 = vld [vmem:[#allocation7 + $0x1440] sm:$0xff] }
 0x140   :  { %6579 = vmatpush1.bf16.msra.mxu0 %v9771_v62  ;;  %6744 = vmatprep.subr.bf16.mxu1 %v9270_v63  ;;  %v828_v62 = vld [vmem:[#allocation7 + $0x1460] sm:$0xff]  ;;  %v155_v63 = vld [vmem:[#allocation3 + $0x58] sm:$0xff] }
 0x141   :  { %6580 = vmatprep.subr.bf16.mxu0 %v9780_v0  ;;  %v9317_v0 = vcombine.low %v305_v47, %v309_v48  ;;  %v9836_v4 = vcombine.high %v824_v60, %v828_v62  ;;  %v9835_v11 = vcombine.low %v824_v60, %v828_v62  ;;  %v868_v47 = vld [vmem:[#allocation7 + $0x15a0] sm:$0xff] }
 0x143   :  { %6745 = vmatpush1.bf16.msra.mxu1 %v9269_v5  ;;  %v321_v5 = vld [vmem:[#allocation7 + $0x488] sm:$0xff] }
 0x144   :  { %6581 = vmatpush1.bf16.msra.mxu0 %v9779_v6  ;;  %6746 = vmatprep.subr.bf16.mxu1 %v9278_v7  ;;  %v325_v6 = vld [vmem:[#allocation7 + $0x4a8] sm:$0xff]  ;;  %v11157_v7 = vpack.c.bf16 %v155_v63, %v155_v63 }
 0x145   :  { %6582 = vmatprep.subr.bf16.mxu0 %v9788_v8  ;;  %v832_v8 = vld [vmem:[#allocation7 + $0x1480] sm:$0xff]  ;;  %v9334_v12 = vcombine.high %v321_v5, %v325_v6  ;;  %v9333_v19 = vcombine.low %v321_v5, %v325_v6  ;;  %v369_v63 = vld [vmem:[#allocation7 + $0x608] sm:$0xff] }
 0x146   :  { %v9843_v20 = vcombine.low %v832_v8, %v836_v9 }
 0x147   :  { %6747 = vmatpush1.bf16.msra.mxu1 %v9277_v13  ;;  %v9844_v13 = vcombine.high %v832_v8, %v836_v9  ;;  %v377_v9 = vld [vmem:[#allocation7 + $0x648] sm:$0xff] }
 0x148   :  { %6583 = vmatpush1.bf16.msra.mxu0 %v9787_v14  ;;  %6748 = vmatprep.subr.bf16.mxu1 %v9286_v15  ;;  %v329_v14 = vld [vmem:[#allocation7 + $0x4c8] sm:$0xff] }
 0x149   :  { %6584 = vmatprep.subr.bf16.mxu0 %v9796_v17  ;;  %v333_v15 = vld [vmem:[#allocation7 + $0x4e8] sm:$0xff]  ;;  %v840_v17 = vld [vmem:[#allocation7 + $0x14c0] sm:$0xff] }
 0x14a   :  { %v9342_v22 = vcombine.high %v329_v14, %v333_v15  ;;  %v9341_v29 = vcombine.low %v329_v14, %v333_v15  ;;  %v9851_v30 = vcombine.low %v840_v17, %v844_v18 }
 0x14b   :  { %6749 = vmatpush1.bf16.msra.mxu1 %v9285_v23  ;;  %v9852_v23 = vcombine.high %v840_v17, %v844_v18  ;;  %v385_v18 = vld [vmem:[#allocation7 + $0x688] sm:$0xff] }
 0x14c   :  { %6585 = vmatpush1.bf16.msra.mxu0 %v9795_v24  ;;  %6750 = vmatprep.subr.bf16.mxu1 %v9294_v25  ;;  %v337_v24 = vld [vmem:[#allocation7 + $0x508] sm:$0xff] }
 0x14d   :  { %6586 = vmatprep.subr.bf16.mxu0 %v9804_v26  ;;  %v341_v25 = vld [vmem:[#allocation7 + $0x528] sm:$0xff]  ;;  %v848_v26 = vld [vmem:[#allocation7 + $0x1500] sm:$0xff] }
 0x14e   :  { %v9350_v32 = vcombine.high %v337_v24, %v341_v25  ;;  %v9349_v38 = vcombine.low %v337_v24, %v341_v25  ;;  %v9859_v40 = vcombine.low %v848_v26, %v852_v27 }
 0x14f   :  { %6751 = vmatpush1.bf16.msra.mxu1 %v9293_v33  ;;  %v9860_v33 = vcombine.high %v848_v26, %v852_v27  ;;  %v393_v27 = vld [vmem:[#allocation7 + $0x6c8] sm:$0xff] }
 0x150   :  { %6587 = vmatpush1.bf16.msra.mxu0 %v9803_v34  ;;  %6752 = vmatprep.subr.bf16.mxu1 %v9302_v35  ;;  %v345_v34 = vld [vmem:[#allocation7 + $0x548] sm:$0xff] }
 0x151   :  { %6588 = vmatprep.subr.bf16.mxu0 %v9812_v36  ;;  %v349_v35 = vld [vmem:[#allocation7 + $0x568] sm:$0xff]  ;;  %v856_v36 = vld [vmem:[#allocation7 + $0x1540] sm:$0xff] }
 0x152   :  { %v9358_v42 = vcombine.high %v345_v34, %v349_v35  ;;  %v9357_v48 = vcombine.low %v345_v34, %v349_v35  ;;  %v9867_v50 = vcombine.low %v856_v36, %v860_v37 }
 0x153   :  { %6753 = vmatpush1.bf16.msra.mxu1 %v9301_v43  ;;  %v9868_v43 = vcombine.high %v856_v36, %v860_v37  ;;  %v401_v37 = vld [vmem:[#allocation7 + $0x708] sm:$0xff] }
 0x154   :  { %6589 = vmatpush1.bf16.msra.mxu0 %v9811_v44  ;;  %6754 = vmatprep.subr.bf16.mxu1 %v9310_v45  ;;  %v353_v44 = vld [vmem:[#allocation7 + $0x588] sm:$0xff] }
 0x155   :  { %6590 = vmatprep.subr.bf16.mxu0 %v9820_v46  ;;  %v357_v45 = vld [vmem:[#allocation7 + $0x5a8] sm:$0xff]  ;;  %v864_v46 = vld [vmem:[#allocation7 + $0x1580] sm:$0xff] }
 0x156   :  { %v9366_v51 = vcombine.high %v353_v44, %v357_v45  ;;  %v9365_v58 = vcombine.low %v353_v44, %v357_v45  ;;  %v9875_v59 = vcombine.low %v864_v46, %v868_v47 }
 0x157   :  { %6755 = vmatpush1.bf16.msra.mxu1 %v9309_v52  ;;  %v9876_v52 = vcombine.high %v864_v46, %v868_v47  ;;  %v409_v47 = vld [vmem:[#allocation7 + $0x748] sm:$0xff] }
 0x158   :  { %6591 = vmatpush1.bf16.msra.mxu0 %v9819_v53  ;;  %6765 = vmatprep.subr.bf16.mxu1 %v9318_v54  ;;  %v361_v53 = vld [vmem:[#allocation7 + $0x5c8] sm:$0xff] }
 0x159   :  { %6601 = vmatprep.subr.bf16.mxu0 %v9828_v56  ;;  %v365_v54 = vld [vmem:[#allocation7 + $0x5e8] sm:$0xff]  ;;  %v876_v56 = vld [vmem:[#allocation7 + $0x15e0] sm:$0xff] }
 0x15a   :  { %6757 = vmatmul.mubr.bf16.vlgmr.msra.gmra.mrb[4].mxu1 %v11133_v16  ;;  %v9374_v60 = vcombine.high %v361_v53, %v365_v54  ;;  %v9884_v62 = vcombine.high %v872_v55, %v876_v56  ;;  %v9883_v5 = vcombine.low %v872_v55, %v876_v56  ;;  %v417_v56 = vld [vmem:[#allocation7 + $0x788] sm:$0xff] }
 0x15b   :  { %6593 = vmatmul.mubr.bf16.vlgmr.msra.gmra.mrb[0].mxu0 %v11155_v1  ;;  %6766 = vmatpush1.bf16.msra.mxu1 %v9317_v0  ;;  %v373_v0 = vld [vmem:[#allocation7 + $0x628] sm:$0xff] }
 0x15c   :  { %6602 = vmatpush1.bf16.msra.mxu0 %v9827_v2  ;;  %6767 = vmatprep.subr.bf16.mxu1 %v9326_v3  ;;  %v880_v2 = vld [vmem:[#allocation7 + $0x1600] sm:$0xff]  ;;  %v9382_v6 = vcombine.high %v369_v63, %v373_v0 }
 0x15d   :  { %6603 = vmatprep.subr.bf16.mxu0 %v9836_v4  ;;  %6633 = vmatprep.mubr.bf16.mxu0 %v11157_v7  ;;  %v884_v3 = vld [vmem:[#allocation7 + $0x1620] sm:$0xff]  ;;  %v9373_v4 = vcombine.low %v361_v53, %v365_v54 }
 0x15e   :  { %6797 = vmatprep.mubr.bf16.mxu1 %v11137_v28  ;;  %v9892_v8 = vcombine.high %v880_v2, %v884_v3  ;;  %v9891_v14 = vcombine.low %v880_v2, %v884_v3  ;;  %v425_v3 = vld [vmem:[#allocation7 + $0x7c8] sm:$0xff] }
 0x15f   :  { %6768 = vmatpush1.bf16.msra.mxu1 %v9325_v10  ;;  %v381_v10 = vld [vmem:[#allocation7 + $0x668] sm:$0xff] }
 0x160   :  { %6604 = vmatpush1.bf16.msra.mxu0 %v9835_v11  ;;  %6769 = vmatprep.subr.bf16.mxu1 %v9334_v12  ;;  %v888_v11 = vld [vmem:[#allocation7 + $0x1640] sm:$0xff]  ;;  %v9390_v15 = vcombine.high %v377_v9, %v381_v10 }
 0x161   :  { %6605 = vmatprep.subr.bf16.mxu0 %v9844_v13  ;;  %v892_v12 = vld [vmem:[#allocation7 + $0x1660] sm:$0xff]  ;;  %v9381_v13 = vcombine.low %v369_v63, %v373_v0 }
 0x162   :  { %v9900_v17 = vcombine.high %v888_v11, %v892_v12  ;;  %v9899_v24 = vcombine.low %v888_v11, %v892_v12  ;;  %v433_v12 = vld [vmem:[#allocation7 + $0x808] sm:$0xff] }
 0x163   :  { %6770 = vmatpush1.bf16.msra.mxu1 %v9333_v19  ;;  %v389_v19 = vld [vmem:[#allocation7 + $0x6a8] sm:$0xff] }
 0x164   :  { %6606 = vmatpush1.bf16.msra.mxu0 %v9843_v20  ;;  %6771 = vmatprep.subr.bf16.mxu1 %v9342_v22  ;;  %v896_v20 = vld [vmem:[#allocation7 + $0x1680] sm:$0xff]  ;;  %v9398_v25 = vcombine.high %v385_v18, %v389_v19 }
 0x165   :  { %6607 = vmatprep.subr.bf16.mxu0 %v9852_v23  ;;  %v900_v22 = vld [vmem:[#allocation7 + $0x16a0] sm:$0xff]  ;;  %v9389_v23 = vcombine.low %v377_v9, %v381_v10 }
 0x166   :  { %v9908_v26 = vcombine.high %v896_v20, %v900_v22  ;;  %v9907_v34 = vcombine.low %v896_v20, %v900_v22  ;;  %v154_v20 = vld [vmem:[#allocation3 + $0x50] sm:$0xff] }
 0x167   :  { %6772 = vmatpush1.bf16.msra.mxu1 %v9341_v29  ;;  %v397_v29 = vld [vmem:[#allocation7 + $0x6e8] sm:$0xff] }
 0x168   :  { %6608 = vmatpush1.bf16.msra.mxu0 %v9851_v30  ;;  %6773 = vmatprep.subr.bf16.mxu1 %v9350_v32  ;;  %v904_v30 = vld [vmem:[#allocation7 + $0x16c0] sm:$0xff]  ;;  %v9406_v35 = vcombine.high %v393_v27, %v397_v29 }
 0x169   :  { %6609 = vmatprep.subr.bf16.mxu0 %v9860_v33  ;;  %v908_v32 = vld [vmem:[#allocation7 + $0x16e0] sm:$0xff]  ;;  %v9397_v33 = vcombine.low %v385_v18, %v389_v19 }
 0x16a   :  { %v9916_v36 = vcombine.high %v904_v30, %v908_v32  ;;  %v9915_v44 = vcombine.low %v904_v30, %v908_v32  ;;  %v11163_v30 = vpack.c.bf16 %v154_v20, %v154_v20  ;;  %v489_v20 = vld [vmem:[#allocation7 + $0x9c8] sm:$0xff] }
 0x16b   :  { %6774 = vmatpush1.bf16.msra.mxu1 %v9349_v38  ;;  %v405_v38 = vld [vmem:[#allocation7 + $0x728] sm:$0xff] }
 0x16c   :  { %6610 = vmatpush1.bf16.msra.mxu0 %v9859_v40  ;;  %6775 = vmatprep.subr.bf16.mxu1 %v9358_v42  ;;  %v912_v40 = vld [vmem:[#allocation7 + $0x1700] sm:$0xff]  ;;  %v9414_v45 = vcombine.high %v401_v37, %v405_v38 }
 0x16d   :  { %6611 = vmatprep.subr.bf16.mxu0 %v9868_v43  ;;  %v916_v42 = vld [vmem:[#allocation7 + $0x1720] sm:$0xff]  ;;  %v9405_v43 = vcombine.low %v393_v27, %v397_v29  ;;  %v157_v27 = vld [vmem:[#allocation3 + $0x68] sm:$0xff] }
 0x16e   :  { %v9924_v46 = vcombine.high %v912_v40, %v916_v42  ;;  %v9923_v53 = vcombine.low %v912_v40, %v916_v42  ;;  %v964_v40 = vld [vmem:[#allocation7 + $0x18a0] sm:$0xff] }
 0x16f   :  { %6776 = vmatpush1.bf16.msra.mxu1 %v9357_v48  ;;  %v413_v48 = vld [vmem:[#allocation7 + $0x768] sm:$0xff] }
 0x170   :  { %6612 = vmatpush1.bf16.msra.mxu0 %v9867_v50  ;;  %6777 = vmatprep.subr.bf16.mxu1 %v9366_v51  ;;  %v920_v50 = vld [vmem:[#allocation7 + $0x1740] sm:$0xff]  ;;  %v9422_v54 = vcombine.high %v409_v47, %v413_v48 }
 0x171   :  { %6613 = vmatprep.subr.bf16.mxu0 %v9876_v52  ;;  %v924_v51 = vld [vmem:[#allocation7 + $0x1760] sm:$0xff]  ;;  %v9413_v52 = vcombine.low %v401_v37, %v405_v38  ;;  %v11165_v37 = vpack.c.bf16 %v157_v27, %v157_v27 }
 0x172   :  { %v9932_v55 = vcombine.high %v920_v50, %v924_v51  ;;  %v9931_v63 = vcombine.low %v920_v50, %v924_v51  ;;  %v960_v38 = vld [vmem:[#allocation7 + $0x1880] sm:$0xff] }
 0x173   :  { %6778 = vmatpush1.bf16.msra.mxu1 %v9365_v58  ;;  %v421_v58 = vld [vmem:[#allocation7 + $0x7a8] sm:$0xff]  ;;  %v972_v50 = vld [vmem:[#allocation7 + $0x18e0] sm:$0xff] }
 0x174   :  { %6614 = vmatpush1.bf16.msra.mxu0 %v9875_v59  ;;  %6779 = vmatprep.subr.bf16.mxu1 %v9374_v60  ;;  %v928_v59 = vld [vmem:[#allocation7 + $0x1780] sm:$0xff]  ;;  %v9430_v0 = vcombine.high %v417_v56, %v421_v58 }
 0x175   :  { %6615 = vmatprep.subr.bf16.mxu0 %v9884_v62  ;;  %v932_v60 = vld [vmem:[#allocation7 + $0x17a0] sm:$0xff]  ;;  %v9421_v62 = vcombine.low %v409_v47, %v413_v48  ;;  %v461_v47 = vld [vmem:[#allocation7 + $0x8e8] sm:$0xff] }
 0x176   :  { %v9940_v2 = vcombine.high %v928_v59, %v932_v60  ;;  %v9939_v9 = vcombine.low %v928_v59, %v932_v60  ;;  %v968_v48 = vld [vmem:[#allocation7 + $0x18c0] sm:$0xff] }
 0x177   :  { %6780 = vmatpush1.bf16.msra.mxu1 %v9373_v4  ;;  %v429_v4 = vld [vmem:[#allocation7 + $0x7e8] sm:$0xff]  ;;  %v980_v59 = vld [vmem:[#allocation7 + $0x1920] sm:$0xff] }
 0x178   :  { %6616 = vmatpush1.bf16.msra.mxu0 %v9883_v5  ;;  %6781 = vmatprep.subr.bf16.mxu1 %v9382_v6  ;;  %v936_v5 = vld [vmem:[#allocation7 + $0x17c0] sm:$0xff]  ;;  %v9438_v10 = vcombine.high %v425_v3, %v429_v4 }
 0x179   :  { %6617 = vmatprep.subr.bf16.mxu0 %v9892_v8  ;;  %v940_v6 = vld [vmem:[#allocation7 + $0x17e0] sm:$0xff]  ;;  %v9429_v8 = vcombine.low %v417_v56, %v421_v58  ;;  %v469_v56 = vld [vmem:[#allocation7 + $0x928] sm:$0xff] }
 0x17a   :  { %v9948_v11 = vcombine.high %v936_v5, %v940_v6  ;;  %v9947_v18 = vcombine.low %v936_v5, %v940_v6  ;;  %v976_v58 = vld [vmem:[#allocation7 + $0x1900] sm:$0xff] }
 0x17b   :  { %6782 = vmatpush1.bf16.msra.mxu1 %v9381_v13  ;;  %v437_v13 = vld [vmem:[#allocation7 + $0x828] sm:$0xff]  ;;  %v988_v5 = vld [vmem:[#allocation7 + $0x1960] sm:$0xff] }
 0x17c   :  { %6618 = vmatpush1.bf16.msra.mxu0 %v9891_v14  ;;  %6783 = vmatprep.subr.bf16.mxu1 %v9390_v15  ;;  %v944_v14 = vld [vmem:[#allocation7 + $0x1800] sm:$0xff]  ;;  %v9446_v19 = vcombine.high %v433_v12, %v437_v13  ;;  %v9445_v29 = vcombine.low %v433_v12, %v437_v13  ;;  %v485_v12 = vld [vmem:[#allocation7 + $0x9a8] sm:$0xff] }
 0x17d   :  { %6619 = vmatprep.subr.bf16.mxu0 %v9900_v17  ;;  %v948_v15 = vld [vmem:[#allocation7 + $0x1820] sm:$0xff]  ;;  %v9437_v17 = vcombine.low %v425_v3, %v429_v4  ;;  %v477_v3 = vld [vmem:[#allocation7 + $0x968] sm:$0xff] }
 0x17e   :  { %v9956_v22 = vcombine.high %v944_v14, %v948_v15  ;;  %v9955_v32 = vcombine.low %v944_v14, %v948_v15  ;;  %v984_v4 = vld [vmem:[#allocation7 + $0x1940] sm:$0xff] }
 0x17f   :  { %6784 = vmatpush1.bf16.msra.mxu1 %v9389_v23  ;;  %v441_v23 = vld [vmem:[#allocation7 + $0x848] sm:$0xff]  ;;  %v992_v13 = vld [vmem:[#allocation7 + $0x1980] sm:$0xff] }
 0x180   :  { %6620 = vmatpush1.bf16.msra.mxu0 %v9899_v24  ;;  %6785 = vmatprep.subr.bf16.mxu1 %v9398_v25  ;;  %v445_v24 = vld [vmem:[#allocation7 + $0x868] sm:$0xff]  ;;  %v952_v25 = vld [vmem:[#allocation7 + $0x1840] sm:$0xff] }
 0x181   :  { %6621 = vmatprep.subr.bf16.mxu0 %v9908_v26  ;;  %v956_v26 = vld [vmem:[#allocation7 + $0x1860] sm:$0xff]  ;;  %v9453_v42 = vcombine.low %v441_v23, %v445_v24 }
 0x182   :  { %v996_v14 = vld [vmem:[#allocation7 + $0x19a0] sm:$0xff] }
 0x183   :  { %6786 = vmatpush1.bf16.msra.mxu1 %v9397_v33  ;;  %v9454_v33 = vcombine.high %v441_v23, %v445_v24  ;;  %v1000_v23 = vld [vmem:[#allocation7 + $0x19c0] sm:$0xff] }
 0x184   :  { %6622 = vmatpush1.bf16.msra.mxu0 %v9907_v34  ;;  %6787 = vmatprep.subr.bf16.mxu1 %v9406_v35  ;;  %v9964_v34 = vcombine.high %v952_v25, %v956_v26  ;;  %v449_v35 = vld [vmem:[#allocation7 + $0x888] sm:$0xff]  ;;  %v1004_v24 = vld [vmem:[#allocation7 + $0x19e0] sm:$0xff] }
 0x185   :  { %6623 = vmatprep.subr.bf16.mxu0 %v9916_v36  ;;  %v453_v36 = vld [vmem:[#allocation7 + $0x8a8] sm:$0xff] }
 0x186   :  { %v9461_v51 = vcombine.low %v449_v35, %v453_v36 }
 0x187   :  { %6788 = vmatpush1.bf16.msra.mxu1 %v9405_v43  ;;  %v9963_v43 = vcombine.low %v952_v25, %v956_v26  ;;  %v10003_v26 = vcombine.low %v992_v13, %v996_v14 }
 0x188   :  { %6624 = vmatpush1.bf16.msra.mxu0 %v9915_v44  ;;  %6789 = vmatprep.subr.bf16.mxu1 %v9414_v45  ;;  %v9462_v44 = vcombine.high %v449_v35, %v453_v36  ;;  %v9972_v45 = vcombine.high %v960_v38, %v964_v40  ;;  %v1012_v35 = vld [vmem:[#allocation7 + $0x1a20] sm:$0xff] }
 0x189   :  { %6625 = vmatprep.subr.bf16.mxu0 %v9924_v46  ;;  %v457_v46 = vld [vmem:[#allocation7 + $0x8c8] sm:$0xff] }
 0x18a   :  { %v9469_v60 = vcombine.low %v457_v46, %v461_v47 }
 0x18b   :  { %6790 = vmatpush1.bf16.msra.mxu1 %v9413_v52  ;;  %v9971_v52 = vcombine.low %v960_v38, %v964_v40  ;;  %v10011_v38 = vcombine.low %v1000_v23, %v1004_v24 }
 0x18c   :  { %6626 = vmatpush1.bf16.msra.mxu0 %v9923_v53  ;;  %6791 = vmatprep.subr.bf16.mxu1 %v9422_v54  ;;  %v9470_v53 = vcombine.high %v457_v46, %v461_v47  ;;  %v9980_v54 = vcombine.high %v968_v48, %v972_v50  ;;  %v1020_v46 = vld [vmem:[#allocation7 + $0x1a60] sm:$0xff] }
 0x18d   :  { %6627 = vmatprep.subr.bf16.mxu0 %v9932_v55  ;;  %v465_v55 = vld [vmem:[#allocation7 + $0x908] sm:$0xff] }
 0x18e   :  { %v9477_v6 = vcombine.low %v465_v55, %v469_v56 }
 0x18f   :  { %6792 = vmatpush1.bf16.msra.mxu1 %v9421_v62  ;;  %v9979_v62 = vcombine.low %v968_v48, %v972_v50 }
 0x190   :  { %6628 = vmatpush1.bf16.msra.mxu0 %v9931_v63  ;;  %6793 = vmatprep.subr.bf16.mxu1 %v9430_v0  ;;  %v9478_v63 = vcombine.high %v465_v55, %v469_v56  ;;  %v9988_v0 = vcombine.high %v976_v58, %v980_v59  ;;  %v1028_v55 = vld [vmem:[#allocation7 + $0x1aa0] sm:$0xff] }
 0x191   :  { %6629 = vmatprep.subr.bf16.mxu0 %v9940_v2  ;;  %v473_v2 = vld [vmem:[#allocation7 + $0x948] sm:$0xff] }
 0x192   :  { %v9485_v15 = vcombine.low %v473_v2, %v477_v3 }
 0x193   :  { %6794 = vmatpush1.bf16.msra.mxu1 %v9429_v8  ;;  %v9987_v8 = vcombine.low %v976_v58, %v980_v59 }
 0x194   :  { %6630 = vmatpush1.bf16.msra.mxu0 %v9939_v9  ;;  %6795 = vmatprep.subr.bf16.mxu1 %v9438_v10  ;;  %v9486_v9 = vcombine.high %v473_v2, %v477_v3  ;;  %v9996_v10 = vcombine.high %v984_v4, %v988_v5  ;;  %v1036_v2 = vld [vmem:[#allocation7 + $0x1ae0] sm:$0xff] }
 0x195   :  { %6631 = vmatprep.subr.bf16.mxu0 %v9948_v11  ;;  %v481_v11 = vld [vmem:[#allocation7 + $0x988] sm:$0xff] }
 0x196   :  { %v9493_v25 = vcombine.low %v481_v11, %v485_v12 }
 0x197   :  { %6796 = vmatpush1.bf16.msra.mxu1 %v9437_v17  ;;  %v9995_v17 = vcombine.low %v984_v4, %v988_v5 }
 0x198   :  { %6632 = vmatpush1.bf16.msra.mxu0 %v9947_v18  ;;  %6806 = vmatprep.subr.bf16.mxu1 %v9446_v19  ;;  %v9494_v18 = vcombine.high %v481_v11, %v485_v12  ;;  %v10004_v19 = vcombine.high %v992_v13, %v996_v14  ;;  %v1044_v11 = vld [vmem:[#allocation7 + $0x1b20] sm:$0xff] }
 0x199   :  { %6642 = vmatprep.subr.bf16.mxu0 %v9956_v22  ;;  %v493_v22 = vld [vmem:[#allocation7 + $0x9e8] sm:$0xff] }
 0x19a   :  { %6798 = vmatmul.mubr.bf16.vlgmr.msra.gmra.mrb[4].mxu1 %v11145_v39  ;;  %v9502_v27 = vcombine.high %v489_v20, %v493_v22  ;;  %v9501_v36 = vcombine.low %v489_v20, %v493_v22  ;;  %v1052_v20 = vld [vmem:[#allocation7 + $0x1b60] sm:$0xff] }
 0x19b   :  { %6634 = vmatmul.mubr.bf16.vlgmr.msra.gmra.mrb[0].mxu0 %v11163_v30  ;;  %6807 = vmatpush1.bf16.msra.mxu1 %v9445_v29  ;;  %v10012_v29 = vcombine.high %v1000_v23, %v1004_v24 }
 0x19c   :  { %6643 = vmatpush1.bf16.msra.mxu0 %v9955_v32  ;;  %6808 = vmatprep.subr.bf16.mxu1 %v9454_v33  ;;  %v497_v32 = vld [vmem:[#allocation7 + $0xa08] sm:$0xff] }
 0x19d   :  { %6644 = vmatprep.subr.bf16.mxu0 %v9964_v34  ;;  %6674 = vmatprep.mubr.bf16.mxu0 %v11165_v37  ;;  %v501_v33 = vld [vmem:[#allocation7 + $0xa28] sm:$0xff]  ;;  %v1008_v34 = vld [vmem:[#allocation7 + $0x1a00] sm:$0xff] }
 0x19e   :  { %6838 = vmatprep.mubr.bf16.mxu1 %v11129_v61  ;;  %v9510_v40 = vcombine.high %v497_v32, %v501_v33  ;;  %v9509_v47 = vcombine.low %v497_v32, %v501_v33  ;;  %v10019_v48 = vcombine.low %v1008_v34, %v1012_v35  ;;  %v1060_v32 = vld [vmem:[#allocation7 + $0x1ba0] sm:$0xff] }
 0x19f   :  { %6809 = vmatpush1.bf16.msra.mxu1 %v9453_v42  ;;  %v10020_v42 = vcombine.high %v1008_v34, %v1012_v35 }
 0x1a0   :  { %6645 = vmatpush1.bf16.msra.mxu0 %v9963_v43  ;;  %6810 = vmatprep.subr.bf16.mxu1 %v9462_v44  ;;  %v505_v43 = vld [vmem:[#allocation7 + $0xa48] sm:$0xff] }
 0x1a1   :  { %6646 = vmatprep.subr.bf16.mxu0 %v9972_v45  ;;  %v509_v44 = vld [vmem:[#allocation7 + $0xa68] sm:$0xff]  ;;  %v1016_v45 = vld [vmem:[#allocation7 + $0x1a40] sm:$0xff] }
 0x1a2   :  { %v9518_v50 = vcombine.high %v505_v43, %v509_v44  ;;  %v9517_v56 = vcombine.low %v505_v43, %v509_v44  ;;  %v10027_v58 = vcombine.low %v1016_v45, %v1020_v46  ;;  %v1068_v43 = vld [vmem:[#allocation7 + $0x1be0] sm:$0xff] }
 0x1a3   :  { %6811 = vmatpush1.bf16.msra.mxu1 %v9461_v51  ;;  %v10028_v51 = vcombine.high %v1016_v45, %v1020_v46 }
 0x1a4   :  { %6647 = vmatpush1.bf16.msra.mxu0 %v9971_v52  ;;  %6812 = vmatprep.subr.bf16.mxu1 %v9470_v53  ;;  %v513_v52 = vld [vmem:[#allocation7 + $0xa88] sm:$0xff] }
 0x1a5   :  { %6648 = vmatprep.subr.bf16.mxu0 %v9980_v54  ;;  %v517_v53 = vld [vmem:[#allocation7 + $0xaa8] sm:$0xff]  ;;  %v1024_v54 = vld [vmem:[#allocation7 + $0x1a80] sm:$0xff] }
 0x1a6   :  { %v9526_v59 = vcombine.high %v513_v52, %v517_v53  ;;  %v9525_v3 = vcombine.low %v513_v52, %v517_v53  ;;  %v10035_v4 = vcombine.low %v1024_v54, %v1028_v55  ;;  %v1076_v52 = vld [vmem:[#allocation7 + $0x1c20] sm:$0xff] }
 0x1a7   :  { %6813 = vmatpush1.bf16.msra.mxu1 %v9469_v60  ;;  %v10036_v60 = vcombine.high %v1024_v54, %v1028_v55 }
 0x1a8   :  { %6649 = vmatpush1.bf16.msra.mxu0 %v9979_v62  ;;  %6814 = vmatprep.subr.bf16.mxu1 %v9478_v63  ;;  %v521_v62 = vld [vmem:[#allocation7 + $0xac8] sm:$0xff] }
 0x1a9   :  { %6650 = vmatprep.subr.bf16.mxu0 %v9988_v0  ;;  %v525_v63 = vld [vmem:[#allocation7 + $0xae8] sm:$0xff]  ;;  %v1032_v0 = vld [vmem:[#allocation7 + $0x1ac0] sm:$0xff] }
 0x1aa   :  { %v9534_v5 = vcombine.high %v521_v62, %v525_v63  ;;  %v9533_v12 = vcombine.low %v521_v62, %v525_v63  ;;  %v10043_v13 = vcombine.low %v1032_v0, %v1036_v2  ;;  %v1080_v62 = vld [vmem:[#allocation7 + $0x1c40] sm:$0xff] }
 0x1ab   :  { %6815 = vmatpush1.bf16.msra.mxu1 %v9477_v6  ;;  %v10044_v6 = vcombine.high %v1032_v0, %v1036_v2  ;;  %v1084_v63 = vld [vmem:[#allocation7 + $0x1c60] sm:$0xff]  ;;  %v159_v0 = vld [vmem:[#allocation3 + $0x78] sm:$0xff] }
 0x1ac   :  { %6651 = vmatpush1.bf16.msra.mxu0 %v9987_v8  ;;  %6816 = vmatprep.subr.bf16.mxu1 %v9486_v9  ;;  %v529_v8 = vld [vmem:[#allocation7 + $0xb08] sm:$0xff] }
 0x1ad   :  { %6652 = vmatprep.subr.bf16.mxu0 %v9996_v10  ;;  %v533_v9 = vld [vmem:[#allocation7 + $0xb28] sm:$0xff]  ;;  %v1040_v10 = vld [vmem:[#allocation7 + $0x1b00] sm:$0xff] }
 0x1ae   :  { %v9542_v14 = vcombine.high %v529_v8, %v533_v9  ;;  %v9541_v22 = vcombine.low %v529_v8, %v533_v9  ;;  %v10051_v23 = vcombine.low %v1040_v10, %v1044_v11  ;;  %v577_v8 = vld [vmem:[#allocation7 + $0xc88] sm:$0xff] }
 0x1af   :  { %6817 = vmatpush1.bf16.msra.mxu1 %v9485_v15  ;;  %v10052_v15 = vcombine.high %v1040_v10, %v1044_v11  ;;  %v581_v9 = vld [vmem:[#allocation7 + $0xca8] sm:$0xff]  ;;  %v11173_v10 = vpack.c.bf16 %v159_v0, %v159_v0  ;;  %v1088_v11 = vld [vmem:[#allocation7 + $0x1c80] sm:$0xff] }
 0x1b0   :  { %6653 = vmatpush1.bf16.msra.mxu0 %v9995_v17  ;;  %6818 = vmatprep.subr.bf16.mxu1 %v9494_v18  ;;  %v537_v17 = vld [vmem:[#allocation7 + $0xb48] sm:$0xff]  ;;  %v1128_v0 = vld [vmem:[#allocation7 + $0x1dc0] sm:$0xff] }
 0x1b1   :  { %6654 = vmatprep.subr.bf16.mxu0 %v10004_v19  ;;  %v541_v18 = vld [vmem:[#allocation7 + $0xb68] sm:$0xff]  ;;  %v1048_v19 = vld [vmem:[#allocation7 + $0x1b40] sm:$0xff] }
 0x1b2   :  { %v9550_v24 = vcombine.high %v537_v17, %v541_v18  ;;  %v9549_v33 = vcombine.low %v537_v17, %v541_v18  ;;  %v10059_v34 = vcombine.low %v1048_v19, %v1052_v20  ;;  %v585_v18 = vld [vmem:[#allocation7 + $0xcc8] sm:$0xff] }
 0x1b3   :  { %6819 = vmatpush1.bf16.msra.mxu1 %v9493_v25  ;;  %v10060_v25 = vcombine.high %v1048_v19, %v1052_v20  ;;  %v589_v19 = vld [vmem:[#allocation7 + $0xce8] sm:$0xff]  ;;  %v1096_v20 = vld [vmem:[#allocation7 + $0x1cc0] sm:$0xff] }
 0x1b4   :  { %6655 = vmatpush1.bf16.msra.mxu0 %v10003_v26  ;;  %6820 = vmatprep.subr.bf16.mxu1 %v9502_v27  ;;  %v545_v26 = vld [vmem:[#allocation7 + $0xb88] sm:$0xff] }
 0x1b5   :  { %6656 = vmatprep.subr.bf16.mxu0 %v10012_v29  ;;  %v549_v27 = vld [vmem:[#allocation7 + $0xba8] sm:$0xff]  ;;  %v1056_v29 = vld [vmem:[#allocation7 + $0x1b80] sm:$0xff] }
 0x1b6   :  { %v9558_v35 = vcombine.high %v545_v26, %v549_v27  ;;  %v9557_v44 = vcombine.low %v545_v26, %v549_v27  ;;  %v10067_v45 = vcombine.low %v1056_v29, %v1060_v32  ;;  %v593_v27 = vld [vmem:[#allocation7 + $0xd08] sm:$0xff] }
 0x1b7   :  { %6821 = vmatpush1.bf16.msra.mxu1 %v9501_v36  ;;  %v10068_v36 = vcombine.high %v1056_v29, %v1060_v32  ;;  %v597_v29 = vld [vmem:[#allocation7 + $0xd28] sm:$0xff]  ;;  %v1104_v32 = vld [vmem:[#allocation7 + $0x1d00] sm:$0xff] }
 0x1b8   :  { %6657 = vmatpush1.bf16.msra.mxu0 %v10011_v38  ;;  %6822 = vmatprep.subr.bf16.mxu1 %v9510_v40  ;;  %v553_v38 = vld [vmem:[#allocation7 + $0xbc8] sm:$0xff] }
 0x1b9   :  { %6658 = vmatprep.subr.bf16.mxu0 %v10020_v42  ;;  %v557_v40 = vld [vmem:[#allocation7 + $0xbe8] sm:$0xff]  ;;  %v1064_v42 = vld [vmem:[#allocation7 + $0x1bc0] sm:$0xff] }
 0x1ba   :  { %v9566_v46 = vcombine.high %v553_v38, %v557_v40  ;;  %v9565_v53 = vcombine.low %v553_v38, %v557_v40  ;;  %v10075_v54 = vcombine.low %v1064_v42, %v1068_v43  ;;  %v601_v40 = vld [vmem:[#allocation7 + $0xd48] sm:$0xff] }
 0x1bb   :  { %6823 = vmatpush1.bf16.msra.mxu1 %v9509_v47  ;;  %v10076_v47 = vcombine.high %v1064_v42, %v1068_v43  ;;  %v605_v42 = vld [vmem:[#allocation7 + $0xd68] sm:$0xff]  ;;  %v1112_v43 = vld [vmem:[#allocation7 + $0x1d40] sm:$0xff] }
 0x1bc   :  { %6659 = vmatpush1.bf16.msra.mxu0 %v10019_v48  ;;  %6824 = vmatprep.subr.bf16.mxu1 %v9518_v50  ;;  %v561_v48 = vld [vmem:[#allocation7 + $0xc08] sm:$0xff] }
 0x1bd   :  { %6660 = vmatprep.subr.bf16.mxu0 %v10028_v51  ;;  %v565_v50 = vld [vmem:[#allocation7 + $0xc28] sm:$0xff]  ;;  %v1072_v51 = vld [vmem:[#allocation7 + $0x1c00] sm:$0xff] }
 0x1be   :  { %v9574_v55 = vcombine.high %v561_v48, %v565_v50  ;;  %v9573_v2 = vcombine.low %v561_v48, %v565_v50  ;;  %v609_v50 = vld [vmem:[#allocation7 + $0xd88] sm:$0xff] }
 0x1bf   :  { %6825 = vmatpush1.bf16.msra.mxu1 %v9517_v56  ;;  %v156_v56 = vld [vmem:[#allocation3 + $0x60] sm:$0xff] }
 0x1c0   :  { %6661 = vmatpush1.bf16.msra.mxu0 %v10027_v58  ;;  %6826 = vmatprep.subr.bf16.mxu1 %v9526_v59  ;;  %v10084_v58 = vcombine.high %v1072_v51, %v1076_v52  ;;  %v569_v59 = vld [vmem:[#allocation7 + $0xc48] sm:$0xff] }
 0x1c1   :  { %6662 = vmatprep.subr.bf16.mxu0 %v10036_v60  ;;  %v573_v60 = vld [vmem:[#allocation7 + $0xc68] sm:$0xff] }
 0x1c3   :  { %6827 = vmatpush1.bf16.msra.mxu1 %v9525_v3  ;;  %v11171_v3 = vpack.c.bf16 %v156_v56, %v156_v56 }
 0x1c4   :  { %6663 = vmatpush1.bf16.msra.mxu0 %v10035_v4  ;;  %6828 = vmatprep.subr.bf16.mxu1 %v9534_v5  ;;  %v10083_v4 = vcombine.low %v1072_v51, %v1076_v52  ;;  %v9582_v5 = vcombine.high %v569_v59, %v573_v60  ;;  %v613_v51 = vld [vmem:[#allocation7 + $0xda8] sm:$0xff]  ;;  %v1120_v52 = vld [vmem:[#allocation7 + $0x1d80] sm:$0xff] }
 0x1c5   :  { %6664 = vmatprep.subr.bf16.mxu0 %v10044_v6  ;;  %v10092_v6 = vcombine.high %v1080_v62, %v1084_v63  ;;  %v9622_v56 = vcombine.high %v609_v50, %v613_v51 }
 0x1c7   :  { %6829 = vmatpush1.bf16.msra.mxu1 %v9533_v12  ;;  %v1092_v12 = vld [vmem:[#allocation7 + $0x1ca0] sm:$0xff] }
 0x1c8   :  { %6665 = vmatpush1.bf16.msra.mxu0 %v10043_v13  ;;  %6830 = vmatprep.subr.bf16.mxu1 %v9542_v14  ;;  %v9581_v13 = vcombine.low %v569_v59, %v573_v60  ;;  %v10091_v14 = vcombine.low %v1080_v62, %v1084_v63  ;;  %v10100_v17 = vcombine.high %v1088_v11, %v1092_v12  ;;  %v617_v60 = vld [vmem:[#allocation7 + $0xdc8] sm:$0xff] }
 0x1c9   :  { %6666 = vmatprep.subr.bf16.mxu0 %v10052_v15  ;;  %v9590_v15 = vcombine.high %v577_v8, %v581_v9  ;;  %v621_v62 = vld [vmem:[#allocation7 + $0xde8] sm:$0xff] }
 0x1cb   :  { %6831 = vmatpush1.bf16.msra.mxu1 %v9541_v22  ;;  %v1100_v22 = vld [vmem:[#allocation7 + $0x1ce0] sm:$0xff] }
 0x1cc   :  { %6667 = vmatpush1.bf16.msra.mxu0 %v10051_v23  ;;  %6832 = vmatprep.subr.bf16.mxu1 %v9550_v24  ;;  %v9589_v23 = vcombine.low %v577_v8, %v581_v9  ;;  %v10099_v24 = vcombine.low %v1088_v11, %v1092_v12  ;;  %v10108_v26 = vcombine.high %v1096_v20, %v1100_v22  ;;  %v625_v12 = vld [vmem:[#allocation7 + $0xe08] sm:$0xff] }
 0x1cd   :  { %6668 = vmatprep.subr.bf16.mxu0 %v10060_v25  ;;  %v9598_v25 = vcombine.high %v585_v18, %v589_v19  ;;  %v9630_v9 = vcombine.high %v617_v60, %v621_v62 }
 0x1cf   :  { %6833 = vmatpush1.bf16.msra.mxu1 %v9549_v33  ;;  %v1108_v33 = vld [vmem:[#allocation7 + $0x1d20] sm:$0xff] }
 0x1d0   :  { %6669 = vmatpush1.bf16.msra.mxu0 %v10059_v34  ;;  %6834 = vmatprep.subr.bf16.mxu1 %v9558_v35  ;;  %v9597_v34 = vcombine.low %v585_v18, %v589_v19  ;;  %v10107_v35 = vcombine.low %v1096_v20, %v1100_v22  ;;  %v10116_v38 = vcombine.high %v1104_v32, %v1108_v33  ;;  %v633_v22 = vld [vmem:[#allocation7 + $0xe48] sm:$0xff] }
 0x1d1   :  { %6670 = vmatprep.subr.bf16.mxu0 %v10068_v36  ;;  %v9606_v36 = vcombine.high %v593_v27, %v597_v29 }
 0x1d3   :  { %6835 = vmatpush1.bf16.msra.mxu1 %v9557_v44  ;;  %v1116_v44 = vld [vmem:[#allocation7 + $0x1d60] sm:$0xff] }
 0x1d4   :  { %6671 = vmatpush1.bf16.msra.mxu0 %v10067_v45  ;;  %6836 = vmatprep.subr.bf16.mxu1 %v9566_v46  ;;  %v9605_v45 = vcombine.low %v593_v27, %v597_v29  ;;  %v10115_v46 = vcombine.low %v1104_v32, %v1108_v33  ;;  %v10124_v48 = vcombine.high %v1112_v43, %v1116_v44  ;;  %v641_v33 = vld [vmem:[#allocation7 + $0xe88] sm:$0xff] }
 0x1d5   :  { %6672 = vmatprep.subr.bf16.mxu0 %v10076_v47  ;;  %v9614_v47 = vcombine.high %v601_v40, %v605_v42 }
 0x1d7   :  { %6837 = vmatpush1.bf16.msra.mxu1 %v9565_v53  ;;  %v1124_v53 = vld [vmem:[#allocation7 + $0x1da0] sm:$0xff] }
 0x1d8   :  { %6673 = vmatpush1.bf16.msra.mxu0 %v10075_v54  ;;  %6847 = vmatprep.subr.bf16.mxu1 %v9574_v55  ;;  %v9613_v54 = vcombine.low %v601_v40, %v605_v42  ;;  %v10123_v55 = vcombine.low %v1112_v43, %v1116_v44  ;;  %v10132_v59 = vcombine.high %v1120_v52, %v1124_v53  ;;  %v649_v44 = vld [vmem:[#allocation7 + $0xec8] sm:$0xff] }
 0x1d9   :  { %6683 = vmatprep.subr.bf16.mxu0 %v10084_v58  ;;  %v10131_v8 = vcombine.low %v1120_v52, %v1124_v53  ;;  %v657_v53 = vld [vmem:[#allocation7 + $0xf08] sm:$0xff] }
 0x1da   :  { %6839 = vmatmul.mubr.bf16.vlgmr.msra.gmra.mrb[4].mxu1 %v11135_v21 }
 0x1db   :  { %6675 = vmatmul.mubr.bf16.vlgmr.msra.gmra.mrb[0].mxu0 %v11171_v3  ;;  %6848 = vmatpush1.bf16.msra.mxu1 %v9573_v2  ;;  %v1132_v2 = vld [vmem:[#allocation7 + $0x1de0] sm:$0xff] }
 0x1dc   :  { %6684 = vmatpush1.bf16.msra.mxu0 %v10083_v4  ;;  %6849 = vmatprep.subr.bf16.mxu1 %v9582_v5  ;;  %v9621_v5 = vcombine.low %v609_v50, %v613_v51  ;;  %v10140_v11 = vcombine.high %v1128_v0, %v1132_v2  ;;  %v10139_v18 = vcombine.low %v1128_v0, %v1132_v2  ;;  %v665_v2 = vld [vmem:[#allocation7 + $0xf48] sm:$0xff] }
 0x1dd   :  { %6685 = vmatprep.subr.bf16.mxu0 %v10092_v6  ;;  %6715 = vmatprep.mubr.bf16.mxu0 %v11173_v10 }
 0x1de   :  { %6879 = vmatprep.mubr.bf16.mxu1 %v11140_v31 }
 0x1df   :  { %6850 = vmatpush1.bf16.msra.mxu1 %v9581_v13  ;;  %v629_v13 = vld [vmem:[#allocation7 + $0xe28] sm:$0xff] }
 0x1e0   :  { %6686 = vmatpush1.bf16.msra.mxu0 %v10091_v14  ;;  %6851 = vmatprep.subr.bf16.mxu1 %v9590_v15  ;;  %v1136_v14 = vld [vmem:[#allocation7 + $0x1e00] sm:$0xff]  ;;  %v9638_v19 = vcombine.high %v625_v12, %v629_v13 }
 0x1e1   :  { %6687 = vmatprep.subr.bf16.mxu0 %v10100_v17  ;;  %v1140_v15 = vld [vmem:[#allocation7 + $0x1e20] sm:$0xff]  ;;  %v9629_v17 = vcombine.low %v617_v60, %v621_v62 }
 0x1e2   :  { %v10148_v20 = vcombine.high %v1136_v14, %v1140_v15  ;;  %v10147_v27 = vcombine.low %v1136_v14, %v1140_v15  ;;  %v677_v14 = vld [vmem:[#allocation7 + $0xfa8] sm:$0xff]  ;;  %v1184_v15 = vld [vmem:[#allocation7 + $0x1f80] sm:$0xff] }
 0x1e3   :  { %6852 = vmatpush1.bf16.msra.mxu1 %v9589_v23  ;;  %v637_v23 = vld [vmem:[#allocation7 + $0xe68] sm:$0xff] }
 0x1e4   :  { %6688 = vmatpush1.bf16.msra.mxu0 %v10099_v24  ;;  %6853 = vmatprep.subr.bf16.mxu1 %v9598_v25  ;;  %v1144_v24 = vld [vmem:[#allocation7 + $0x1e40] sm:$0xff]  ;;  %v9646_v29 = vcombine.high %v633_v22, %v637_v23 }
 0x1e5   :  { %6689 = vmatprep.subr.bf16.mxu0 %v10108_v26  ;;  %v1148_v25 = vld [vmem:[#allocation7 + $0x1e60] sm:$0xff]  ;;  %v9637_v26 = vcombine.low %v625_v12, %v629_v13  ;;  %v673_v13 = vld [vmem:[#allocation7 + $0xf88] sm:$0xff] }
 0x1e6   :  { %v10156_v32 = vcombine.high %v1144_v24, %v1148_v25  ;;  %v10155_v40 = vcombine.low %v1144_v24, %v1148_v25  ;;  %v685_v24 = vld [vmem:[#allocation7 + $0xfe8] sm:$0xff]  ;;  %v1192_v25 = vld [vmem:[#allocation7 + $0x1fc0] sm:$0xff] }
 0x1e7   :  { %6854 = vmatpush1.bf16.msra.mxu1 %v9597_v34  ;;  %v645_v34 = vld [vmem:[#allocation7 + $0xea8] sm:$0xff] }
 0x1e8   :  { %6690 = vmatpush1.bf16.msra.mxu0 %v10107_v35  ;;  %6855 = vmatprep.subr.bf16.mxu1 %v9606_v36  ;;  %v1152_v35 = vld [vmem:[#allocation7 + $0x1e80] sm:$0xff]  ;;  %v9654_v42 = vcombine.high %v641_v33, %v645_v34 }
 0x1e9   :  { %6691 = vmatprep.subr.bf16.mxu0 %v10116_v38  ;;  %v1156_v36 = vld [vmem:[#allocation7 + $0x1ea0] sm:$0xff]  ;;  %v9645_v38 = vcombine.low %v633_v22, %v637_v23  ;;  %v681_v23 = vld [vmem:[#allocation7 + $0xfc8] sm:$0xff] }
 0x1ea   :  { %v10164_v43 = vcombine.high %v1152_v35, %v1156_v36  ;;  %v10163_v50 = vcombine.low %v1152_v35, %v1156_v36  ;;  %v693_v35 = vld [vmem:[#allocation7 + $0x1028] sm:$0xff]  ;;  %v178_v36 = vld [vmem:[#allocation7 + $0x10] sm:$0xff] }
 0x1eb   :  { %6856 = vmatpush1.bf16.msra.mxu1 %v9605_v45  ;;  %v653_v45 = vld [vmem:[#allocation7 + $0xee8] sm:$0xff] }
 0x1ec   :  { %6692 = vmatpush1.bf16.msra.mxu0 %v10115_v46  ;;  %6857 = vmatprep.subr.bf16.mxu1 %v9614_v47  ;;  %v1160_v46 = vld [vmem:[#allocation7 + $0x1ec0] sm:$0xff]  ;;  %v9662_v51 = vcombine.high %v649_v44, %v653_v45 }
 0x1ed   :  { %v11179_v58 = vpop.f32.mrb[0].mxu1  ;;  %6693 = vmatprep.subr.bf16.mxu0 %v10124_v48  ;;  %v1164_v47 = vld [vmem:[#allocation7 + $0x1ee0] sm:$0xff]  ;;  %v9653_v48 = vcombine.low %v641_v33, %v645_v34  ;;  %v689_v34 = vld [vmem:[#allocation7 + $0x1008] sm:$0xff] }
 0x1ee   :  { %v11181_v63 = vpop.f32.mrb[1].mxu1  ;;  %v10172_v52 = vcombine.high %v1160_v46, %v1164_v47  ;;  %v10171_v60 = vcombine.low %v1160_v46, %v1164_v47  ;;  %v697_v46 = vld [vmem:[#allocation7 + $0x1048] sm:$0xff] }
 0x1ef   :  { %v6475_v4 = vpop.f32.mrb[2].mxu1  ;;  %6858 = vmatpush1.bf16.msra.mxu1 %v9613_v54  ;;  %v661_v54 = vld [vmem:[#allocation7 + $0xf28] sm:$0xff] }
 0x1f0   :  { %6694 = vmatpush1.bf16.msra.mxu0 %v10123_v55  ;;  %v6476_v6 = vpop.f32.mrb[3].mxu1  ;;  %6859 = vmatprep.subr.bf16.mxu1 %v9622_v56  ;;  %v1168_v55 = vld [vmem:[#allocation7 + $0x1f00] sm:$0xff]  ;;  %v9670_v62 = vcombine.high %v657_v53, %v661_v54  ;;  %v669_v4 = vld [vmem:[#allocation7 + $0xf68] sm:$0xff] }
 0x1f1   :  { %6695 = vmatprep.subr.bf16.mxu0 %v10132_v59  ;;  %v1172_v56 = vld [vmem:[#allocation7 + $0x1f20] sm:$0xff]  ;;  %v9661_v59 = vcombine.low %v649_v44, %v653_v45  ;;  %v9702_v44 = vcombine.high %v689_v34, %v693_v35  ;;  %v701_v47 = vld [vmem:[#allocation7 + $0x1068] sm:$0xff] }
 0x1f2   :  { %v10180_v0 = vcombine.high %v1168_v55, %v1172_v56  ;;  %v1180_v6 = vld [vmem:[#allocation7 + $0x1f60] sm:$0xff] }
 0x1f3   :  { %6860 = vmatpush1.bf16.msra.mxu1 %v9621_v5  ;;  %v1176_v5 = vld [vmem:[#allocation7 + $0x1f40] sm:$0xff] }
 0x1f4   :  { %6696 = vmatpush1.bf16.msra.mxu0 %v10131_v8  ;;  %6861 = vmatprep.subr.bf16.mxu1 %v9630_v9  ;;  %v9669_v8 = vcombine.low %v657_v53, %v661_v54  ;;  %v10179_v9 = vcombine.low %v1168_v55, %v1172_v56  ;;  %v10188_v12 = vcombine.high %v1176_v5, %v1180_v6  ;;  %v705_v56 = vld [vmem:[#allocation7 + $0x1088] sm:$0xff] }
 0x1f5   :  { %6697 = vmatprep.subr.bf16.mxu0 %v10140_v11  ;;  %v9678_v11 = vcombine.high %v665_v2, %v669_v4  ;;  %v9710_v54 = vcombine.high %v697_v46, %v701_v47 }
 0x1f7   :  { %6862 = vmatpush1.bf16.msra.mxu1 %v9629_v17  ;;  %v1188_v17 = vld [vmem:[#allocation7 + $0x1fa0] sm:$0xff] }
 0x1f8   :  { %6698 = vmatpush1.bf16.msra.mxu0 %v10139_v18  ;;  %6863 = vmatprep.subr.bf16.mxu1 %v9638_v19  ;;  %v9677_v18 = vcombine.low %v665_v2, %v669_v4  ;;  %v10187_v19 = vcombine.low %v1176_v5, %v1180_v6  ;;  %v10196_v22 = vcombine.high %v1184_v15, %v1188_v17  ;;  %v713_v6 = vld [vmem:[#allocation7 + $0x10c8] sm:$0xff] }
 0x1f9   :  { %6699 = vmatprep.subr.bf16.mxu0 %v10148_v20  ;;  %v9686_v20 = vcombine.high %v673_v13, %v677_v14 }
 0x1fb   :  { %6864 = vmatpush1.bf16.msra.mxu1 %v9637_v26  ;;  %v1196_v26 = vld [vmem:[#allocation7 + $0x1fe0] sm:$0xff] }
 0x1fc   :  { %6700 = vmatpush1.bf16.msra.mxu0 %v10147_v27  ;;  %6865 = vmatprep.subr.bf16.mxu1 %v9646_v29  ;;  %v9685_v27 = vcombine.low %v673_v13, %v677_v14  ;;  %v10195_v29 = vcombine.low %v1184_v15, %v1188_v17  ;;  %v10204_v33 = vcombine.high %v1192_v25, %v1196_v26  ;;  %v721_v17 = vld [vmem:[#allocation7 + $0x1108] sm:$0xff] }
 0x1fd   :  { %6701 = vmatprep.subr.bf16.mxu0 %v10156_v32  ;;  %v9694_v32 = vcombine.high %v681_v23, %v685_v24 }
 0x1ff   :  { %6866 = vmatpush1.bf16.msra.mxu1 %v9645_v38  ;;  %v182_v38 = vld [vmem:[#allocation7 + $0x30] sm:$0xff] }
 0x200   :  { %6702 = vmatpush1.bf16.msra.mxu0 %v10155_v40  ;;  %6867 = vmatprep.subr.bf16.mxu1 %v9654_v42  ;;  %v9693_v40 = vcombine.low %v681_v23, %v685_v24  ;;  %v10203_v42 = vcombine.low %v1192_v25, %v1196_v26  ;;  %v9192_v45 = vcombine.high %v178_v36, %v182_v38  ;;  %v729_v26 = vld [vmem:[#allocation7 + $0x1148] sm:$0xff] }
 0x201   :  { %6703 = vmatprep.subr.bf16.mxu0 %v10164_v43  ;;  %v158_v43 = vld [vmem:[#allocation3 + $0x70] sm:$0xff]  ;;  %v9191_v53 = vcombine.low %v178_v36, %v182_v38  ;;  %v737_v38 = vld [vmem:[#allocation7 + $0x1188] sm:$0xff] }
 0x203   :  { %6868 = vmatpush1.bf16.msra.mxu1 %v9653_v48  ;;  %v186_v48 = vld [vmem:[#allocation7 + $0x50] sm:$0xff] }
 0x204   :  { %6704 = vmatpush1.bf16.msra.mxu0 %v10163_v50  ;;  %6869 = vmatprep.subr.bf16.mxu1 %v9662_v51  ;;  %v190_v50 = vld [vmem:[#allocation7 + $0x70] sm:$0xff]  ;;  %v11183_v51 = vpack.c.bf16 %v158_v43, %v158_v43 }
 0x205   :  { %6705 = vmatprep.subr.bf16.mxu0 %v10172_v52  ;;  %v9701_v52 = vcombine.low %v689_v34, %v693_v35  ;;  %v9200_v55 = vcombine.high %v186_v48, %v190_v50  ;;  %v9199_v2 = vcombine.low %v186_v48, %v190_v50  ;;  %v230_v43 = vld [vmem:[#allocation7 + $0x1b0] sm:$0xff]  ;;  %v745_v48 = vld [vmem:[#allocation7 + $0x11c8] sm:$0xff] }
 0x206   :  { %v749_v50 = vld [vmem:[#allocation7 + $0x11e8] sm:$0xff] }
 0x207   :  { %6870 = vmatpush1.bf16.msra.mxu1 %v9661_v59  ;;  %v709_v59 = vld [vmem:[#allocation7 + $0x10a8] sm:$0xff] }
 0x208   :  { %6706 = vmatpush1.bf16.msra.mxu0 %v10171_v60  ;;  %6871 = vmatprep.subr.bf16.mxu1 %v9670_v62  ;;  %v194_v60 = vld [vmem:[#allocation7 + $0x90] sm:$0xff]  ;;  %v9718_v4 = vcombine.high %v705_v56, %v709_v59 }
 0x209   :  { %6707 = vmatprep.subr.bf16.mxu0 %v10180_v0  ;;  %v198_v62 = vld [vmem:[#allocation7 + $0xb0] sm:$0xff]  ;;  %v9709_v0 = vcombine.low %v697_v46, %v701_v47 }
 0x20a   :  { %v9208_v5 = vcombine.high %v194_v60, %v198_v62  ;;  %v9207_v13 = vcombine.low %v194_v60, %v198_v62  ;;  %v753_v60 = vld [vmem:[#allocation7 + $0x1208] sm:$0xff] }
 0x20b   :  { %6872 = vmatpush1.bf16.msra.mxu1 %v9669_v8  ;;  %v717_v8 = vld [vmem:[#allocation7 + $0x10e8] sm:$0xff] }
 0x20c   :  { %6708 = vmatpush1.bf16.msra.mxu0 %v10179_v9  ;;  %6873 = vmatprep.subr.bf16.mxu1 %v9678_v11  ;;  %v202_v9 = vld [vmem:[#allocation7 + $0xd0] sm:$0xff]  ;;  %v9726_v14 = vcombine.high %v713_v6, %v717_v8  ;;  %v757_v62 = vld [vmem:[#allocation7 + $0x1228] sm:$0xff] }
 0x20d   :  { %6709 = vmatprep.subr.bf16.mxu0 %v10188_v12  ;;  %v206_v11 = vld [vmem:[#allocation7 + $0xf0] sm:$0xff]  ;;  %v9717_v12 = vcombine.low %v705_v56, %v709_v59  ;;  %v9758_v56 = vcombine.high %v745_v48, %v749_v50 }
 0x20e   :  { %v9216_v15 = vcombine.high %v202_v9, %v206_v11  ;;  %v9215_v23 = vcombine.low %v202_v9, %v206_v11  ;;  %v761_v9 = vld [vmem:[#allocation7 + $0x1248] sm:$0xff] }
 0x20f   :  { %6874 = vmatpush1.bf16.msra.mxu1 %v9677_v18  ;;  %v725_v18 = vld [vmem:[#allocation7 + $0x1128] sm:$0xff] }
 0x210   :  { %6710 = vmatpush1.bf16.msra.mxu0 %v10187_v19  ;;  %6875 = vmatprep.subr.bf16.mxu1 %v9686_v20  ;;  %v210_v19 = vld [vmem:[#allocation7 + $0x110] sm:$0xff]  ;;  %v9734_v24 = vcombine.high %v721_v17, %v725_v18  ;;  %v765_v11 = vld [vmem:[#allocation7 + $0x1268] sm:$0xff] }
 0x211   :  { %6711 = vmatprep.subr.bf16.mxu0 %v10196_v22  ;;  %v214_v20 = vld [vmem:[#allocation7 + $0x130] sm:$0xff]  ;;  %v9725_v22 = vcombine.low %v713_v6, %v717_v8  ;;  %v9766_v6 = vcombine.high %v753_v60, %v757_v62 }
 0x212   :  { %v9224_v25 = vcombine.high %v210_v19, %v214_v20  ;;  %v9223_v34 = vcombine.low %v210_v19, %v214_v20  ;;  %v769_v19 = vld [vmem:[#allocation7 + $0x1288] sm:$0xff] }
 0x213   :  { %6876 = vmatpush1.bf16.msra.mxu1 %v9685_v27  ;;  %v733_v27 = vld [vmem:[#allocation7 + $0x1168] sm:$0xff] }
 0x214   :  { %6712 = vmatpush1.bf16.msra.mxu0 %v10195_v29  ;;  %6877 = vmatprep.subr.bf16.mxu1 %v9694_v32  ;;  %v218_v29 = vld [vmem:[#allocation7 + $0x150] sm:$0xff]  ;;  %v9742_v35 = vcombine.high %v729_v26, %v733_v27  ;;  %v773_v20 = vld [vmem:[#allocation7 + $0x12a8] sm:$0xff] }
 0x215   :  { %6713 = vmatprep.subr.bf16.mxu0 %v10204_v33  ;;  %v222_v32 = vld [vmem:[#allocation7 + $0x170] sm:$0xff]  ;;  %v9733_v33 = vcombine.low %v721_v17, %v725_v18  ;;  %v9774_v17 = vcombine.high %v761_v9, %v765_v11 }
 0x216   :  { %v9232_v36 = vcombine.high %v218_v29, %v222_v32 }
 0x217   :  { %6878 = vmatpush1.bf16.msra.mxu1 %v9693_v40  ;;  %v741_v40 = vld [vmem:[#allocation7 + $0x11a8] sm:$0xff] }
 0x218   :  { %6714 = vmatpush1.bf16.msra.mxu0 %v10203_v42  ;;  %6888 = vmatprep.subr.bf16.mxu1 %v9702_v44  ;;  %v226_v42 = vld [vmem:[#allocation7 + $0x190] sm:$0xff]  ;;  %v9741_v44 = vcombine.low %v729_v26, %v733_v27  ;;  %v9750_v46 = vcombine.high %v737_v38, %v741_v40  ;;  %v9782_v26 = vcombine.high %v769_v19, %v773_v20 }
 0x219   :  { %7052 = vmatprep.subr.bf16.mxu0 %v9192_v45  ;;  %v9231_v45 = vcombine.low %v218_v29, %v222_v32  ;;  %v9240_v47 = vcombine.high %v226_v42, %v230_v43  ;;  %v777_v29 = vld [vmem:[#allocation7 + $0x12c8] sm:$0xff] }
 0x21a   :  { %6880 = vmatmul.mubr.bf16.vlgmr.msra.gmra.mrb[4].mxu1 %v11147_v41  ;;  %v781_v32 = vld [vmem:[#allocation7 + $0x12e8] sm:$0xff] }
 0x21b   :  { %6716 = vmatmul.mubr.bf16.vlgmr.msra.gmra.mrb[0].mxu0 %v11183_v51  ;;  %6889 = vmatpush1.bf16.msra.mxu1 %v9701_v52  ;;  %v234_v52 = vld [vmem:[#allocation7 + $0x1d0] sm:$0xff] }
 0x21c   :  { %7053 = vmatpush1.bf16.msra.mxu0 %v9191_v53  ;;  %6890 = vmatprep.subr.bf16.mxu1 %v9710_v54  ;;  %v238_v53 = vld [vmem:[#allocation7 + $0x1f0] sm:$0xff]  ;;  %v9749_v54 = vcombine.low %v737_v38, %v741_v40  ;;  %v9790_v38 = vcombine.high %v777_v29, %v781_v32 }
 0x21d   :  { %7054 = vmatprep.subr.bf16.mxu0 %v9200_v55  ;;  %6920 = vmatprep.mubr.bf16.mxu1 %v11149_v49  ;;  %v9239_v55 = vcombine.low %v226_v42, %v230_v43  ;;  %v9248_v59 = vcombine.high %v234_v52, %v238_v53  ;;  %v785_v42 = vld [vmem:[#allocation7 + $0x1308] sm:$0xff] }
 0x21e   :  { %7084 = vmatprep.mubr.bf16.mxu0 %v11127_v57  ;;  %v789_v43 = vld [vmem:[#allocation7 + $0x1328] sm:$0xff] }
 0x21f   :  { %6891 = vmatpush1.bf16.msra.mxu1 %v9709_v0  ;;  %v242_v0 = vld [vmem:[#allocation7 + $0x210] sm:$0xff] }
 0x220   :  { %7055 = vmatpush1.bf16.msra.mxu0 %v9199_v2  ;;  %6892 = vmatprep.subr.bf16.mxu1 %v9718_v4  ;;  %v246_v2 = vld [vmem:[#allocation7 + $0x230] sm:$0xff]  ;;  %v9757_v4 = vcombine.low %v745_v48, %v749_v50  ;;  %v9798_v48 = vcombine.high %v785_v42, %v789_v43 }
 0x221   :  { %7056 = vmatprep.subr.bf16.mxu0 %v9208_v5  ;;  %v9247_v5 = vcombine.low %v234_v52, %v238_v53  ;;  %v9256_v8 = vcombine.high %v242_v0, %v246_v2  ;;  %v793_v52 = vld [vmem:[#allocation7 + $0x1348] sm:$0xff] }
 0x222   :  { %v797_v53 = vld [vmem:[#allocation7 + $0x1368] sm:$0xff] }
 0x223   :  { %6893 = vmatpush1.bf16.msra.mxu1 %v9717_v12  ;;  %v250_v12 = vld [vmem:[#allocation7 + $0x250] sm:$0xff] }
 0x224   :  { %7057 = vmatpush1.bf16.msra.mxu0 %v9207_v13  ;;  %6894 = vmatprep.subr.bf16.mxu1 %v9726_v14  ;;  %v254_v13 = vld [vmem:[#allocation7 + $0x270] sm:$0xff]  ;;  %v9765_v14 = vcombine.low %v753_v60, %v757_v62  ;;  %v9806_v60 = vcombine.high %v793_v52, %v797_v53 }
 0x225   :  { %7058 = vmatprep.subr.bf16.mxu0 %v9216_v15  ;;  %v9255_v15 = vcombine.low %v242_v0, %v246_v2  ;;  %v9264_v18 = vcombine.high %v250_v12, %v254_v13  ;;  %v801_v0 = vld [vmem:[#allocation7 + $0x1388] sm:$0xff] }
 0x226   :  { %v805_v2 = vld [vmem:[#allocation7 + $0x13a8] sm:$0xff] }
 0x227   :  { %6895 = vmatpush1.bf16.msra.mxu1 %v9725_v22  ;;  %v258_v22 = vld [vmem:[#allocation7 + $0x290] sm:$0xff] }
 0x228   :  { %7059 = vmatpush1.bf16.msra.mxu0 %v9215_v23  ;;  %6896 = vmatprep.subr.bf16.mxu1 %v9734_v24  ;;  %v262_v23 = vld [vmem:[#allocation7 + $0x2b0] sm:$0xff]  ;;  %v9773_v24 = vcombine.low %v761_v9, %v765_v11  ;;  %v9814_v9 = vcombine.high %v801_v0, %v805_v2 }
 0x229   :  { %7060 = vmatprep.subr.bf16.mxu0 %v9224_v25  ;;  %v9263_v25 = vcombine.low %v250_v12, %v254_v13  ;;  %v9272_v27 = vcombine.high %v258_v22, %v262_v23  ;;  %v809_v12 = vld [vmem:[#allocation7 + $0x13c8] sm:$0xff] }
 0x22a   :  { %v813_v13 = vld [vmem:[#allocation7 + $0x13e8] sm:$0xff] }
 0x22b   :  { %6897 = vmatpush1.bf16.msra.mxu1 %v9733_v33  ;;  %v266_v33 = vld [vmem:[#allocation7 + $0x2d0] sm:$0xff] }
 0x22c   :  { %7061 = vmatpush1.bf16.msra.mxu0 %v9223_v34  ;;  %6898 = vmatprep.subr.bf16.mxu1 %v9742_v35  ;;  %v270_v34 = vld [vmem:[#allocation7 + $0x2f0] sm:$0xff]  ;;  %v9781_v35 = vcombine.low %v769_v19, %v773_v20  ;;  %v9822_v19 = vcombine.high %v809_v12, %v813_v13 }
 0x22d   :  { %7062 = vmatprep.subr.bf16.mxu0 %v9232_v36  ;;  %v9271_v36 = vcombine.low %v258_v22, %v262_v23  ;;  %v9280_v40 = vcombine.high %v266_v33, %v270_v34  ;;  %v817_v22 = vld [vmem:[#allocation7 + $0x1408] sm:$0xff] }
 0x22e   :  { %v821_v23 = vld [vmem:[#allocation7 + $0x1428] sm:$0xff] }
 0x22f   :  { %6899 = vmatpush1.bf16.msra.mxu1 %v9741_v44  ;;  %v274_v44 = vld [vmem:[#allocation7 + $0x310] sm:$0xff] }
 0x230   :  { %7063 = vmatpush1.bf16.msra.mxu0 %v9231_v45  ;;  %6900 = vmatprep.subr.bf16.mxu1 %v9750_v46  ;;  %v278_v45 = vld [vmem:[#allocation7 + $0x330] sm:$0xff]  ;;  %v9789_v46 = vcombine.low %v777_v29, %v781_v32  ;;  %v9830_v29 = vcombine.high %v817_v22, %v821_v23 }
 0x231   :  { %7064 = vmatprep.subr.bf16.mxu0 %v9240_v47  ;;  %v9279_v47 = vcombine.low %v266_v33, %v270_v34  ;;  %v9288_v50 = vcombine.high %v274_v44, %v278_v45  ;;  %v825_v33 = vld [vmem:[#allocation7 + $0x1448] sm:$0xff] }
 0x232   :  { %v829_v34 = vld [vmem:[#allocation7 + $0x1468] sm:$0xff] }
 0x233   :  { %6901 = vmatpush1.bf16.msra.mxu1 %v9749_v54  ;;  %v282_v54 = vld [vmem:[#allocation7 + $0x350] sm:$0xff] }
 0x234   :  { %7065 = vmatpush1.bf16.msra.mxu0 %v9239_v55  ;;  %6902 = vmatprep.subr.bf16.mxu1 %v9758_v56  ;;  %v286_v55 = vld [vmem:[#allocation7 + $0x370] sm:$0xff]  ;;  %v9797_v56 = vcombine.low %v785_v42, %v789_v43  ;;  %v9838_v42 = vcombine.high %v825_v33, %v829_v34 }
 0x235   :  { %7066 = vmatprep.subr.bf16.mxu0 %v9248_v59  ;;  %v9287_v59 = vcombine.low %v274_v44, %v278_v45  ;;  %v9296_v62 = vcombine.high %v282_v54, %v286_v55  ;;  %v833_v44 = vld [vmem:[#allocation7 + $0x1488] sm:$0xff] }
 0x236   :  { %v837_v45 = vld [vmem:[#allocation7 + $0x14a8] sm:$0xff] }
 0x237   :  { %6903 = vmatpush1.bf16.msra.mxu1 %v9757_v4  ;;  %v290_v4 = vld [vmem:[#allocation7 + $0x390] sm:$0xff] }
 0x238   :  { %7067 = vmatpush1.bf16.msra.mxu0 %v9247_v5  ;;  %6904 = vmatprep.subr.bf16.mxu1 %v9766_v6  ;;  %v294_v5 = vld [vmem:[#allocation7 + $0x3b0] sm:$0xff]  ;;  %v9805_v6 = vcombine.low %v793_v52, %v797_v53  ;;  %v9846_v52 = vcombine.high %v833_v44, %v837_v45 }
 0x239   :  { %7068 = vmatprep.subr.bf16.mxu0 %v9256_v8  ;;  %v9295_v8 = vcombine.low %v282_v54, %v286_v55  ;;  %v9304_v11 = vcombine.high %v290_v4, %v294_v5  ;;  %v841_v54 = vld [vmem:[#allocation7 + $0x14c8] sm:$0xff] }
 0x23a   :  { %v845_v55 = vld [vmem:[#allocation7 + $0x14e8] sm:$0xff] }
 0x23b   :  { %6905 = vmatpush1.bf16.msra.mxu1 %v9765_v14  ;;  %v298_v14 = vld [vmem:[#allocation7 + $0x3d0] sm:$0xff] }
 0x23c   :  { %7069 = vmatpush1.bf16.msra.mxu0 %v9255_v15  ;;  %6906 = vmatprep.subr.bf16.mxu1 %v9774_v17  ;;  %v302_v15 = vld [vmem:[#allocation7 + $0x3f0] sm:$0xff]  ;;  %v9813_v17 = vcombine.low %v801_v0, %v805_v2  ;;  %v9854_v0 = vcombine.high %v841_v54, %v845_v55 }
 0x23d   :  { %7070 = vmatprep.subr.bf16.mxu0 %v9264_v18  ;;  %v9303_v18 = vcombine.low %v290_v4, %v294_v5  ;;  %v9312_v20 = vcombine.high %v298_v14, %v302_v15  ;;  %v849_v4 = vld [vmem:[#allocation7 + $0x1508] sm:$0xff] }
 0x23e   :  { %v853_v5 = vld [vmem:[#allocation7 + $0x1528] sm:$0xff] }
 0x23f   :  { %6907 = vmatpush1.bf16.msra.mxu1 %v9773_v24  ;;  %v306_v24 = vld [vmem:[#allocation7 + $0x410] sm:$0xff] }
 0x240   :  { %7071 = vmatpush1.bf16.msra.mxu0 %v9263_v25  ;;  %6908 = vmatprep.subr.bf16.mxu1 %v9782_v26  ;;  %v310_v25 = vld [vmem:[#allocation7 + $0x430] sm:$0xff]  ;;  %v9821_v26 = vcombine.low %v809_v12, %v813_v13  ;;  %v9862_v12 = vcombine.high %v849_v4, %v853_v5 }
 0x241   :  { %7072 = vmatprep.subr.bf16.mxu0 %v9272_v27  ;;  %v9311_v27 = vcombine.low %v298_v14, %v302_v15  ;;  %v9320_v32 = vcombine.high %v306_v24, %v310_v25  ;;  %v857_v14 = vld [vmem:[#allocation7 + $0x1548] sm:$0xff] }
 0x242   :  { %v861_v15 = vld [vmem:[#allocation7 + $0x1568] sm:$0xff] }
 0x243   :  { %6909 = vmatpush1.bf16.msra.mxu1 %v9781_v35  ;;  %v314_v35 = vld [vmem:[#allocation7 + $0x450] sm:$0xff] }
 0x244   :  { %7073 = vmatpush1.bf16.msra.mxu0 %v9271_v36  ;;  %6910 = vmatprep.subr.bf16.mxu1 %v9790_v38  ;;  %v318_v36 = vld [vmem:[#allocation7 + $0x470] sm:$0xff]  ;;  %v9829_v38 = vcombine.low %v817_v22, %v821_v23  ;;  %v9870_v22 = vcombine.high %v857_v14, %v861_v15 }
 0x245   :  { %7074 = vmatprep.subr.bf16.mxu0 %v9280_v40  ;;  %v9319_v40 = vcombine.low %v306_v24, %v310_v25  ;;  %v9328_v43 = vcombine.high %v314_v35, %v318_v36  ;;  %v865_v24 = vld [vmem:[#allocation7 + $0x1588] sm:$0xff] }
 0x246   :  { %v869_v25 = vld [vmem:[#allocation7 + $0x15a8] sm:$0xff] }
 0x247   :  { %6911 = vmatpush1.bf16.msra.mxu1 %v9789_v46  ;;  %v322_v46 = vld [vmem:[#allocation7 + $0x490] sm:$0xff] }
 0x248   :  { %7075 = vmatpush1.bf16.msra.mxu0 %v9279_v47  ;;  %6912 = vmatprep.subr.bf16.mxu1 %v9798_v48  ;;  %v326_v47 = vld [vmem:[#allocation7 + $0x4b0] sm:$0xff]  ;;  %v9837_v48 = vcombine.low %v825_v33, %v829_v34  ;;  %v9878_v33 = vcombine.high %v865_v24, %v869_v25 }
 0x249   :  { %7076 = vmatprep.subr.bf16.mxu0 %v9288_v50  ;;  %v9327_v50 = vcombine.low %v314_v35, %v318_v36  ;;  %v9336_v53 = vcombine.high %v322_v46, %v326_v47  ;;  %v873_v35 = vld [vmem:[#allocation7 + $0x15c8] sm:$0xff] }
 0x24a   :  { %v877_v36 = vld [vmem:[#allocation7 + $0x15e8] sm:$0xff] }
 0x24b   :  { %6913 = vmatpush1.bf16.msra.mxu1 %v9797_v56  ;;  %v330_v56 = vld [vmem:[#allocation7 + $0x4d0] sm:$0xff] }
 0x24c   :  { %7077 = vmatpush1.bf16.msra.mxu0 %v9287_v59  ;;  %6914 = vmatprep.subr.bf16.mxu1 %v9806_v60  ;;  %v334_v59 = vld [vmem:[#allocation7 + $0x4f0] sm:$0xff]  ;;  %v9845_v60 = vcombine.low %v833_v44, %v837_v45  ;;  %v9886_v44 = vcombine.high %v873_v35, %v877_v36 }
 0x24d   :  { %7078 = vmatprep.subr.bf16.mxu0 %v9296_v62  ;;  %v9335_v62 = vcombine.low %v322_v46, %v326_v47  ;;  %v9344_v2 = vcombine.high %v330_v56, %v334_v59  ;;  %v881_v46 = vld [vmem:[#allocation7 + $0x1608] sm:$0xff] }
 0x24e   :  { %v885_v47 = vld [vmem:[#allocation7 + $0x1628] sm:$0xff] }
 0x24f   :  { %6915 = vmatpush1.bf16.msra.mxu1 %v9805_v6  ;;  %v338_v6 = vld [vmem:[#allocation7 + $0x510] sm:$0xff] }
 0x250   :  { %7079 = vmatpush1.bf16.msra.mxu0 %v9295_v8  ;;  %6916 = vmatprep.subr.bf16.mxu1 %v9814_v9  ;;  %v342_v8 = vld [vmem:[#allocation7 + $0x530] sm:$0xff]  ;;  %v9853_v9 = vcombine.low %v841_v54, %v845_v55  ;;  %v9894_v54 = vcombine.high %v881_v46, %v885_v47 }
 0x251   :  { %7080 = vmatprep.subr.bf16.mxu0 %v9304_v11  ;;  %v9343_v11 = vcombine.low %v330_v56, %v334_v59  ;;  %v9352_v13 = vcombine.high %v338_v6, %v342_v8  ;;  %v889_v56 = vld [vmem:[#allocation7 + $0x1648] sm:$0xff] }
 0x252   :  { %v893_v59 = vld [vmem:[#allocation7 + $0x1668] sm:$0xff] }
 0x253   :  { %6917 = vmatpush1.bf16.msra.mxu1 %v9813_v17  ;;  %v346_v17 = vld [vmem:[#allocation7 + $0x550] sm:$0xff] }
 0x254   :  { %7081 = vmatpush1.bf16.msra.mxu0 %v9303_v18  ;;  %6918 = vmatprep.subr.bf16.mxu1 %v9822_v19  ;;  %v350_v18 = vld [vmem:[#allocation7 + $0x570] sm:$0xff]  ;;  %v9861_v19 = vcombine.low %v849_v4, %v853_v5  ;;  %v9902_v4 = vcombine.high %v889_v56, %v893_v59 }
 0x255   :  { %7082 = vmatprep.subr.bf16.mxu0 %v9312_v20  ;;  %v9351_v20 = vcombine.low %v338_v6, %v342_v8  ;;  %v9360_v23 = vcombine.high %v346_v17, %v350_v18  ;;  %v897_v6 = vld [vmem:[#allocation7 + $0x1688] sm:$0xff] }
 0x256   :  { %v901_v8 = vld [vmem:[#allocation7 + $0x16a8] sm:$0xff] }
 0x257   :  { %6919 = vmatpush1.bf16.msra.mxu1 %v9821_v26  ;;  %v354_v26 = vld [vmem:[#allocation7 + $0x590] sm:$0xff] }
 0x258   :  { %7083 = vmatpush1.bf16.msra.mxu0 %v9311_v27  ;;  %6929 = vmatprep.subr.bf16.mxu1 %v9830_v29  ;;  %v358_v27 = vld [vmem:[#allocation7 + $0x5b0] sm:$0xff]  ;;  %v9869_v29 = vcombine.low %v857_v14, %v861_v15  ;;  %v9910_v14 = vcombine.high %v897_v6, %v901_v8 }
 0x259   :  { %7093 = vmatprep.subr.bf16.mxu0 %v9320_v32  ;;  %v9359_v32 = vcombine.low %v346_v17, %v350_v18  ;;  %v9368_v34 = vcombine.high %v354_v26, %v358_v27  ;;  %v905_v17 = vld [vmem:[#allocation7 + $0x16c8] sm:$0xff] }
 0x25a   :  { %6921 = vmatmul.mubr.bf16.vlgmr.msra.gmra.mrb[4].mxu1 %v11155_v1  ;;  %v909_v18 = vld [vmem:[#allocation7 + $0x16e8] sm:$0xff] }
 0x25b   :  { %6930 = vmatpush1.bf16.msra.mxu1 %v9829_v38  ;;  %7085 = vmatmul.mubr.bf16.vlgmr.msra.gmra.mrb[4].mxu0 %v11133_v16  ;;  %v362_v38 = vld [vmem:[#allocation7 + $0x5d0] sm:$0xff] }
 0x25c   :  { %7094 = vmatpush1.bf16.msra.mxu0 %v9319_v40  ;;  %6931 = vmatprep.subr.bf16.mxu1 %v9838_v42  ;;  %v366_v40 = vld [vmem:[#allocation7 + $0x5f0] sm:$0xff]  ;;  %v9877_v42 = vcombine.low %v865_v24, %v869_v25  ;;  %v9918_v24 = vcombine.high %v905_v17, %v909_v18 }
 0x25d   :  { %7095 = vmatprep.subr.bf16.mxu0 %v9328_v43  ;;  %6961 = vmatprep.mubr.bf16.mxu1 %v11157_v7  ;;  %v9367_v43 = vcombine.low %v354_v26, %v358_v27  ;;  %v9376_v45 = vcombine.high %v362_v38, %v366_v40  ;;  %v913_v26 = vld [vmem:[#allocation7 + $0x1708] sm:$0xff] }
 0x25e   :  { %7125 = vmatprep.mubr.bf16.mxu0 %v11137_v28  ;;  %v917_v27 = vld [vmem:[#allocation7 + $0x1728] sm:$0xff] }
 0x25f   :  { %6932 = vmatpush1.bf16.msra.mxu1 %v9837_v48  ;;  %v370_v48 = vld [vmem:[#allocation7 + $0x610] sm:$0xff] }
 0x260   :  { %7096 = vmatpush1.bf16.msra.mxu0 %v9327_v50  ;;  %6933 = vmatprep.subr.bf16.mxu1 %v9846_v52  ;;  %v374_v50 = vld [vmem:[#allocation7 + $0x630] sm:$0xff]  ;;  %v9885_v52 = vcombine.low %v873_v35, %v877_v36  ;;  %v9926_v35 = vcombine.high %v913_v26, %v917_v27 }
 0x261   :  { %7097 = vmatprep.subr.bf16.mxu0 %v9336_v53  ;;  %v9375_v53 = vcombine.low %v362_v38, %v366_v40  ;;  %v9384_v55 = vcombine.high %v370_v48, %v374_v50  ;;  %v921_v38 = vld [vmem:[#allocation7 + $0x1748] sm:$0xff] }
 0x262   :  { %v925_v40 = vld [vmem:[#allocation7 + $0x1768] sm:$0xff] }
 0x263   :  { %6934 = vmatpush1.bf16.msra.mxu1 %v9845_v60  ;;  %v378_v60 = vld [vmem:[#allocation7 + $0x650] sm:$0xff] }
 0x264   :  { %7098 = vmatpush1.bf16.msra.mxu0 %v9335_v62  ;;  %6935 = vmatprep.subr.bf16.mxu1 %v9854_v0  ;;  %v382_v62 = vld [vmem:[#allocation7 + $0x670] sm:$0xff]  ;;  %v9893_v0 = vcombine.low %v881_v46, %v885_v47  ;;  %v9934_v46 = vcombine.high %v921_v38, %v925_v40 }
 0x265   :  { %7099 = vmatprep.subr.bf16.mxu0 %v9344_v2  ;;  %v9383_v2 = vcombine.low %v370_v48, %v374_v50  ;;  %v9392_v5 = vcombine.high %v378_v60, %v382_v62  ;;  %v929_v48 = vld [vmem:[#allocation7 + $0x1788] sm:$0xff] }
 0x266   :  { %v933_v50 = vld [vmem:[#allocation7 + $0x17a8] sm:$0xff] }
 0x267   :  { %6936 = vmatpush1.bf16.msra.mxu1 %v9853_v9  ;;  %v386_v9 = vld [vmem:[#allocation7 + $0x690] sm:$0xff] }
 0x268   :  { %7100 = vmatpush1.bf16.msra.mxu0 %v9343_v11  ;;  %6937 = vmatprep.subr.bf16.mxu1 %v9862_v12  ;;  %v390_v11 = vld [vmem:[#allocation7 + $0x6b0] sm:$0xff]  ;;  %v9901_v12 = vcombine.low %v889_v56, %v893_v59  ;;  %v9942_v56 = vcombine.high %v929_v48, %v933_v50 }
 0x269   :  { %7101 = vmatprep.subr.bf16.mxu0 %v9352_v13  ;;  %v9391_v13 = vcombine.low %v378_v60, %v382_v62  ;;  %v9400_v15 = vcombine.high %v386_v9, %v390_v11  ;;  %v937_v60 = vld [vmem:[#allocation7 + $0x17c8] sm:$0xff] }
 0x26a   :  { %v941_v62 = vld [vmem:[#allocation7 + $0x17e8] sm:$0xff] }
 0x26b   :  { %6938 = vmatpush1.bf16.msra.mxu1 %v9861_v19  ;;  %v394_v19 = vld [vmem:[#allocation7 + $0x6d0] sm:$0xff] }
 0x26c   :  { %7102 = vmatpush1.bf16.msra.mxu0 %v9351_v20  ;;  %6939 = vmatprep.subr.bf16.mxu1 %v9870_v22  ;;  %v398_v20 = vld [vmem:[#allocation7 + $0x6f0] sm:$0xff]  ;;  %v9909_v22 = vcombine.low %v897_v6, %v901_v8  ;;  %v9950_v6 = vcombine.high %v937_v60, %v941_v62 }
 0x26d   :  { %7103 = vmatprep.subr.bf16.mxu0 %v9360_v23  ;;  %v9399_v23 = vcombine.low %v386_v9, %v390_v11  ;;  %v9408_v25 = vcombine.high %v394_v19, %v398_v20  ;;  %v945_v9 = vld [vmem:[#allocation7 + $0x1808] sm:$0xff] }
 0x26e   :  { %v949_v11 = vld [vmem:[#allocation7 + $0x1828] sm:$0xff] }
 0x26f   :  { %6940 = vmatpush1.bf16.msra.mxu1 %v9869_v29  ;;  %v402_v29 = vld [vmem:[#allocation7 + $0x710] sm:$0xff] }
 0x270   :  { %7104 = vmatpush1.bf16.msra.mxu0 %v9359_v32  ;;  %6941 = vmatprep.subr.bf16.mxu1 %v9878_v33  ;;  %v406_v32 = vld [vmem:[#allocation7 + $0x730] sm:$0xff]  ;;  %v9917_v33 = vcombine.low %v905_v17, %v909_v18  ;;  %v9958_v17 = vcombine.high %v945_v9, %v949_v11 }
 0x271   :  { %7105 = vmatprep.subr.bf16.mxu0 %v9368_v34  ;;  %v9407_v34 = vcombine.low %v394_v19, %v398_v20  ;;  %v9416_v36 = vcombine.high %v402_v29, %v406_v32  ;;  %v953_v19 = vld [vmem:[#allocation7 + $0x1848] sm:$0xff] }
 0x272   :  { %v957_v20 = vld [vmem:[#allocation7 + $0x1868] sm:$0xff] }
 0x273   :  { %6942 = vmatpush1.bf16.msra.mxu1 %v9877_v42  ;;  %v410_v42 = vld [vmem:[#allocation7 + $0x750] sm:$0xff] }
 0x274   :  { %7106 = vmatpush1.bf16.msra.mxu0 %v9367_v43  ;;  %6943 = vmatprep.subr.bf16.mxu1 %v9886_v44  ;;  %v414_v43 = vld [vmem:[#allocation7 + $0x770] sm:$0xff]  ;;  %v9925_v44 = vcombine.low %v913_v26, %v917_v27  ;;  %v9966_v26 = vcombine.high %v953_v19, %v957_v20 }
 0x275   :  { %7107 = vmatprep.subr.bf16.mxu0 %v9376_v45  ;;  %v9415_v45 = vcombine.low %v402_v29, %v406_v32  ;;  %v9424_v47 = vcombine.high %v410_v42, %v414_v43  ;;  %v961_v29 = vld [vmem:[#allocation7 + $0x1888] sm:$0xff] }
 0x276   :  { %v965_v32 = vld [vmem:[#allocation7 + $0x18a8] sm:$0xff] }
 0x277   :  { %6944 = vmatpush1.bf16.msra.mxu1 %v9885_v52  ;;  %v418_v52 = vld [vmem:[#allocation7 + $0x790] sm:$0xff] }
 0x278   :  { %7108 = vmatpush1.bf16.msra.mxu0 %v9375_v53  ;;  %6945 = vmatprep.subr.bf16.mxu1 %v9894_v54  ;;  %v422_v53 = vld [vmem:[#allocation7 + $0x7b0] sm:$0xff]  ;;  %v9933_v54 = vcombine.low %v921_v38, %v925_v40  ;;  %v9974_v38 = vcombine.high %v961_v29, %v965_v32 }
 0x279   :  { %7109 = vmatprep.subr.bf16.mxu0 %v9384_v55  ;;  %v9423_v55 = vcombine.low %v410_v42, %v414_v43  ;;  %v9432_v59 = vcombine.high %v418_v52, %v422_v53  ;;  %v969_v42 = vld [vmem:[#allocation7 + $0x18c8] sm:$0xff] }
 0x27a   :  { %v973_v43 = vld [vmem:[#allocation7 + $0x18e8] sm:$0xff] }
 0x27b   :  { %6946 = vmatpush1.bf16.msra.mxu1 %v9893_v0  ;;  %v426_v0 = vld [vmem:[#allocation7 + $0x7d0] sm:$0xff] }
 0x27c   :  { %7110 = vmatpush1.bf16.msra.mxu0 %v9383_v2  ;;  %6947 = vmatprep.subr.bf16.mxu1 %v9902_v4  ;;  %v430_v2 = vld [vmem:[#allocation7 + $0x7f0] sm:$0xff]  ;;  %v9941_v4 = vcombine.low %v929_v48, %v933_v50  ;;  %v9982_v48 = vcombine.high %v969_v42, %v973_v43 }
 0x27d   :  { %7111 = vmatprep.subr.bf16.mxu0 %v9392_v5  ;;  %v9431_v5 = vcombine.low %v418_v52, %v422_v53  ;;  %v9440_v8 = vcombine.high %v426_v0, %v430_v2  ;;  %v977_v52 = vld [vmem:[#allocation7 + $0x1908] sm:$0xff] }
 0x27e   :  { %v981_v53 = vld [vmem:[#allocation7 + $0x1928] sm:$0xff] }
 0x27f   :  { %6948 = vmatpush1.bf16.msra.mxu1 %v9901_v12  ;;  %v434_v12 = vld [vmem:[#allocation7 + $0x810] sm:$0xff] }
 0x280   :  { %7112 = vmatpush1.bf16.msra.mxu0 %v9391_v13  ;;  %6949 = vmatprep.subr.bf16.mxu1 %v9910_v14  ;;  %v438_v13 = vld [vmem:[#allocation7 + $0x830] sm:$0xff]  ;;  %v9949_v14 = vcombine.low %v937_v60, %v941_v62  ;;  %v9990_v60 = vcombine.high %v977_v52, %v981_v53 }
 0x281   :  { %7113 = vmatprep.subr.bf16.mxu0 %v9400_v15  ;;  %v9439_v15 = vcombine.low %v426_v0, %v430_v2  ;;  %v9448_v18 = vcombine.high %v434_v12, %v438_v13  ;;  %v985_v0 = vld [vmem:[#allocation7 + $0x1948] sm:$0xff] }
 0x282   :  { %v989_v2 = vld [vmem:[#allocation7 + $0x1968] sm:$0xff] }
 0x283   :  { %6950 = vmatpush1.bf16.msra.mxu1 %v9909_v22  ;;  %v442_v22 = vld [vmem:[#allocation7 + $0x850] sm:$0xff] }
 0x284   :  { %7114 = vmatpush1.bf16.msra.mxu0 %v9399_v23  ;;  %6951 = vmatprep.subr.bf16.mxu1 %v9918_v24  ;;  %v446_v23 = vld [vmem:[#allocation7 + $0x870] sm:$0xff]  ;;  %v9957_v24 = vcombine.low %v945_v9, %v949_v11  ;;  %v9998_v9 = vcombine.high %v985_v0, %v989_v2 }
 0x285   :  { %7115 = vmatprep.subr.bf16.mxu0 %v9408_v25  ;;  %v9447_v25 = vcombine.low %v434_v12, %v438_v13  ;;  %v9456_v27 = vcombine.high %v442_v22, %v446_v23  ;;  %v993_v12 = vld [vmem:[#allocation7 + $0x1988] sm:$0xff] }
 0x286   :  { %v997_v13 = vld [vmem:[#allocation7 + $0x19a8] sm:$0xff] }
 0x287   :  { %6952 = vmatpush1.bf16.msra.mxu1 %v9917_v33  ;;  %v450_v33 = vld [vmem:[#allocation7 + $0x890] sm:$0xff] }
 0x288   :  { %7116 = vmatpush1.bf16.msra.mxu0 %v9407_v34  ;;  %6953 = vmatprep.subr.bf16.mxu1 %v9926_v35  ;;  %v454_v34 = vld [vmem:[#allocation7 + $0x8b0] sm:$0xff]  ;;  %v9965_v35 = vcombine.low %v953_v19, %v957_v20  ;;  %v10006_v19 = vcombine.high %v993_v12, %v997_v13 }
 0x289   :  { %7117 = vmatprep.subr.bf16.mxu0 %v9416_v36  ;;  %v9455_v36 = vcombine.low %v442_v22, %v446_v23  ;;  %v9464_v40 = vcombine.high %v450_v33, %v454_v34  ;;  %v1001_v22 = vld [vmem:[#allocation7 + $0x19c8] sm:$0xff] }
 0x28a   :  { %v1005_v23 = vld [vmem:[#allocation7 + $0x19e8] sm:$0xff] }
 0x28b   :  { %6954 = vmatpush1.bf16.msra.mxu1 %v9925_v44  ;;  %v458_v44 = vld [vmem:[#allocation7 + $0x8d0] sm:$0xff] }
 0x28c   :  { %7118 = vmatpush1.bf16.msra.mxu0 %v9415_v45  ;;  %6955 = vmatprep.subr.bf16.mxu1 %v9934_v46  ;;  %v462_v45 = vld [vmem:[#allocation7 + $0x8f0] sm:$0xff]  ;;  %v9973_v46 = vcombine.low %v961_v29, %v965_v32  ;;  %v10014_v29 = vcombine.high %v1001_v22, %v1005_v23 }
 0x28d   :  { %7119 = vmatprep.subr.bf16.mxu0 %v9424_v47  ;;  %v9463_v47 = vcombine.low %v450_v33, %v454_v34  ;;  %v9472_v50 = vcombine.high %v458_v44, %v462_v45  ;;  %v1009_v33 = vld [vmem:[#allocation7 + $0x1a08] sm:$0xff] }
 0x28e   :  { %v1013_v34 = vld [vmem:[#allocation7 + $0x1a28] sm:$0xff] }
 0x28f   :  { %6956 = vmatpush1.bf16.msra.mxu1 %v9933_v54  ;;  %v466_v54 = vld [vmem:[#allocation7 + $0x910] sm:$0xff] }
 0x290   :  { %7120 = vmatpush1.bf16.msra.mxu0 %v9423_v55  ;;  %6957 = vmatprep.subr.bf16.mxu1 %v9942_v56  ;;  %v470_v55 = vld [vmem:[#allocation7 + $0x930] sm:$0xff]  ;;  %v9981_v56 = vcombine.low %v969_v42, %v973_v43  ;;  %v10022_v42 = vcombine.high %v1009_v33, %v1013_v34 }
 0x291   :  { %7121 = vmatprep.subr.bf16.mxu0 %v9432_v59  ;;  %v9471_v59 = vcombine.low %v458_v44, %v462_v45  ;;  %v9480_v62 = vcombine.high %v466_v54, %v470_v55  ;;  %v1017_v44 = vld [vmem:[#allocation7 + $0x1a48] sm:$0xff] }
 0x292   :  { %v1021_v45 = vld [vmem:[#allocation7 + $0x1a68] sm:$0xff] }
 0x293   :  { %6958 = vmatpush1.bf16.msra.mxu1 %v9941_v4  ;;  %v474_v4 = vld [vmem:[#allocation7 + $0x950] sm:$0xff] }
 0x294   :  { %7122 = vmatpush1.bf16.msra.mxu0 %v9431_v5  ;;  %6959 = vmatprep.subr.bf16.mxu1 %v9950_v6  ;;  %v478_v5 = vld [vmem:[#allocation7 + $0x970] sm:$0xff]  ;;  %v9989_v6 = vcombine.low %v977_v52, %v981_v53  ;;  %v10030_v52 = vcombine.high %v1017_v44, %v1021_v45 }
 0x295   :  { %7123 = vmatprep.subr.bf16.mxu0 %v9440_v8  ;;  %v9479_v8 = vcombine.low %v466_v54, %v470_v55  ;;  %v9488_v11 = vcombine.high %v474_v4, %v478_v5  ;;  %v1025_v54 = vld [vmem:[#allocation7 + $0x1a88] sm:$0xff] }
 0x296   :  { %v1029_v55 = vld [vmem:[#allocation7 + $0x1aa8] sm:$0xff] }
 0x297   :  { %6960 = vmatpush1.bf16.msra.mxu1 %v9949_v14  ;;  %v482_v14 = vld [vmem:[#allocation7 + $0x990] sm:$0xff] }
 0x298   :  { %7124 = vmatpush1.bf16.msra.mxu0 %v9439_v15  ;;  %6970 = vmatprep.subr.bf16.mxu1 %v9958_v17  ;;  %v486_v15 = vld [vmem:[#allocation7 + $0x9b0] sm:$0xff]  ;;  %v9997_v17 = vcombine.low %v985_v0, %v989_v2  ;;  %v10038_v0 = vcombine.high %v1025_v54, %v1029_v55 }
 0x299   :  { %7134 = vmatprep.subr.bf16.mxu0 %v9448_v18  ;;  %v9487_v18 = vcombine.low %v474_v4, %v478_v5  ;;  %v9496_v20 = vcombine.high %v482_v14, %v486_v15  ;;  %v1033_v4 = vld [vmem:[#allocation7 + $0x1ac8] sm:$0xff] }
 0x29a   :  { %6962 = vmatmul.mubr.bf16.vlgmr.msra.gmra.mrb[4].mxu1 %v11163_v30  ;;  %v1037_v5 = vld [vmem:[#allocation7 + $0x1ae8] sm:$0xff] }
 0x29b   :  { %6971 = vmatpush1.bf16.msra.mxu1 %v9957_v24  ;;  %7126 = vmatmul.mubr.bf16.vlgmr.msra.gmra.mrb[4].mxu0 %v11145_v39  ;;  %v490_v24 = vld [vmem:[#allocation7 + $0x9d0] sm:$0xff] }
 0x29c   :  { %7135 = vmatpush1.bf16.msra.mxu0 %v9447_v25  ;;  %6972 = vmatprep.subr.bf16.mxu1 %v9966_v26  ;;  %v494_v25 = vld [vmem:[#allocation7 + $0x9f0] sm:$0xff]  ;;  %v10005_v26 = vcombine.low %v993_v12, %v997_v13  ;;  %v10046_v12 = vcombine.high %v1033_v4, %v1037_v5 }
 0x29d   :  { %7136 = vmatprep.subr.bf16.mxu0 %v9456_v27  ;;  %7002 = vmatprep.mubr.bf16.mxu1 %v11165_v37  ;;  %v9495_v27 = vcombine.low %v482_v14, %v486_v15  ;;  %v9504_v32 = vcombine.high %v490_v24, %v494_v25  ;;  %v1041_v14 = vld [vmem:[#allocation7 + $0x1b08] sm:$0xff] }
 0x29e   :  { %7166 = vmatprep.mubr.bf16.mxu0 %v11129_v61  ;;  %v1045_v15 = vld [vmem:[#allocation7 + $0x1b28] sm:$0xff] }
 0x29f   :  { %6973 = vmatpush1.bf16.msra.mxu1 %v9965_v35  ;;  %v498_v35 = vld [vmem:[#allocation7 + $0xa10] sm:$0xff] }
 0x2a0   :  { %7137 = vmatpush1.bf16.msra.mxu0 %v9455_v36  ;;  %6974 = vmatprep.subr.bf16.mxu1 %v9974_v38  ;;  %v502_v36 = vld [vmem:[#allocation7 + $0xa30] sm:$0xff]  ;;  %v10013_v38 = vcombine.low %v1001_v22, %v1005_v23  ;;  %v10054_v22 = vcombine.high %v1041_v14, %v1045_v15 }
 0x2a1   :  { %7138 = vmatprep.subr.bf16.mxu0 %v9464_v40  ;;  %v9503_v40 = vcombine.low %v490_v24, %v494_v25  ;;  %v9512_v43 = vcombine.high %v498_v35, %v502_v36  ;;  %v1049_v24 = vld [vmem:[#allocation7 + $0x1b48] sm:$0xff] }
 0x2a2   :  { %v1053_v25 = vld [vmem:[#allocation7 + $0x1b68] sm:$0xff] }
 0x2a3   :  { %6975 = vmatpush1.bf16.msra.mxu1 %v9973_v46  ;;  %v506_v46 = vld [vmem:[#allocation7 + $0xa50] sm:$0xff] }
 0x2a4   :  { %7139 = vmatpush1.bf16.msra.mxu0 %v9463_v47  ;;  %6976 = vmatprep.subr.bf16.mxu1 %v9982_v48  ;;  %v510_v47 = vld [vmem:[#allocation7 + $0xa70] sm:$0xff]  ;;  %v10021_v48 = vcombine.low %v1009_v33, %v1013_v34  ;;  %v10062_v33 = vcombine.high %v1049_v24, %v1053_v25 }
 0x2a5   :  { %7140 = vmatprep.subr.bf16.mxu0 %v9472_v50  ;;  %v9511_v50 = vcombine.low %v498_v35, %v502_v36  ;;  %v9520_v53 = vcombine.high %v506_v46, %v510_v47  ;;  %v1057_v35 = vld [vmem:[#allocation7 + $0x1b88] sm:$0xff] }
 0x2a6   :  { %v1061_v36 = vld [vmem:[#allocation7 + $0x1ba8] sm:$0xff] }
 0x2a7   :  { %6977 = vmatpush1.bf16.msra.mxu1 %v9981_v56  ;;  %v514_v56 = vld [vmem:[#allocation7 + $0xa90] sm:$0xff] }
 0x2a8   :  { %7141 = vmatpush1.bf16.msra.mxu0 %v9471_v59  ;;  %6978 = vmatprep.subr.bf16.mxu1 %v9990_v60  ;;  %v518_v59 = vld [vmem:[#allocation7 + $0xab0] sm:$0xff]  ;;  %v10029_v60 = vcombine.low %v1017_v44, %v1021_v45  ;;  %v10070_v44 = vcombine.high %v1057_v35, %v1061_v36 }
 0x2a9   :  { %7142 = vmatprep.subr.bf16.mxu0 %v9480_v62  ;;  %v9519_v62 = vcombine.low %v506_v46, %v510_v47  ;;  %v9528_v2 = vcombine.high %v514_v56, %v518_v59  ;;  %v1065_v46 = vld [vmem:[#allocation7 + $0x1bc8] sm:$0xff] }
 0x2aa   :  { %v1069_v47 = vld [vmem:[#allocation7 + $0x1be8] sm:$0xff] }
 0x2ab   :  { %6979 = vmatpush1.bf16.msra.mxu1 %v9989_v6  ;;  %v522_v6 = vld [vmem:[#allocation7 + $0xad0] sm:$0xff] }
 0x2ac   :  { %7143 = vmatpush1.bf16.msra.mxu0 %v9479_v8  ;;  %6980 = vmatprep.subr.bf16.mxu1 %v9998_v9  ;;  %v526_v8 = vld [vmem:[#allocation7 + $0xaf0] sm:$0xff]  ;;  %v10037_v9 = vcombine.low %v1025_v54, %v1029_v55  ;;  %v10078_v54 = vcombine.high %v1065_v46, %v1069_v47 }
 0x2ad   :  { %7144 = vmatprep.subr.bf16.mxu0 %v9488_v11  ;;  %v9527_v11 = vcombine.low %v514_v56, %v518_v59  ;;  %v9536_v13 = vcombine.high %v522_v6, %v526_v8  ;;  %v1073_v56 = vld [vmem:[#allocation7 + $0x1c08] sm:$0xff] }
 0x2ae   :  { %v1077_v59 = vld [vmem:[#allocation7 + $0x1c28] sm:$0xff] }
 0x2af   :  { %6981 = vmatpush1.bf16.msra.mxu1 %v9997_v17  ;;  %v530_v17 = vld [vmem:[#allocation7 + $0xb10] sm:$0xff] }
 0x2b0   :  { %7145 = vmatpush1.bf16.msra.mxu0 %v9487_v18  ;;  %6982 = vmatprep.subr.bf16.mxu1 %v10006_v19  ;;  %v534_v18 = vld [vmem:[#allocation7 + $0xb30] sm:$0xff]  ;;  %v10045_v19 = vcombine.low %v1033_v4, %v1037_v5  ;;  %v10086_v4 = vcombine.high %v1073_v56, %v1077_v59 }
 0x2b1   :  { %7146 = vmatprep.subr.bf16.mxu0 %v9496_v20  ;;  %v9535_v20 = vcombine.low %v522_v6, %v526_v8  ;;  %v9544_v23 = vcombine.high %v530_v17, %v534_v18  ;;  %v1081_v6 = vld [vmem:[#allocation7 + $0x1c48] sm:$0xff] }
 0x2b2   :  { %v1085_v8 = vld [vmem:[#allocation7 + $0x1c68] sm:$0xff] }
 0x2b3   :  { %6983 = vmatpush1.bf16.msra.mxu1 %v10005_v26  ;;  %v538_v26 = vld [vmem:[#allocation7 + $0xb50] sm:$0xff] }
 0x2b4   :  { %7147 = vmatpush1.bf16.msra.mxu0 %v9495_v27  ;;  %6984 = vmatprep.subr.bf16.mxu1 %v10014_v29  ;;  %v542_v27 = vld [vmem:[#allocation7 + $0xb70] sm:$0xff]  ;;  %v10053_v29 = vcombine.low %v1041_v14, %v1045_v15  ;;  %v10094_v14 = vcombine.high %v1081_v6, %v1085_v8  ;;  %v1204_v15 = vlaneseq }
 0x2b5   :  { %7148 = vmatprep.subr.bf16.mxu0 %v9504_v32  ;;  %v9543_v32 = vcombine.low %v530_v17, %v534_v18  ;;  %v9552_v34 = vcombine.high %v538_v26, %v542_v27  ;;  %v1089_v18 = vld [vmem:[#allocation7 + $0x1c88] sm:$0xff] }
 0x2b7   :  { %6985 = vmatpush1.bf16.msra.mxu1 %v10013_v38  ;;  %v546_v38 = vld [vmem:[#allocation7 + $0xb90] sm:$0xff] }
 0x2b8   :  { %7149 = vmatpush1.bf16.msra.mxu0 %v9503_v40  ;;  %6986 = vmatprep.subr.bf16.mxu1 %v10022_v42  ;;  %v550_v40 = vld [vmem:[#allocation7 + $0xbb0] sm:$0xff]  ;;  %v10061_v42 = vcombine.low %v1049_v24, %v1053_v25 }
 0x2b9   :  { %7150 = vmatprep.subr.bf16.mxu0 %v9512_v43  ;;  %v9551_v43 = vcombine.low %v538_v26, %v542_v27  ;;  %v9560_v45 = vcombine.high %v546_v38, %v550_v40  ;;  %v11200_v26 = vshrl.u32 %v1204_v15, 7 }
 0x2bb   :  { %6987 = vmatpush1.bf16.msra.mxu1 %v10021_v48  ;;  %v554_v48 = vld [vmem:[#allocation7 + $0xbd0] sm:$0xff]  ;;  %vm9130_vm2 = vcmp.lt.s32.totalorder %v11200_v26, 2 }
 0x2bc   :  { %7151 = vmatpush1.bf16.msra.mxu0 %v9511_v50  ;;  %6988 = vmatprep.subr.bf16.mxu1 %v10030_v52  ;;  %v558_v50 = vld [vmem:[#allocation7 + $0xbf0] sm:$0xff]  ;;  %v10069_v52 = vcombine.low %v1057_v35, %v1061_v36 }
 0x2bd   :  { %7152 = vmatprep.subr.bf16.mxu0 %v9520_v53  ;;  %v9559_v53 = vcombine.low %v546_v38, %v550_v40  ;;  %v9568_v55 = vcombine.high %v554_v48, %v558_v50  ;;  %v11205_v40 = vsub.s32 0, %v11200_v26 }
 0x2bf   :  { %6989 = vmatpush1.bf16.msra.mxu1 %v10029_v60  ;;  %v562_v60 = vld [vmem:[#allocation7 + $0xc10] sm:$0xff] }
 0x2c0   :  { %7153 = vmatpush1.bf16.msra.mxu0 %v9519_v62  ;;  %6990 = vmatprep.subr.bf16.mxu1 %v10038_v0  ;;  %v566_v62 = vld [vmem:[#allocation7 + $0xc30] sm:$0xff]  ;;  %v10077_v0 = vcombine.low %v1065_v46, %v1069_v47  ;;  %v11208_v46 = vsub.s32 4, %v11200_v26 }
 0x2c1   :  { %7154 = vmatprep.subr.bf16.mxu0 %v9528_v2  ;;  %v9567_v2 = vcombine.low %v554_v48, %v558_v50  ;;  %v9576_v5 = vcombine.high %v562_v60, %v566_v62  ;;  %v594_v47 = vld [vmem:[#allocation7 + $0xd10] sm:$0xff] }
 0x2c2   :  { %v598_v48 = vld [vmem:[#allocation7 + $0xd30] sm:$0xff] }
 0x2c3   :  { %6991 = vmatpush1.bf16.msra.mxu1 %v10037_v9  ;;  %v570_v9 = vld [vmem:[#allocation7 + $0xc50] sm:$0xff] }
 0x2c4   :  { %7155 = vmatpush1.bf16.msra.mxu0 %v9527_v11  ;;  %6992 = vmatprep.subr.bf16.mxu1 %v10046_v12  ;;  %v574_v11 = vld [vmem:[#allocation7 + $0xc70] sm:$0xff]  ;;  %v10085_v12 = vcombine.low %v1073_v56, %v1077_v59  ;;  %v1113_v56 = vld [vmem:[#allocation7 + $0x1d48] sm:$0xff] }
 0x2c5   :  { %7156 = vmatprep.subr.bf16.mxu0 %v9536_v13  ;;  %v9575_v13 = vcombine.low %v562_v60, %v566_v62  ;;  %v9584_v17 = vcombine.high %v570_v9, %v574_v11  ;;  %v9583_v24 = vcombine.low %v570_v9, %v574_v11  ;;  %v1117_v59 = vld [vmem:[#allocation7 + $0x1d68] sm:$0xff]  ;;  %v602_v62 = vld [vmem:[#allocation7 + $0xd50] sm:$0xff] }
 0x2c6   :  { %v1121_v9 = vld [vmem:[#allocation7 + $0x1d88] sm:$0xff] }
 0x2c7   :  { %6993 = vmatpush1.bf16.msra.mxu1 %v10045_v19  ;;  %v1093_v19 = vld [vmem:[#allocation7 + $0x1ca8] sm:$0xff] }
 0x2c8   :  { %7157 = vmatpush1.bf16.msra.mxu0 %v9535_v20  ;;  %6994 = vmatprep.subr.bf16.mxu1 %v10054_v22  ;;  %v578_v20 = vld [vmem:[#allocation7 + $0xc90] sm:$0xff]  ;;  %v10102_v25 = vcombine.high %v1089_v18, %v1093_v19  ;;  %v10101_v35 = vcombine.low %v1089_v18, %v1093_v19  ;;  %v1125_v11 = vld [vmem:[#allocation7 + $0x1da8] sm:$0xff] }
 0x2c9   :  { %7158 = vmatprep.subr.bf16.mxu0 %v9544_v23  ;;  %v582_v22 = vld [vmem:[#allocation7 + $0xcb0] sm:$0xff]  ;;  %v10093_v23 = vcombine.low %v1081_v6, %v1085_v8  ;;  %v10134_v19 = vcombine.high %v1121_v9, %v1125_v11 }
 0x2ca   :  { %v9592_v27 = vcombine.high %v578_v20, %v582_v22  ;;  %v9591_v36 = vcombine.low %v578_v20, %v582_v22 }
 0x2cb   :  { %6995 = vmatpush1.bf16.msra.mxu1 %v10053_v29  ;;  %v1097_v29 = vld [vmem:[#allocation7 + $0x1cc8] sm:$0xff] }
 0x2cc   :  { %7159 = vmatpush1.bf16.msra.mxu0 %v9543_v32  ;;  %6996 = vmatprep.subr.bf16.mxu1 %v10062_v33  ;;  %v1101_v32 = vld [vmem:[#allocation7 + $0x1ce8] sm:$0xff]  ;;  %v586_v33 = vld [vmem:[#allocation7 + $0xcd0] sm:$0xff] }
 0x2cd   :  { %7160 = vmatprep.subr.bf16.mxu0 %v9552_v34  ;;  %v590_v34 = vld [vmem:[#allocation7 + $0xcf0] sm:$0xff]  ;;  %v10110_v38 = vcombine.high %v1097_v29, %v1101_v32  ;;  %v10109_v50 = vcombine.low %v1097_v29, %v1101_v32 }
 0x2ce   :  { %v618_v29 = vld [vmem:[#allocation7 + $0xdd0] sm:$0xff] }
 0x2cf   :  { %6997 = vmatpush1.bf16.msra.mxu1 %v10061_v42  ;;  %v9600_v42 = vcombine.high %v586_v33, %v590_v34  ;;  %v622_v32 = vld [vmem:[#allocation7 + $0xdf0] sm:$0xff] }
 0x2d0   :  { %7161 = vmatpush1.bf16.msra.mxu0 %v9551_v43  ;;  %6998 = vmatprep.subr.bf16.mxu1 %v10070_v44  ;;  %v1105_v43 = vld [vmem:[#allocation7 + $0x1d08] sm:$0xff] }
 0x2d1   :  { %7162 = vmatprep.subr.bf16.mxu0 %v9560_v45  ;;  %v1109_v44 = vld [vmem:[#allocation7 + $0x1d28] sm:$0xff]  ;;  %v139_v45 = vld [vmem:[#allocation12] sm:$0x77] }
 0x2d2   :  { %v1211_v60 = vrot.slane %v139_v45, %v11208_v46 }
 0x2d3   :  { %6999 = vmatpush1.bf16.msra.mxu1 %v10069_v52  ;;  %v9599_v52 = vcombine.low %v586_v33, %v590_v34 }
 0x2d4   :  { %7163 = vmatpush1.bf16.msra.mxu0 %v9559_v53  ;;  %7000 = vmatprep.subr.bf16.mxu1 %v10078_v54  ;;  %v10118_v53 = vcombine.high %v1105_v43, %v1109_v44  ;;  %v1207_v54 = vrot.slane %v139_v45, %v11205_v40  ;;  %v1137_v45 = vld [vmem:[#allocation7 + $0x1e08] sm:$0xff] }
 0x2d5   :  { %7164 = vmatprep.subr.bf16.mxu0 %v9568_v55  ;;  %v9608_v55 = vcombine.high %v594_v47, %v598_v48 }
 0x2d6   :  { %v1247_v6 = vrot.slane %v1207_v54, %v11205_v40 }
 0x2d7   :  { %7001 = vmatpush1.bf16.msra.mxu1 %v10077_v0  ;;  %v606_v0 = vld [vmem:[#allocation7 + $0xd70] sm:$0xff] }
 0x2d8   :  { %7165 = vmatpush1.bf16.msra.mxu0 %v9567_v2  ;;  %7011 = vmatprep.subr.bf16.mxu1 %v10086_v4  ;;  %v10117_v2 = vcombine.low %v1105_v43, %v1109_v44  ;;  %v9607_v4 = vcombine.low %v594_v47, %v598_v48  ;;  %v9616_v8 = vcombine.high %v602_v62, %v606_v0  ;;  %v626_v47 = vld [vmem:[#allocation7 + $0xe10] sm:$0xff] }
 0x2d9   :  { %7175 = vmatprep.subr.bf16.mxu0 %v9576_v5  ;;  %v10126_v5 = vcombine.high %v1113_v56, %v1117_v59  ;;  %v9615_v18 = vcombine.low %v602_v62, %v606_v0  ;;  %v10378_v20 = vadd.f32 %v11179_v58, %v1247_v6  ;;  %v9632_v44 = vcombine.high %v618_v29, %v622_v32  ;;  %v630_v48 = vld [vmem:[#allocation7 + $0xe30] sm:$0xff]  ;;  %v1157_v6 = vld [vmem:[#allocation7 + $0x1ea8] sm:$0xff] }
 0x2da   :  { %7003 = vmatmul.mubr.bf16.vlgmr.msra.gmra.mrb[4].mxu1 %v11171_v3  ;;  %v9640_v54 = vcombine.high %v626_v47, %v630_v48  ;;  %v9639_v0 = vcombine.low %v626_v47, %v630_v48 }
 0x2db   :  { %7012 = vmatpush1.bf16.msra.mxu1 %v10085_v12  ;;  %7167 = vmatmul.mubr.bf16.vlgmr.msra.gmra.mrb[4].mxu0 %v11135_v21  ;;  %v1251_v12 = vrot.slane %v1211_v60, %v11205_v40  ;;  %v638_v60 = vld [vmem:[#allocation7 + $0xe70] sm:$0xff] }
 0x2dc   :  { %7176 = vmatpush1.bf16.msra.mxu0 %v9575_v13  ;;  %7013 = vmatprep.subr.bf16.mxu1 %v10094_v14  ;;  %v610_v13 = vld [vmem:[#allocation7 + $0xd90] sm:$0xff] }
 0x2dd   :  { %7177 = vmatprep.subr.bf16.mxu0 %v9584_v17  ;;  %7043 = vmatprep.mubr.bf16.mxu1 %v11173_v10  ;;  %v614_v14 = vld [vmem:[#allocation7 + $0xdb0] sm:$0xff]  ;;  %v10125_v17 = vcombine.low %v1113_v56, %v1117_v59  ;;  %v1149_v56 = vld [vmem:[#allocation7 + $0x1e68] sm:$0xff] }
 0x2de   :  { %7207 = vmatprep.mubr.bf16.mxu0 %v11140_v31  ;;  %v9624_v22 = vcombine.high %v610_v13, %v614_v14  ;;  %v9623_v58 = vcombine.low %v610_v13, %v614_v14  ;;  %v634_v59 = vld [vmem:[#allocation7 + $0xe50] sm:$0xff] }
 0x2df   :  { %7014 = vmatpush1.bf16.msra.mxu1 %v10093_v23  ;;  %v1129_v23 = vld [vmem:[#allocation7 + $0x1dc8] sm:$0xff] }
 0x2e0   :  { %7178 = vmatpush1.bf16.msra.mxu0 %v9583_v24  ;;  %7015 = vmatprep.subr.bf16.mxu1 %v10102_v25  ;;  %v1133_v24 = vld [vmem:[#allocation7 + $0x1de8] sm:$0xff]  ;;  %v10380_v25 = vadd.f32 %v11181_v63, %v1251_v12  ;;  %v9647_v12 = vcombine.low %v634_v59, %v638_v60 }
 0x2e1   :  { %7179 = vmatprep.subr.bf16.mxu0 %v9592_v27  ;;  %v1141_v63 = vld [vmem:[#allocation7 + $0x1e28] sm:$0xff] }
 0x2e2   :  { %v10149_v62 = vcombine.low %v1137_v45, %v1141_v63 }
 0x2e3   :  { %7016 = vmatpush1.bf16.msra.mxu1 %v10101_v35  ;;  %v10133_v35 = vcombine.low %v1121_v9, %v1125_v11  ;;  %v646_v9 = vld [vmem:[#allocation7 + $0xeb0] sm:$0xff] }
 0x2e4   :  { %7180 = vmatpush1.bf16.msra.mxu0 %v9591_v36  ;;  %7017 = vmatprep.subr.bf16.mxu1 %v10110_v38 }
 0x2e5   :  { %7181 = vmatprep.subr.bf16.mxu0 %v9600_v42  ;;  %v10142_v42 = vcombine.high %v1129_v23, %v1133_v24 }
 0x2e7   :  { %7018 = vmatpush1.bf16.msra.mxu1 %v10109_v50  ;;  %v10141_v50 = vcombine.low %v1129_v23, %v1133_v24 }
 0x2e8   :  { %7182 = vmatpush1.bf16.msra.mxu0 %v9599_v52  ;;  %7019 = vmatprep.subr.bf16.mxu1 %v10118_v53  ;;  %v9631_v52 = vcombine.low %v618_v29, %v622_v32  ;;  %v10150_v53 = vcombine.high %v1137_v45, %v1141_v63  ;;  %v1173_v29 = vld [vmem:[#allocation7 + $0x1f28] sm:$0xff]  ;;  %v658_v32 = vld [vmem:[#allocation7 + $0xf10] sm:$0xff] }
 0x2e9   :  { %7183 = vmatprep.subr.bf16.mxu0 %v9608_v55  ;;  %v1145_v55 = vld [vmem:[#allocation7 + $0x1e48] sm:$0xff]  ;;  %v666_v45 = vld [vmem:[#allocation7 + $0xf50] sm:$0xff] }
 0x2ea   :  { %v10157_v11 = vcombine.low %v1145_v55, %v1149_v56  ;;  %v670_v63 = vld [vmem:[#allocation7 + $0xf70] sm:$0xff] }
 0x2eb   :  { %7020 = vmatpush1.bf16.msra.mxu1 %v10117_v2  ;;  %v10158_v2 = vcombine.high %v1145_v55, %v1149_v56  ;;  %v674_v55 = vld [vmem:[#allocation7 + $0xf90] sm:$0xff] }
 0x2ec   :  { %7184 = vmatpush1.bf16.msra.mxu0 %v9607_v4  ;;  %7021 = vmatprep.subr.bf16.mxu1 %v10126_v5  ;;  %v9648_v4 = vcombine.high %v634_v59, %v638_v60  ;;  %v1153_v5 = vld [vmem:[#allocation7 + $0x1e88] sm:$0xff]  ;;  %v678_v56 = vld [vmem:[#allocation7 + $0xfb0] sm:$0xff]  ;;  %v9679_v60 = vcombine.low %v666_v45, %v670_v63 }
 0x2ed   :  { %7185 = vmatprep.subr.bf16.mxu0 %v9616_v8  ;;  %v642_v8 = vld [vmem:[#allocation7 + $0xe90] sm:$0xff]  ;;  %v10166_v13 = vcombine.high %v1153_v5, %v1157_v6 }
 0x2ee   :  { %v6717_v27 = vpop.f32.mrb[0].mxu0  ;;  %v9656_v14 = vcombine.high %v642_v8, %v646_v9  ;;  %v9655_v23 = vcombine.low %v642_v8, %v646_v9  ;;  %v9687_v9 = vcombine.low %v674_v55, %v678_v56 }
 0x2ef   :  { %v11216_v33 = vadd.f32 %v10378_v20, %v6717_v27  ;;  %v6719_v34 = vpop.f32.mrb[1].mxu0  ;;  %7022 = vmatpush1.bf16.msra.mxu1 %v10125_v17  ;;  %v1161_v17 = vld [vmem:[#allocation7 + $0x1ec8] sm:$0xff]  ;;  %v654_v20 = vld [vmem:[#allocation7 + $0xef0] sm:$0xff] }
 0x2f0   :  { %v11218_v36 = vadd.f32 %v10380_v25, %v6719_v34  ;;  %v6721_v38 = vpop.f32.mrb[2].mxu0  ;;  %7186 = vmatpush1.bf16.msra.mxu0 %v9615_v18  ;;  %7023 = vmatprep.subr.bf16.mxu1 %v10134_v19  ;;  %v1165_v18 = vld [vmem:[#allocation7 + $0x1ee8] sm:$0xff]  ;;  %v650_v19 = vld [vmem:[#allocation7 + $0xed0] sm:$0xff] }
 0x2f1   :  { %v6722_v43 = vpop.f32.mrb[3].mxu0  ;;  %7187 = vmatprep.subr.bf16.mxu0 %v9624_v22  ;;  %v10165_v22 = vcombine.low %v1153_v5, %v1157_v6  ;;  %v10174_v24 = vcombine.high %v1161_v17, %v1165_v18  ;;  %v9664_v25 = vcombine.high %v650_v19, %v654_v20  ;;  %v1169_v27 = vld [vmem:[#allocation7 + $0x1f08] sm:$0xff]  ;;  %v662_v34 = vld [vmem:[#allocation7 + $0xf30] sm:$0xff]  ;;  %v9663_v38 = vcombine.low %v650_v19, %v654_v20 }
 0x2f2   :  { %v1177_v43 = vld [vmem:[#allocation7 + $0x1f48] sm:$0xff]  ;;  %v10181_v47 = vcombine.low %v1169_v27, %v1173_v29  ;;  %v9671_v48 = vcombine.low %v658_v32, %v662_v34  ;;  %v682_v5 = vld [vmem:[#allocation7 + $0xfd0] sm:$0xff] }
 0x2f3   :  { %7024 = vmatpush1.bf16.msra.mxu1 %v10133_v35  ;;  %v10173_v35 = vcombine.low %v1161_v17, %v1165_v18  ;;  %v686_v6 = vld [vmem:[#allocation7 + $0xff0] sm:$0xff] }
 0x2f4   :  { %7188 = vmatpush1.bf16.msra.mxu0 %v9623_v58  ;;  %7025 = vmatprep.subr.bf16.mxu1 %v10142_v42  ;;  %v10182_v58 = vcombine.high %v1169_v27, %v1173_v29  ;;  %v9672_v42 = vcombine.high %v658_v32, %v662_v34  ;;  %v690_v17 = vld [vmem:[#allocation7 + $0x1010] sm:$0xff]  ;;  %v9695_v20 = vcombine.low %v682_v5, %v686_v6 }
 0x2f5   :  { %7189 = vmatprep.subr.bf16.mxu0 %v9632_v44  ;;  %v1181_v44 = vld [vmem:[#allocation7 + $0x1f68] sm:$0xff]  ;;  %v694_v18 = vld [vmem:[#allocation7 + $0x1030] sm:$0xff] }
 0x2f6   :  { %v10189_v59 = vcombine.low %v1177_v43, %v1181_v44  ;;  %v698_v27 = vld [vmem:[#allocation7 + $0x1050] sm:$0xff]  ;;  %v9703_v34 = vcombine.low %v690_v17, %v694_v18 }
 0x2f7   :  { %7026 = vmatpush1.bf16.msra.mxu1 %v10141_v50  ;;  %v10190_v50 = vcombine.high %v1177_v43, %v1181_v44  ;;  %v702_v29 = vld [vmem:[#allocation7 + $0x1070] sm:$0xff] }
 0x2f8   :  { %7190 = vmatpush1.bf16.msra.mxu0 %v9631_v52  ;;  %7027 = vmatprep.subr.bf16.mxu1 %v10150_v53  ;;  %v9680_v52 = vcombine.high %v666_v45, %v670_v63  ;;  %v1185_v53 = vld [vmem:[#allocation7 + $0x1f88] sm:$0xff]  ;;  %v706_v43 = vld [vmem:[#allocation7 + $0x1090] sm:$0xff]  ;;  %v9711_v63 = vcombine.low %v698_v27, %v702_v29 }
 0x2f9   :  { %7191 = vmatprep.subr.bf16.mxu0 %v9640_v54  ;;  %v1189_v54 = vld [vmem:[#allocation7 + $0x1fa8] sm:$0xff]  ;;  %v710_v44 = vld [vmem:[#allocation7 + $0x10b0] sm:$0xff] }
 0x2fa   :  { %v10197_v8 = vcombine.low %v1185_v53, %v1189_v54 }
 0x2fb   :  { %7028 = vmatpush1.bf16.msra.mxu1 %v10149_v62  ;;  %v10198_v62 = vcombine.high %v1185_v53, %v1189_v54  ;;  %v714_v53 = vld [vmem:[#allocation7 + $0x10d0] sm:$0xff] }
 0x2fc   :  { %7192 = vmatpush1.bf16.msra.mxu0 %v9639_v0  ;;  %7029 = vmatprep.subr.bf16.mxu1 %v10158_v2  ;;  %v9688_v0 = vcombine.high %v674_v55, %v678_v56  ;;  %v1193_v2 = vld [vmem:[#allocation7 + $0x1fc8] sm:$0xff]  ;;  %v718_v54 = vld [vmem:[#allocation7 + $0x10f0] sm:$0xff]  ;;  %v9719_v56 = vcombine.low %v706_v43, %v710_v44 }
 0x2fd   :  { %7193 = vmatprep.subr.bf16.mxu0 %v9648_v4  ;;  %v1197_v4 = vld [vmem:[#allocation7 + $0x1fe8] sm:$0xff] }
 0x2fe   :  { %v10205_v19 = vcombine.low %v1193_v2, %v1197_v4 }
 0x2ff   :  { %7030 = vmatpush1.bf16.msra.mxu1 %v10157_v11  ;;  %v10206_v11 = vcombine.high %v1193_v2, %v1197_v4  ;;  %v722_v2 = vld [vmem:[#allocation7 + $0x1110] sm:$0xff] }
 0x300   :  { %7194 = vmatpush1.bf16.msra.mxu0 %v9647_v12  ;;  %7031 = vmatprep.subr.bf16.mxu1 %v10166_v13  ;;  %v9696_v12 = vcombine.high %v682_v5, %v686_v6  ;;  %v179_v13 = vld [vmem:[#allocation7 + $0x18] sm:$0xff]  ;;  %v726_v4 = vld [vmem:[#allocation7 + $0x1130] sm:$0xff]  ;;  %v9727_v6 = vcombine.low %v714_v53, %v718_v54 }
 0x301   :  { %7195 = vmatprep.subr.bf16.mxu0 %v9656_v14  ;;  %v183_v14 = vld [vmem:[#allocation7 + $0x38] sm:$0xff] }
 0x302   :  { %v9193_v32 = vcombine.low %v179_v13, %v183_v14 }
 0x303   :  { %7032 = vmatpush1.bf16.msra.mxu1 %v10165_v22  ;;  %v9194_v22 = vcombine.high %v179_v13, %v183_v14  ;;  %v734_v13 = vld [vmem:[#allocation7 + $0x1170] sm:$0xff] }
 0x304   :  { %7196 = vmatpush1.bf16.msra.mxu0 %v9655_v23  ;;  %7033 = vmatprep.subr.bf16.mxu1 %v10174_v24  ;;  %v9704_v23 = vcombine.high %v690_v17, %v694_v18  ;;  %v187_v24 = vld [vmem:[#allocation7 + $0x58] sm:$0xff]  ;;  %v9735_v17 = vcombine.low %v722_v2, %v726_v4 }
 0x305   :  { %7197 = vmatprep.subr.bf16.mxu0 %v9664_v25  ;;  %v191_v25 = vld [vmem:[#allocation7 + $0x78] sm:$0xff] }
 0x306   :  { %v9201_v45 = vcombine.low %v187_v24, %v191_v25 }
 0x307   :  { %7034 = vmatpush1.bf16.msra.mxu1 %v10173_v35  ;;  %v9202_v35 = vcombine.high %v187_v24, %v191_v25  ;;  %v742_v24 = vld [vmem:[#allocation7 + $0x11b0] sm:$0xff] }
 0x308   :  { %7198 = vmatpush1.bf16.msra.mxu0 %v9663_v38  ;;  %7035 = vmatprep.subr.bf16.mxu1 %v10182_v58  ;;  %v9712_v38 = vcombine.high %v698_v27, %v702_v29  ;;  %v195_v58 = vld [vmem:[#allocation7 + $0x98] sm:$0xff] }
 0x309   :  { %7199 = vmatprep.subr.bf16.mxu0 %v9672_v42  ;;  %v199_v42 = vld [vmem:[#allocation7 + $0xb8] sm:$0xff] }
 0x30a   :  { %v9209_v55 = vcombine.low %v195_v58, %v199_v42 }
 0x30b   :  { %7036 = vmatpush1.bf16.msra.mxu1 %v10181_v47  ;;  %v9210_v47 = vcombine.high %v195_v58, %v199_v42  ;;  %v750_v58 = vld [vmem:[#allocation7 + $0x11f0] sm:$0xff] }
 0x30c   :  { %7200 = vmatpush1.bf16.msra.mxu0 %v9671_v48  ;;  %7037 = vmatprep.subr.bf16.mxu1 %v10190_v50  ;;  %v9720_v48 = vcombine.high %v706_v43, %v710_v44  ;;  %v203_v50 = vld [vmem:[#allocation7 + $0xd8] sm:$0xff] }
 0x30d   :  { %7201 = vmatprep.subr.bf16.mxu0 %v9680_v52  ;;  %v207_v52 = vld [vmem:[#allocation7 + $0xf8] sm:$0xff] }
 0x30e   :  { %v9217_v5 = vcombine.low %v203_v50, %v207_v52 }
 0x30f   :  { %7038 = vmatpush1.bf16.msra.mxu1 %v10189_v59  ;;  %v9218_v59 = vcombine.high %v203_v50, %v207_v52  ;;  %v758_v50 = vld [vmem:[#allocation7 + $0x1230] sm:$0xff] }
 0x310   :  { %7202 = vmatpush1.bf16.msra.mxu0 %v9679_v60  ;;  %7039 = vmatprep.subr.bf16.mxu1 %v10198_v62  ;;  %v9728_v60 = vcombine.high %v714_v53, %v718_v54  ;;  %v211_v62 = vld [vmem:[#allocation7 + $0x118] sm:$0xff] }
 0x311   :  { %7203 = vmatprep.subr.bf16.mxu0 %v9688_v0  ;;  %v215_v0 = vld [vmem:[#allocation7 + $0x138] sm:$0xff] }
 0x312   :  { %v9225_v14 = vcombine.low %v211_v62, %v215_v0 }
 0x313   :  { %7040 = vmatpush1.bf16.msra.mxu1 %v10197_v8  ;;  %v9226_v8 = vcombine.high %v211_v62, %v215_v0  ;;  %v766_v62 = vld [vmem:[#allocation7 + $0x1270] sm:$0xff] }
 0x314   :  { %7204 = vmatpush1.bf16.msra.mxu0 %v9687_v9  ;;  %7041 = vmatprep.subr.bf16.mxu1 %v10206_v11  ;;  %v219_v9 = vld [vmem:[#allocation7 + $0x158] sm:$0xff] }
 0x315   :  { %7205 = vmatprep.subr.bf16.mxu0 %v9696_v12  ;;  %v223_v11 = vld [vmem:[#allocation7 + $0x178] sm:$0xff]  ;;  %v730_v12 = vld [vmem:[#allocation7 + $0x1150] sm:$0xff] }
 0x316   :  { %v9234_v18 = vcombine.high %v219_v9, %v223_v11  ;;  %v9233_v25 = vcombine.low %v219_v9, %v223_v11  ;;  %v9743_v27 = vcombine.low %v730_v12, %v734_v13  ;;  %v774_v9 = vld [vmem:[#allocation7 + $0x12b0] sm:$0xff] }
 0x317   :  { %7042 = vmatpush1.bf16.msra.mxu1 %v10205_v19  ;;  %v9744_v19 = vcombine.high %v730_v12, %v734_v13 }
 0x318   :  { %7206 = vmatpush1.bf16.msra.mxu0 %v9695_v20  ;;  %7380 = vmatprep.subr.bf16.mxu1 %v9194_v22  ;;  %v227_v20 = vld [vmem:[#allocation7 + $0x198] sm:$0xff] }
 0x319   :  { %7216 = vmatprep.subr.bf16.mxu0 %v9704_v23  ;;  %v231_v22 = vld [vmem:[#allocation7 + $0x1b8] sm:$0xff]  ;;  %v738_v23 = vld [vmem:[#allocation7 + $0x1190] sm:$0xff] }
 0x31a   :  { %7044 = vmatmul.mubr.bf16.vlgmr.msra.gmra.mrb[4].mxu1 %v11183_v51  ;;  %v9242_v29 = vcombine.high %v227_v20, %v231_v22  ;;  %v9241_v42 = vcombine.low %v227_v20, %v231_v22  ;;  %v9751_v43 = vcombine.low %v738_v23, %v742_v24  ;;  %v782_v20 = vld [vmem:[#allocation7 + $0x12f0] sm:$0xff] }
 0x31b   :  { %7208 = vmatmul.mubr.bf16.vlgmr.msra.gmra.mrb[4].mxu0 %v11147_v41  ;;  %7381 = vmatpush1.bf16.msra.mxu1 %v9193_v32  ;;  %v9752_v32 = vcombine.high %v738_v23, %v742_v24 }
 0x31c   :  { %7217 = vmatpush1.bf16.msra.mxu0 %v9703_v34  ;;  %7382 = vmatprep.subr.bf16.mxu1 %v9202_v35  ;;  %v235_v34 = vld [vmem:[#allocation7 + $0x1d8] sm:$0xff] }
 0x31d   :  { %7218 = vmatprep.subr.bf16.mxu0 %v9712_v38  ;;  %7248 = vmatprep.mubr.bf16.mxu0 %v11149_v49  ;;  %v239_v35 = vld [vmem:[#allocation7 + $0x1f8] sm:$0xff]  ;;  %v746_v38 = vld [vmem:[#allocation7 + $0x11d0] sm:$0xff] }
 0x31e   :  { %7412 = vmatprep.mubr.bf16.mxu1 %v11127_v57  ;;  %v9736_v57 = vcombine.high %v722_v2, %v726_v4  ;;  %v9250_v44 = vcombine.high %v235_v34, %v239_v35  ;;  %v9249_v52 = vcombine.low %v235_v34, %v239_v35  ;;  %v9759_v53 = vcombine.low %v746_v38, %v750_v58  ;;  %v790_v34 = vld [vmem:[#allocation7 + $0x1330] sm:$0xff] }
 0x31f   :  { %7383 = vmatpush1.bf16.msra.mxu1 %v9201_v45  ;;  %v9760_v45 = vcombine.high %v746_v38, %v750_v58 }
 0x320   :  { %7219 = vmatpush1.bf16.msra.mxu0 %v9711_v63  ;;  %7384 = vmatprep.subr.bf16.mxu1 %v9210_v47  ;;  %v243_v63 = vld [vmem:[#allocation7 + $0x218] sm:$0xff] }
 0x321   :  { %7220 = vmatprep.subr.bf16.mxu0 %v9720_v48  ;;  %v247_v47 = vld [vmem:[#allocation7 + $0x238] sm:$0xff]  ;;  %v754_v48 = vld [vmem:[#allocation7 + $0x1210] sm:$0xff] }
 0x322   :  { %v9258_v54 = vcombine.high %v243_v63, %v247_v47  ;;  %v9257_v0 = vcombine.low %v243_v63, %v247_v47  ;;  %v9767_v2 = vcombine.low %v754_v48, %v758_v50  ;;  %v798_v63 = vld [vmem:[#allocation7 + $0x1370] sm:$0xff] }
 0x323   :  { %7385 = vmatpush1.bf16.msra.mxu1 %v9209_v55  ;;  %v9768_v55 = vcombine.high %v754_v48, %v758_v50 }
 0x324   :  { %7221 = vmatpush1.bf16.msra.mxu0 %v9719_v56  ;;  %7386 = vmatprep.subr.bf16.mxu1 %v9218_v59  ;;  %v251_v56 = vld [vmem:[#allocation7 + $0x258] sm:$0xff] }
 0x325   :  { %7222 = vmatprep.subr.bf16.mxu0 %v9728_v60  ;;  %v255_v59 = vld [vmem:[#allocation7 + $0x278] sm:$0xff]  ;;  %v762_v60 = vld [vmem:[#allocation7 + $0x1250] sm:$0xff] }
 0x326   :  { %v9266_v4 = vcombine.high %v251_v56, %v255_v59  ;;  %v9265_v11 = vcombine.low %v251_v56, %v255_v59  ;;  %v9775_v12 = vcombine.low %v762_v60, %v766_v62  ;;  %v806_v56 = vld [vmem:[#allocation7 + $0x13b0] sm:$0xff] }
 0x327   :  { %7387 = vmatpush1.bf16.msra.mxu1 %v9217_v5  ;;  %v9776_v5 = vcombine.high %v762_v60, %v766_v62 }
 0x328   :  { %7223 = vmatpush1.bf16.msra.mxu0 %v9727_v6  ;;  %7388 = vmatprep.subr.bf16.mxu1 %v9226_v8  ;;  %v259_v6 = vld [vmem:[#allocation7 + $0x298] sm:$0xff] }
 0x329   :  { %7224 = vmatprep.subr.bf16.mxu0 %v9736_v57  ;;  %v263_v8 = vld [vmem:[#allocation7 + $0x2b8] sm:$0xff]  ;;  %v770_v57 = vld [vmem:[#allocation7 + $0x1290] sm:$0xff] }
 0x32a   :  { %v9274_v13 = vcombine.high %v259_v6, %v263_v8  ;;  %v9273_v22 = vcombine.low %v259_v6, %v263_v8  ;;  %v9783_v23 = vcombine.low %v770_v57, %v774_v9  ;;  %v814_v6 = vld [vmem:[#allocation7 + $0x13f0] sm:$0xff] }
 0x32b   :  { %7389 = vmatpush1.bf16.msra.mxu1 %v9225_v14  ;;  %v9784_v14 = vcombine.high %v770_v57, %v774_v9 }
 0x32c   :  { %7225 = vmatpush1.bf16.msra.mxu0 %v9735_v17  ;;  %7390 = vmatprep.subr.bf16.mxu1 %v9234_v18  ;;  %v267_v17 = vld [vmem:[#allocation7 + $0x2d8] sm:$0xff] }
 0x32d   :  { %7226 = vmatprep.subr.bf16.mxu0 %v9744_v19  ;;  %v271_v18 = vld [vmem:[#allocation7 + $0x2f8] sm:$0xff]  ;;  %v778_v19 = vld [vmem:[#allocation7 + $0x12d0] sm:$0xff] }
 0x32e   :  { %v9282_v24 = vcombine.high %v267_v17, %v271_v18  ;;  %v9281_v35 = vcombine.low %v267_v17, %v271_v18  ;;  %v9791_v38 = vcombine.low %v778_v19, %v782_v20  ;;  %v822_v17 = vld [vmem:[#allocation7 + $0x1430] sm:$0xff] }
 0x32f   :  { %7391 = vmatpush1.bf16.msra.mxu1 %v9233_v25  ;;  %v9792_v25 = vcombine.high %v778_v19, %v782_v20 }
 0x330   :  { %7227 = vmatpush1.bf16.msra.mxu0 %v9743_v27  ;;  %7392 = vmatprep.subr.bf16.mxu1 %v9242_v29  ;;  %v275_v27 = vld [vmem:[#allocation7 + $0x318] sm:$0xff] }
 0x331   :  { %7228 = vmatprep.subr.bf16.mxu0 %v9752_v32  ;;  %v279_v29 = vld [vmem:[#allocation7 + $0x338] sm:$0xff]  ;;  %v786_v32 = vld [vmem:[#allocation7 + $0x1310] sm:$0xff] }
 0x332   :  { %v9290_v58 = vcombine.high %v275_v27, %v279_v29  ;;  %v9289_v47 = vcombine.low %v275_v27, %v279_v29  ;;  %v9799_v48 = vcombine.low %v786_v32, %v790_v34  ;;  %v830_v27 = vld [vmem:[#allocation7 + $0x1470] sm:$0xff] }
 0x333   :  { %7393 = vmatpush1.bf16.msra.mxu1 %v9241_v42  ;;  %v9800_v42 = vcombine.high %v786_v32, %v790_v34 }
 0x334   :  { %7229 = vmatpush1.bf16.msra.mxu0 %v9751_v43  ;;  %7394 = vmatprep.subr.bf16.mxu1 %v9250_v44  ;;  %v283_v43 = vld [vmem:[#allocation7 + $0x358] sm:$0xff] }
 0x335   :  { %7230 = vmatprep.subr.bf16.mxu0 %v9760_v45  ;;  %v287_v44 = vld [vmem:[#allocation7 + $0x378] sm:$0xff]  ;;  %v794_v45 = vld [vmem:[#allocation7 + $0x1350] sm:$0xff] }
 0x336   :  { %v9298_v50 = vcombine.high %v283_v43, %v287_v44  ;;  %v9297_v59 = vcombine.low %v283_v43, %v287_v44  ;;  %v9807_v60 = vcombine.low %v794_v45, %v798_v63  ;;  %v838_v43 = vld [vmem:[#allocation7 + $0x14b0] sm:$0xff] }
 0x337   :  { %7395 = vmatpush1.bf16.msra.mxu1 %v9249_v52  ;;  %v9808_v52 = vcombine.high %v794_v45, %v798_v63 }
 0x338   :  { %7231 = vmatpush1.bf16.msra.mxu0 %v9759_v53  ;;  %7396 = vmatprep.subr.bf16.mxu1 %v9258_v54  ;;  %v291_v53 = vld [vmem:[#allocation7 + $0x398] sm:$0xff] }
 0x339   :  { %7232 = vmatprep.subr.bf16.mxu0 %v9768_v55  ;;  %v295_v54 = vld [vmem:[#allocation7 + $0x3b8] sm:$0xff]  ;;  %v802_v55 = vld [vmem:[#allocation7 + $0x1390] sm:$0xff] }
 0x33a   :  { %v9306_v62 = vcombine.high %v291_v53, %v295_v54  ;;  %v9305_v8 = vcombine.low %v291_v53, %v295_v54  ;;  %v9815_v57 = vcombine.low %v802_v55, %v806_v56  ;;  %v846_v53 = vld [vmem:[#allocation7 + $0x14f0] sm:$0xff] }
 0x33b   :  { %7397 = vmatpush1.bf16.msra.mxu1 %v9257_v0  ;;  %v9816_v0 = vcombine.high %v802_v55, %v806_v56 }
 0x33c   :  { %7233 = vmatpush1.bf16.msra.mxu0 %v9767_v2  ;;  %7398 = vmatprep.subr.bf16.mxu1 %v9266_v4  ;;  %v299_v2 = vld [vmem:[#allocation7 + $0x3d8] sm:$0xff] }
 0x33d   :  { %7234 = vmatprep.subr.bf16.mxu0 %v9776_v5  ;;  %v303_v4 = vld [vmem:[#allocation7 + $0x3f8] sm:$0xff]  ;;  %v810_v5 = vld [vmem:[#allocation7 + $0x13d0] sm:$0xff] }
 0x33e   :  { %v9314_v9 = vcombine.high %v299_v2, %v303_v4  ;;  %v9313_v18 = vcombine.low %v299_v2, %v303_v4  ;;  %v9823_v19 = vcombine.low %v810_v5, %v814_v6 }
 0x33f   :  { %7399 = vmatpush1.bf16.msra.mxu1 %v9265_v11  ;;  %v9824_v11 = vcombine.high %v810_v5, %v814_v6  ;;  %v347_v6 = vld [vmem:[#allocation7 + $0x558] sm:$0xff] }
 0x340   :  { %7235 = vmatpush1.bf16.msra.mxu0 %v9775_v12  ;;  %7400 = vmatprep.subr.bf16.mxu1 %v9274_v13  ;;  %v307_v12 = vld [vmem:[#allocation7 + $0x418] sm:$0xff] }
 0x341   :  { %7236 = vmatprep.subr.bf16.mxu0 %v9784_v14  ;;  %v311_v13 = vld [vmem:[#allocation7 + $0x438] sm:$0xff]  ;;  %v818_v14 = vld [vmem:[#allocation7 + $0x1410] sm:$0xff] }
 0x342   :  { %v9322_v20 = vcombine.high %v307_v12, %v311_v13  ;;  %v9321_v29 = vcombine.low %v307_v12, %v311_v13  ;;  %v9831_v32 = vcombine.low %v818_v14, %v822_v17 }
 0x343   :  { %7401 = vmatpush1.bf16.msra.mxu1 %v9273_v22  ;;  %v9832_v22 = vcombine.high %v818_v14, %v822_v17  ;;  %v355_v17 = vld [vmem:[#allocation7 + $0x598] sm:$0xff] }
 0x344   :  { %7237 = vmatpush1.bf16.msra.mxu0 %v9783_v23  ;;  %7402 = vmatprep.subr.bf16.mxu1 %v9282_v24  ;;  %v315_v23 = vld [vmem:[#allocation7 + $0x458] sm:$0xff] }
 0x345   :  { %7238 = vmatprep.subr.bf16.mxu0 %v9792_v25  ;;  %v319_v24 = vld [vmem:[#allocation7 + $0x478] sm:$0xff]  ;;  %v826_v25 = vld [vmem:[#allocation7 + $0x1450] sm:$0xff] }
 0x346   :  { %v9330_v34 = vcombine.high %v315_v23, %v319_v24  ;;  %v9329_v44 = vcombine.low %v315_v23, %v319_v24  ;;  %v9839_v45 = vcombine.low %v826_v25, %v830_v27 }
 0x347   :  { %7403 = vmatpush1.bf16.msra.mxu1 %v9281_v35  ;;  %v9840_v35 = vcombine.high %v826_v25, %v830_v27  ;;  %v363_v27 = vld [vmem:[#allocation7 + $0x5d8] sm:$0xff] }
 0x348   :  { %7239 = vmatpush1.bf16.msra.mxu0 %v9791_v38  ;;  %7404 = vmatprep.subr.bf16.mxu1 %v9290_v58  ;;  %v323_v38 = vld [vmem:[#allocation7 + $0x498] sm:$0xff] }
 0x349   :  { %7240 = vmatprep.subr.bf16.mxu0 %v9800_v42  ;;  %v327_v58 = vld [vmem:[#allocation7 + $0x4b8] sm:$0xff]  ;;  %v834_v42 = vld [vmem:[#allocation7 + $0x1490] sm:$0xff] }
 0x34a   :  { %v9338_v63 = vcombine.high %v323_v38, %v327_v58  ;;  %v9847_v54 = vcombine.low %v834_v42, %v838_v43 }
 0x34b   :  { %7405 = vmatpush1.bf16.msra.mxu1 %v9289_v47  ;;  %v9848_v47 = vcombine.high %v834_v42, %v838_v43  ;;  %v371_v43 = vld [vmem:[#allocation7 + $0x618] sm:$0xff] }
 0x34c   :  { %7241 = vmatpush1.bf16.msra.mxu0 %v9799_v48  ;;  %7406 = vmatprep.subr.bf16.mxu1 %v9298_v50  ;;  %v331_v48 = vld [vmem:[#allocation7 + $0x4d8] sm:$0xff] }
 0x34d   :  { %7242 = vmatprep.subr.bf16.mxu0 %v9808_v52  ;;  %v335_v50 = vld [vmem:[#allocation7 + $0x4f8] sm:$0xff]  ;;  %v842_v52 = vld [vmem:[#allocation7 + $0x14d0] sm:$0xff] }
 0x34e   :  { %v9346_v55 = vcombine.high %v331_v48, %v335_v50  ;;  %v9856_v56 = vcombine.high %v842_v52, %v846_v53  ;;  %v9345_v2 = vcombine.low %v331_v48, %v335_v50  ;;  %v9855_v4 = vcombine.low %v842_v52, %v846_v53  ;;  %v379_v53 = vld [vmem:[#allocation7 + $0x658] sm:$0xff] }
 0x34f   :  { %7407 = vmatpush1.bf16.msra.mxu1 %v9297_v59  ;;  %v339_v59 = vld [vmem:[#allocation7 + $0x518] sm:$0xff] }
 0x350   :  { %7243 = vmatpush1.bf16.msra.mxu0 %v9807_v60  ;;  %7408 = vmatprep.subr.bf16.mxu1 %v9306_v62  ;;  %v343_v60 = vld [vmem:[#allocation7 + $0x538] sm:$0xff]  ;;  %v850_v62 = vld [vmem:[#allocation7 + $0x1510] sm:$0xff] }
 0x351   :  { %7244 = vmatprep.subr.bf16.mxu0 %v9816_v0  ;;  %v854_v0 = vld [vmem:[#allocation7 + $0x1530] sm:$0xff]  ;;  %v9354_v5 = vcombine.high %v339_v59, %v343_v60 }
 0x352   :  { %v9863_v12 = vcombine.low %v850_v62, %v854_v0 }
 0x353   :  { %7409 = vmatpush1.bf16.msra.mxu1 %v9305_v8  ;;  %v351_v8 = vld [vmem:[#allocation7 + $0x578] sm:$0xff] }
 0x354   :  { %7245 = vmatpush1.bf16.msra.mxu0 %v9815_v57  ;;  %7410 = vmatprep.subr.bf16.mxu1 %v9314_v9  ;;  %v858_v57 = vld [vmem:[#allocation7 + $0x1550] sm:$0xff]  ;;  %v9362_v13 = vcombine.high %v347_v6, %v351_v8 }
 0x355   :  { %7246 = vmatprep.subr.bf16.mxu0 %v9824_v11  ;;  %v862_v9 = vld [vmem:[#allocation7 + $0x1570] sm:$0xff]  ;;  %v9353_v11 = vcombine.low %v339_v59, %v343_v60 }
 0x356   :  { %v9872_v14 = vcombine.high %v858_v57, %v862_v9  ;;  %v9871_v23 = vcombine.low %v858_v57, %v862_v9  ;;  %v395_v9 = vld [vmem:[#allocation7 + $0x6d8] sm:$0xff] }
 0x357   :  { %7411 = vmatpush1.bf16.msra.mxu1 %v9313_v18  ;;  %v359_v18 = vld [vmem:[#allocation7 + $0x5b8] sm:$0xff] }
 0x358   :  { %7247 = vmatpush1.bf16.msra.mxu0 %v9823_v19  ;;  %7421 = vmatprep.subr.bf16.mxu1 %v9322_v20  ;;  %v866_v19 = vld [vmem:[#allocation7 + $0x1590] sm:$0xff]  ;;  %v9370_v24 = vcombine.high %v355_v17, %v359_v18 }
 0x359   :  { %7257 = vmatprep.subr.bf16.mxu0 %v9832_v22  ;;  %v870_v20 = vld [vmem:[#allocation7 + $0x15b0] sm:$0xff]  ;;  %v9361_v22 = vcombine.low %v347_v6, %v351_v8 }
 0x35a   :  { %7413 = vmatmul.mubr.bf16.vlgmr.msra.gmra.mrb[8].mxu1 %v11133_v16  ;;  %v9337_v16 = vcombine.low %v323_v38, %v327_v58  ;;  %v9880_v25 = vcombine.high %v866_v19, %v870_v20  ;;  %v9879_v38 = vcombine.low %v866_v19, %v870_v20  ;;  %v403_v20 = vld [vmem:[#allocation7 + $0x718] sm:$0xff] }
 0x35b   :  { %7249 = vmatmul.mubr.bf16.vlgmr.msra.gmra.mrb[4].mxu0 %v11155_v1  ;;  %7422 = vmatpush1.bf16.msra.mxu1 %v9321_v29  ;;  %v367_v29 = vld [vmem:[#allocation7 + $0x5f8] sm:$0xff] }
 0x35c   :  { %7258 = vmatpush1.bf16.msra.mxu0 %v9831_v32  ;;  %7423 = vmatprep.subr.bf16.mxu1 %v9330_v34  ;;  %v874_v32 = vld [vmem:[#allocation7 + $0x15d0] sm:$0xff]  ;;  %v9378_v58 = vcombine.high %v363_v27, %v367_v29 }
 0x35d   :  { %7259 = vmatprep.subr.bf16.mxu0 %v9840_v35  ;;  %7289 = vmatprep.mubr.bf16.mxu0 %v11157_v7  ;;  %v878_v34 = vld [vmem:[#allocation7 + $0x15f0] sm:$0xff]  ;;  %v9369_v35 = vcombine.low %v355_v17, %v359_v18 }
 0x35e   :  { %7453 = vmatprep.mubr.bf16.mxu1 %v11137_v28  ;;  %v9864_v28 = vcombine.high %v850_v62, %v854_v0  ;;  %v9888_v42 = vcombine.high %v874_v32, %v878_v34  ;;  %v9887_v48 = vcombine.low %v874_v32, %v878_v34  ;;  %v387_v0 = vld [vmem:[#allocation7 + $0x698] sm:$0xff] }
 0x35f   :  { %7424 = vmatpush1.bf16.msra.mxu1 %v9329_v44  ;;  %v375_v44 = vld [vmem:[#allocation7 + $0x638] sm:$0xff] }
 0x360   :  { %7260 = vmatpush1.bf16.msra.mxu0 %v9839_v45  ;;  %7425 = vmatprep.subr.bf16.mxu1 %v9338_v63  ;;  %v882_v45 = vld [vmem:[#allocation7 + $0x1610] sm:$0xff]  ;;  %v9386_v50 = vcombine.high %v371_v43, %v375_v44  ;;  %v411_v34 = vld [vmem:[#allocation7 + $0x758] sm:$0xff] }
 0x361   :  { %7261 = vmatprep.subr.bf16.mxu0 %v9848_v47  ;;  %v886_v63 = vld [vmem:[#allocation7 + $0x1630] sm:$0xff]  ;;  %v9377_v47 = vcombine.low %v363_v27, %v367_v29 }
 0x362   :  { %v9896_v52 = vcombine.high %v882_v45, %v886_v63  ;;  %v9895_v59 = vcombine.low %v882_v45, %v886_v63  ;;  %v419_v63 = vld [vmem:[#allocation7 + $0x798] sm:$0xff] }
 0x363   :  { %7426 = vmatpush1.bf16.msra.mxu1 %v9337_v16  ;;  %v383_v16 = vld [vmem:[#allocation7 + $0x678] sm:$0xff] }
 0x364   :  { %7262 = vmatpush1.bf16.msra.mxu0 %v9847_v54  ;;  %7427 = vmatprep.subr.bf16.mxu1 %v9346_v55  ;;  %v890_v54 = vld [vmem:[#allocation7 + $0x1650] sm:$0xff]  ;;  %v9394_v60 = vcombine.high %v379_v53, %v383_v16 }
 0x365   :  { %7263 = vmatprep.subr.bf16.mxu0 %v9856_v56  ;;  %v894_v55 = vld [vmem:[#allocation7 + $0x1670] sm:$0xff]  ;;  %v9385_v56 = vcombine.low %v371_v43, %v375_v44 }
 0x366   :  { %v9904_v62 = vcombine.high %v890_v54, %v894_v55  ;;  %v9903_v6 = vcombine.low %v890_v54, %v894_v55  ;;  %v427_v55 = vld [vmem:[#allocation7 + $0x7d8] sm:$0xff] }
 0x367   :  { %7428 = vmatpush1.bf16.msra.mxu1 %v9345_v2  ;;  %v391_v2 = vld [vmem:[#allocation7 + $0x6b8] sm:$0xff] }
 0x368   :  { %7264 = vmatpush1.bf16.msra.mxu0 %v9855_v4  ;;  %7429 = vmatprep.subr.bf16.mxu1 %v9354_v5  ;;  %v898_v4 = vld [vmem:[#allocation7 + $0x1690] sm:$0xff]  ;;  %v9402_v8 = vcombine.high %v387_v0, %v391_v2 }
 0x369   :  { %7265 = vmatprep.subr.bf16.mxu0 %v9864_v28  ;;  %v902_v5 = vld [vmem:[#allocation7 + $0x16b0] sm:$0xff]  ;;  %v9393_v28 = vcombine.low %v379_v53, %v383_v16 }
 0x36a   :  { %v9912_v57 = vcombine.high %v898_v4, %v902_v5  ;;  %v9911_v17 = vcombine.low %v898_v4, %v902_v5  ;;  %v435_v5 = vld [vmem:[#allocation7 + $0x818] sm:$0xff] }
 0x36b   :  { %7430 = vmatpush1.bf16.msra.mxu1 %v9353_v11  ;;  %v399_v11 = vld [vmem:[#allocation7 + $0x6f8] sm:$0xff] }
 0x36c   :  { %7266 = vmatpush1.bf16.msra.mxu0 %v9863_v12  ;;  %7431 = vmatprep.subr.bf16.mxu1 %v9362_v13  ;;  %v906_v12 = vld [vmem:[#allocation7 + $0x16d0] sm:$0xff]  ;;  %v9410_v18 = vcombine.high %v395_v9, %v399_v11 }
 0x36d   :  { %7267 = vmatprep.subr.bf16.mxu0 %v9872_v14  ;;  %v910_v13 = vld [vmem:[#allocation7 + $0x16f0] sm:$0xff]  ;;  %v9401_v14 = vcombine.low %v387_v0, %v391_v2 }
 0x36e   :  { %v9920_v19 = vcombine.high %v906_v12, %v910_v13  ;;  %v9919_v27 = vcombine.low %v906_v12, %v910_v13  ;;  %v443_v13 = vld [vmem:[#allocation7 + $0x858] sm:$0xff] }
 0x36f   :  { %7432 = vmatpush1.bf16.msra.mxu1 %v9361_v22  ;;  %v407_v22 = vld [vmem:[#allocation7 + $0x738] sm:$0xff] }
 0x370   :  { %7268 = vmatpush1.bf16.msra.mxu0 %v9871_v23  ;;  %7433 = vmatprep.subr.bf16.mxu1 %v9370_v24  ;;  %v914_v23 = vld [vmem:[#allocation7 + $0x1710] sm:$0xff]  ;;  %v9418_v29 = vcombine.high %v403_v20, %v407_v22 }
 0x371   :  { %7269 = vmatprep.subr.bf16.mxu0 %v9880_v25  ;;  %v918_v24 = vld [vmem:[#allocation7 + $0x1730] sm:$0xff]  ;;  %v9409_v25 = vcombine.low %v395_v9, %v399_v11 }
 0x372   :  { %v9928_v32 = vcombine.high %v914_v23, %v918_v24  ;;  %v9927_v43 = vcombine.low %v914_v23, %v918_v24  ;;  %v451_v24 = vld [vmem:[#allocation7 + $0x898] sm:$0xff] }
 0x373   :  { %7434 = vmatpush1.bf16.msra.mxu1 %v9369_v35  ;;  %v415_v35 = vld [vmem:[#allocation7 + $0x778] sm:$0xff] }
 0x374   :  { %7270 = vmatpush1.bf16.msra.mxu0 %v9879_v38  ;;  %7435 = vmatprep.subr.bf16.mxu1 %v9378_v58  ;;  %v922_v38 = vld [vmem:[#allocation7 + $0x1750] sm:$0xff]  ;;  %v9426_v44 = vcombine.high %v411_v34, %v415_v35 }
 0x375   :  { %7271 = vmatprep.subr.bf16.mxu0 %v9888_v42  ;;  %v926_v58 = vld [vmem:[#allocation7 + $0x1770] sm:$0xff]  ;;  %v9417_v42 = vcombine.low %v403_v20, %v407_v22 }
 0x376   :  { %v9936_v45 = vcombine.high %v922_v38, %v926_v58  ;;  %v9935_v53 = vcombine.low %v922_v38, %v926_v58  ;;  %v459_v58 = vld [vmem:[#allocation7 + $0x8d8] sm:$0xff] }
 0x377   :  { %7436 = vmatpush1.bf16.msra.mxu1 %v9377_v47  ;;  %v423_v47 = vld [vmem:[#allocation7 + $0x7b8] sm:$0xff] }
 0x378   :  { %7272 = vmatpush1.bf16.msra.mxu0 %v9887_v48  ;;  %7437 = vmatprep.subr.bf16.mxu1 %v9386_v50  ;;  %v930_v48 = vld [vmem:[#allocation7 + $0x1790] sm:$0xff]  ;;  %v9434_v16 = vcombine.high %v419_v63, %v423_v47 }
 0x379   :  { %7273 = vmatprep.subr.bf16.mxu0 %v9896_v52  ;;  %v934_v50 = vld [vmem:[#allocation7 + $0x17b0] sm:$0xff]  ;;  %v9425_v52 = vcombine.low %v411_v34, %v415_v35 }
 0x37a   :  { %v9944_v54 = vcombine.high %v930_v48, %v934_v50  ;;  %v9943_v0 = vcombine.low %v930_v48, %v934_v50  ;;  %v467_v48 = vld [vmem:[#allocation7 + $0x918] sm:$0xff] }
 0x37b   :  { %7438 = vmatpush1.bf16.msra.mxu1 %v9385_v56  ;;  %v431_v56 = vld [vmem:[#allocation7 + $0x7f8] sm:$0xff] }
 0x37c   :  { %7274 = vmatpush1.bf16.msra.mxu0 %v9895_v59  ;;  %7439 = vmatprep.subr.bf16.mxu1 %v9394_v60  ;;  %v938_v59 = vld [vmem:[#allocation7 + $0x17d0] sm:$0xff]  ;;  %v9442_v2 = vcombine.high %v427_v55, %v431_v56  ;;  %v471_v50 = vld [vmem:[#allocation7 + $0x938] sm:$0xff] }
 0x37d   :  { %7275 = vmatprep.subr.bf16.mxu0 %v9904_v62  ;;  %v942_v60 = vld [vmem:[#allocation7 + $0x17f0] sm:$0xff]  ;;  %v9433_v62 = vcombine.low %v419_v63, %v423_v47 }
 0x37e   :  { %v9952_v4 = vcombine.high %v938_v59, %v942_v60  ;;  %v9951_v9 = vcombine.low %v938_v59, %v942_v60  ;;  %v479_v59 = vld [vmem:[#allocation7 + $0x978] sm:$0xff]  ;;  %v986_v60 = vld [vmem:[#allocation7 + $0x1950] sm:$0xff] }
 0x37f   :  { %7440 = vmatpush1.bf16.msra.mxu1 %v9393_v28  ;;  %v439_v28 = vld [vmem:[#allocation7 + $0x838] sm:$0xff] }
 0x380   :  { %7276 = vmatpush1.bf16.msra.mxu0 %v9903_v6  ;;  %7441 = vmatprep.subr.bf16.mxu1 %v9402_v8  ;;  %v946_v6 = vld [vmem:[#allocation7 + $0x1810] sm:$0xff]  ;;  %v9450_v11 = vcombine.high %v435_v5, %v439_v28 }
 0x381   :  { %7277 = vmatprep.subr.bf16.mxu0 %v9912_v57  ;;  %v950_v8 = vld [vmem:[#allocation7 + $0x1830] sm:$0xff]  ;;  %v9441_v57 = vcombine.low %v427_v55, %v431_v56  ;;  %v9482_v55 = vcombine.high %v467_v48, %v471_v50  ;;  %v475_v56 = vld [vmem:[#allocation7 + $0x958] sm:$0xff] }
 0x382   :  { %v9960_v12 = vcombine.high %v946_v6, %v950_v8  ;;  %v9959_v20 = vcombine.low %v946_v6, %v950_v8  ;;  %v487_v6 = vld [vmem:[#allocation7 + $0x9b8] sm:$0xff]  ;;  %v994_v8 = vld [vmem:[#allocation7 + $0x1990] sm:$0xff] }
 0x383   :  { %7442 = vmatpush1.bf16.msra.mxu1 %v9401_v14  ;;  %v447_v14 = vld [vmem:[#allocation7 + $0x878] sm:$0xff] }
 0x384   :  { %7278 = vmatpush1.bf16.msra.mxu0 %v9911_v17  ;;  %7443 = vmatprep.subr.bf16.mxu1 %v9410_v18  ;;  %v954_v17 = vld [vmem:[#allocation7 + $0x1850] sm:$0xff]  ;;  %v9458_v22 = vcombine.high %v443_v13, %v447_v14 }
 0x385   :  { %7279 = vmatprep.subr.bf16.mxu0 %v9920_v19  ;;  %v958_v18 = vld [vmem:[#allocation7 + $0x1870] sm:$0xff]  ;;  %v9449_v19 = vcombine.low %v435_v5, %v439_v28  ;;  %v483_v28 = vld [vmem:[#allocation7 + $0x998] sm:$0xff] }
 0x386   :  { %v9968_v23 = vcombine.high %v954_v17, %v958_v18  ;;  %v9967_v34 = vcombine.low %v954_v17, %v958_v18  ;;  %v495_v17 = vld [vmem:[#allocation7 + $0x9f8] sm:$0xff]  ;;  %v1002_v18 = vld [vmem:[#allocation7 + $0x19d0] sm:$0xff] }
 0x387   :  { %7444 = vmatpush1.bf16.msra.mxu1 %v9409_v25  ;;  %v455_v25 = vld [vmem:[#allocation7 + $0x8b8] sm:$0xff] }
 0x388   :  { %7280 = vmatpush1.bf16.msra.mxu0 %v9919_v27  ;;  %7445 = vmatprep.subr.bf16.mxu1 %v9418_v29  ;;  %v962_v27 = vld [vmem:[#allocation7 + $0x1890] sm:$0xff]  ;;  %v9466_v35 = vcombine.high %v451_v24, %v455_v25 }
 0x389   :  { %7281 = vmatprep.subr.bf16.mxu0 %v9928_v32  ;;  %v966_v29 = vld [vmem:[#allocation7 + $0x18b0] sm:$0xff]  ;;  %v9457_v32 = vcombine.low %v443_v13, %v447_v14  ;;  %v491_v14 = vld [vmem:[#allocation7 + $0x9d8] sm:$0xff] }
 0x38a   :  { %v9976_v38 = vcombine.high %v962_v27, %v966_v29 }
 0x38b   :  { %7446 = vmatpush1.bf16.msra.mxu1 %v9417_v42  ;;  %v463_v42 = vld [vmem:[#allocation7 + $0x8f8] sm:$0xff] }
 0x38c   :  { %7282 = vmatpush1.bf16.msra.mxu0 %v9927_v43  ;;  %7447 = vmatprep.subr.bf16.mxu1 %v9426_v44  ;;  %v970_v43 = vld [vmem:[#allocation7 + $0x18d0] sm:$0xff]  ;;  %v9474_v63 = vcombine.high %v459_v58, %v463_v42 }
 0x38d   :  { %7283 = vmatprep.subr.bf16.mxu0 %v9936_v45  ;;  %v974_v44 = vld [vmem:[#allocation7 + $0x18f0] sm:$0xff]  ;;  %v9975_v45 = vcombine.low %v962_v27, %v966_v29  ;;  %v503_v27 = vld [vmem:[#allocation7 + $0xa38] sm:$0xff] }
 0x38e   :  { %v9984_v47 = vcombine.high %v970_v43, %v974_v44  ;;  %v1010_v29 = vld [vmem:[#allocation7 + $0x1a10] sm:$0xff] }
 0x38f   :  { %7448 = vmatpush1.bf16.msra.mxu1 %v9425_v52  ;;  %v978_v52 = vld [vmem:[#allocation7 + $0x1910] sm:$0xff] }
 0x390   :  { %7284 = vmatpush1.bf16.msra.mxu0 %v9935_v53  ;;  %7449 = vmatprep.subr.bf16.mxu1 %v9434_v16  ;;  %v982_v53 = vld [vmem:[#allocation7 + $0x1930] sm:$0xff]  ;;  %v9473_v16 = vcombine.low %v459_v58, %v463_v42  ;;  %v507_v42 = vld [vmem:[#allocation7 + $0xa58] sm:$0xff] }
 0x391   :  { %7285 = vmatprep.subr.bf16.mxu0 %v9944_v54  ;;  %v9983_v54 = vcombine.low %v970_v43, %v974_v44  ;;  %v511_v43 = vld [vmem:[#allocation7 + $0xa78] sm:$0xff]  ;;  %v1018_v44 = vld [vmem:[#allocation7 + $0x1a50] sm:$0xff] }
 0x393   :  { %7450 = vmatpush1.bf16.msra.mxu1 %v9433_v62  ;;  %v990_v62 = vld [vmem:[#allocation7 + $0x1970] sm:$0xff] }
 0x394   :  { %7286 = vmatpush1.bf16.msra.mxu0 %v9943_v0  ;;  %7451 = vmatprep.subr.bf16.mxu1 %v9442_v2  ;;  %v9481_v0 = vcombine.low %v467_v48, %v471_v50  ;;  %v9991_v2 = vcombine.low %v978_v52, %v982_v53  ;;  %v10000_v5 = vcombine.high %v986_v60, %v990_v62  ;;  %v515_v50 = vld [vmem:[#allocation7 + $0xa98] sm:$0xff] }
 0x395   :  { %7287 = vmatprep.subr.bf16.mxu0 %v9952_v4  ;;  %v9490_v4 = vcombine.high %v475_v56, %v479_v59 }
 0x397   :  { %7452 = vmatpush1.bf16.msra.mxu1 %v9441_v57  ;;  %v998_v57 = vld [vmem:[#allocation7 + $0x19b0] sm:$0xff] }
 0x398   :  { %7288 = vmatpush1.bf16.msra.mxu0 %v9951_v9  ;;  %7462 = vmatprep.subr.bf16.mxu1 %v9450_v11  ;;  %v9489_v9 = vcombine.low %v475_v56, %v479_v59  ;;  %v9999_v11 = vcombine.low %v986_v60, %v990_v62  ;;  %v10008_v13 = vcombine.high %v994_v8, %v998_v57  ;;  %v523_v59 = vld [vmem:[#allocation7 + $0xad8] sm:$0xff]  ;;  %v1034_v62 = vld [vmem:[#allocation7 + $0x1ad0] sm:$0xff] }
 0x399   :  { %7298 = vmatprep.subr.bf16.mxu0 %v9960_v12  ;;  %v9498_v12 = vcombine.high %v483_v28, %v487_v6  ;;  %v527_v60 = vld [vmem:[#allocation7 + $0xaf8] sm:$0xff] }
 0x39a   :  { %7454 = vmatmul.mubr.bf16.vlgmr.msra.gmra.mrb[8].mxu1 %v11145_v39  ;;  %v9465_v39 = vcombine.low %v451_v24, %v455_v25  ;;  %v499_v25 = vld [vmem:[#allocation7 + $0xa18] sm:$0xff] }
 0x39b   :  { %7290 = vmatmul.mubr.bf16.vlgmr.msra.gmra.mrb[4].mxu0 %v11163_v30  ;;  %7463 = vmatpush1.bf16.msra.mxu1 %v9449_v19  ;;  %v1006_v19 = vld [vmem:[#allocation7 + $0x19f0] sm:$0xff] }
 0x39c   :  { %7299 = vmatpush1.bf16.msra.mxu0 %v9959_v20  ;;  %7464 = vmatprep.subr.bf16.mxu1 %v9458_v22  ;;  %v9497_v20 = vcombine.low %v483_v28, %v487_v6  ;;  %v10007_v22 = vcombine.low %v994_v8, %v998_v57  ;;  %v10016_v24 = vcombine.high %v1002_v18, %v1006_v19  ;;  %v531_v6 = vld [vmem:[#allocation7 + $0xb18] sm:$0xff]  ;;  %v1042_v57 = vld [vmem:[#allocation7 + $0x1b10] sm:$0xff] }
 0x39d   :  { %7300 = vmatprep.subr.bf16.mxu0 %v9968_v23  ;;  %7330 = vmatprep.mubr.bf16.mxu0 %v11165_v37  ;;  %v9506_v23 = vcombine.high %v491_v14, %v495_v17  ;;  %v535_v8 = vld [vmem:[#allocation7 + $0xb38] sm:$0xff] }
 0x39e   :  { %7494 = vmatprep.mubr.bf16.mxu1 %v11129_v61  ;;  %v9992_v61 = vcombine.high %v978_v52, %v982_v53  ;;  %v519_v52 = vld [vmem:[#allocation7 + $0xab8] sm:$0xff]  ;;  %v1026_v53 = vld [vmem:[#allocation7 + $0x1a90] sm:$0xff] }
 0x39f   :  { %7465 = vmatpush1.bf16.msra.mxu1 %v9457_v32  ;;  %v1014_v32 = vld [vmem:[#allocation7 + $0x1a30] sm:$0xff] }
 0x3a0   :  { %7301 = vmatpush1.bf16.msra.mxu0 %v9967_v34  ;;  %7466 = vmatprep.subr.bf16.mxu1 %v9466_v35  ;;  %v9505_v34 = vcombine.low %v491_v14, %v495_v17  ;;  %v10015_v35 = vcombine.low %v1002_v18, %v1006_v19  ;;  %v10024_v58 = vcombine.high %v1010_v29, %v1014_v32  ;;  %v539_v17 = vld [vmem:[#allocation7 + $0xb58] sm:$0xff]  ;;  %v1050_v19 = vld [vmem:[#allocation7 + $0x1b50] sm:$0xff] }
 0x3a1   :  { %7302 = vmatprep.subr.bf16.mxu0 %v9976_v38  ;;  %v9514_v38 = vcombine.high %v499_v25, %v503_v27  ;;  %v543_v18 = vld [vmem:[#allocation7 + $0xb78] sm:$0xff] }
 0x3a3   :  { %7467 = vmatpush1.bf16.msra.mxu1 %v9465_v39  ;;  %v1022_v39 = vld [vmem:[#allocation7 + $0x1a70] sm:$0xff] }
 0x3a4   :  { %7303 = vmatpush1.bf16.msra.mxu0 %v9975_v45  ;;  %7468 = vmatprep.subr.bf16.mxu1 %v9474_v63  ;;  %v9513_v45 = vcombine.low %v499_v25, %v503_v27  ;;  %v10023_v63 = vcombine.low %v1010_v29, %v1014_v32  ;;  %v10032_v48 = vcombine.high %v1018_v44, %v1022_v39  ;;  %v547_v27 = vld [vmem:[#allocation7 + $0xb98] sm:$0xff]  ;;  %v1058_v32 = vld [vmem:[#allocation7 + $0x1b90] sm:$0xff] }
 0x3a5   :  { %7304 = vmatprep.subr.bf16.mxu0 %v9984_v47  ;;  %v9522_v47 = vcombine.high %v507_v42, %v511_v43  ;;  %v551_v29 = vld [vmem:[#allocation7 + $0xbb8] sm:$0xff] }
 0x3a7   :  { %7469 = vmatpush1.bf16.msra.mxu1 %v9473_v16  ;;  %v1030_v16 = vld [vmem:[#allocation7 + $0x1ab0] sm:$0xff] }
 0x3a8   :  { %7305 = vmatpush1.bf16.msra.mxu0 %v9983_v54  ;;  %7470 = vmatprep.subr.bf16.mxu1 %v9482_v55  ;;  %v9521_v54 = vcombine.low %v507_v42, %v511_v43  ;;  %v10031_v55 = vcombine.low %v1018_v44, %v1022_v39  ;;  %v10040_v56 = vcombine.high %v1026_v53, %v1030_v16  ;;  %v555_v43 = vld [vmem:[#allocation7 + $0xbd8] sm:$0xff]  ;;  %v1066_v39 = vld [vmem:[#allocation7 + $0x1bd0] sm:$0xff] }
 0x3a9   :  { %7306 = vmatprep.subr.bf16.mxu0 %v9992_v61  ;;  %v9530_v61 = vcombine.high %v515_v50, %v519_v52  ;;  %v559_v44 = vld [vmem:[#allocation7 + $0xbf8] sm:$0xff] }
 0x3ab   :  { %7471 = vmatpush1.bf16.msra.mxu1 %v9481_v0  ;;  %v1038_v0 = vld [vmem:[#allocation7 + $0x1af0] sm:$0xff] }
 0x3ac   :  { %7307 = vmatpush1.bf16.msra.mxu0 %v9991_v2  ;;  %7472 = vmatprep.subr.bf16.mxu1 %v9490_v4  ;;  %v9529_v2 = vcombine.low %v515_v50, %v519_v52  ;;  %v10039_v4 = vcombine.low %v1026_v53, %v1030_v16  ;;  %v10048_v28 = vcombine.high %v1034_v62, %v1038_v0  ;;  %v563_v52 = vld [vmem:[#allocation7 + $0xc18] sm:$0xff]  ;;  %v1074_v16 = vld [vmem:[#allocation7 + $0x1c10] sm:$0xff] }
 0x3ad   :  { %7308 = vmatprep.subr.bf16.mxu0 %v10000_v5  ;;  %v9538_v5 = vcombine.high %v523_v59, %v527_v60  ;;  %v567_v53 = vld [vmem:[#allocation7 + $0xc38] sm:$0xff] }
 0x3af   :  { %7473 = vmatpush1.bf16.msra.mxu1 %v9489_v9  ;;  %v1046_v9 = vld [vmem:[#allocation7 + $0x1b30] sm:$0xff] }
 0x3b0   :  { %7309 = vmatpush1.bf16.msra.mxu0 %v9999_v11  ;;  %7474 = vmatprep.subr.bf16.mxu1 %v9498_v12  ;;  %v9537_v11 = vcombine.low %v523_v59, %v527_v60  ;;  %v10047_v12 = vcombine.low %v1034_v62, %v1038_v0  ;;  %v10056_v14 = vcombine.high %v1042_v57, %v1046_v9  ;;  %v571_v60 = vld [vmem:[#allocation7 + $0xc58] sm:$0xff]  ;;  %v1082_v0 = vld [vmem:[#allocation7 + $0x1c50] sm:$0xff] }
 0x3b1   :  { %7310 = vmatprep.subr.bf16.mxu0 %v10008_v13  ;;  %v9546_v13 = vcombine.high %v531_v6, %v535_v8  ;;  %v575_v62 = vld [vmem:[#allocation7 + $0xc78] sm:$0xff] }
 0x3b3   :  { %7475 = vmatpush1.bf16.msra.mxu1 %v9497_v20  ;;  %v1054_v20 = vld [vmem:[#allocation7 + $0x1b70] sm:$0xff] }
 0x3b4   :  { %7311 = vmatpush1.bf16.msra.mxu0 %v10007_v22  ;;  %7476 = vmatprep.subr.bf16.mxu1 %v9506_v23  ;;  %v9545_v22 = vcombine.low %v531_v6, %v535_v8  ;;  %v10055_v23 = vcombine.low %v1042_v57, %v1046_v9  ;;  %v10064_v25 = vcombine.high %v1050_v19, %v1054_v20  ;;  %v579_v8 = vld [vmem:[#allocation7 + $0xc98] sm:$0xff]  ;;  %v1090_v9 = vld [vmem:[#allocation7 + $0x1c90] sm:$0xff] }
 0x3b5   :  { %7312 = vmatprep.subr.bf16.mxu0 %v10016_v24  ;;  %v9554_v24 = vcombine.high %v539_v17, %v543_v18  ;;  %v583_v57 = vld [vmem:[#allocation7 + $0xcb8] sm:$0xff] }
 0x3b7   :  { %7477 = vmatpush1.bf16.msra.mxu1 %v9505_v34  ;;  %v1062_v34 = vld [vmem:[#allocation7 + $0x1bb0] sm:$0xff] }
 0x3b8   :  { %7313 = vmatpush1.bf16.msra.mxu0 %v10015_v35  ;;  %7478 = vmatprep.subr.bf16.mxu1 %v9514_v38  ;;  %v9553_v35 = vcombine.low %v539_v17, %v543_v18  ;;  %v10063_v38 = vcombine.low %v1050_v19, %v1054_v20  ;;  %v10072_v42 = vcombine.high %v1058_v32, %v1062_v34  ;;  %v587_v18 = vld [vmem:[#allocation7 + $0xcd8] sm:$0xff]  ;;  %v1098_v20 = vld [vmem:[#allocation7 + $0x1cd0] sm:$0xff] }
 0x3b9   :  { %7314 = vmatprep.subr.bf16.mxu0 %v10024_v58  ;;  %v9562_v58 = vcombine.high %v547_v27, %v551_v29  ;;  %v591_v19 = vld [vmem:[#allocation7 + $0xcf8] sm:$0xff] }
 0x3bb   :  { %7479 = vmatpush1.bf16.msra.mxu1 %v9513_v45  ;;  %v1070_v45 = vld [vmem:[#allocation7 + $0x1bf0] sm:$0xff] }
 0x3bc   :  { %7315 = vmatpush1.bf16.msra.mxu0 %v10023_v63  ;;  %7480 = vmatprep.subr.bf16.mxu1 %v9522_v47  ;;  %v9561_v63 = vcombine.low %v547_v27, %v551_v29  ;;  %v10071_v47 = vcombine.low %v1058_v32, %v1062_v34  ;;  %v10080_v50 = vcombine.high %v1066_v39, %v1070_v45  ;;  %v595_v27 = vld [vmem:[#allocation7 + $0xd18] sm:$0xff]  ;;  %v1106_v32 = vld [vmem:[#allocation7 + $0x1d10] sm:$0xff] }
 0x3bd   :  { %7316 = vmatprep.subr.bf16.mxu0 %v10032_v48  ;;  %v9570_v48 = vcombine.high %v555_v43, %v559_v44  ;;  %v599_v29 = vld [vmem:[#allocation7 + $0xd38] sm:$0xff]  ;;  %v1110_v34 = vld [vmem:[#allocation7 + $0x1d30] sm:$0xff] }
 0x3bf   :  { %7481 = vmatpush1.bf16.msra.mxu1 %v9521_v54  ;;  %v1078_v54 = vld [vmem:[#allocation7 + $0x1c30] sm:$0xff] }
 0x3c0   :  { %7317 = vmatpush1.bf16.msra.mxu0 %v10031_v55  ;;  %7482 = vmatprep.subr.bf16.mxu1 %v9530_v61  ;;  %v9569_v55 = vcombine.low %v555_v43, %v559_v44  ;;  %v10079_v61 = vcombine.low %v1066_v39, %v1070_v45  ;;  %v10088_v59 = vcombine.high %v1074_v16, %v1078_v54  ;;  %v607_v43 = vld [vmem:[#allocation7 + $0xd78] sm:$0xff]  ;;  %v1114_v44 = vld [vmem:[#allocation7 + $0x1d50] sm:$0xff] }
 0x3c1   :  { %7318 = vmatprep.subr.bf16.mxu0 %v10040_v56  ;;  %v9578_v56 = vcombine.high %v563_v52, %v567_v53  ;;  %v1118_v39 = vld [vmem:[#allocation7 + $0x1d70] sm:$0xff]  ;;  %v9609_v45 = vcombine.low %v595_v27, %v599_v29 }
 0x3c3   :  { %7483 = vmatpush1.bf16.msra.mxu1 %v9529_v2  ;;  %v1086_v2 = vld [vmem:[#allocation7 + $0x1c70] sm:$0xff] }
 0x3c4   :  { %7319 = vmatpush1.bf16.msra.mxu0 %v10039_v4  ;;  %7484 = vmatprep.subr.bf16.mxu1 %v9538_v5  ;;  %v9577_v4 = vcombine.low %v563_v52, %v567_v53  ;;  %v10087_v5 = vcombine.low %v1074_v16, %v1078_v54  ;;  %v10096_v6 = vcombine.high %v1082_v0, %v1086_v2  ;;  %v615_v52 = vld [vmem:[#allocation7 + $0xdb8] sm:$0xff]  ;;  %v1122_v53 = vld [vmem:[#allocation7 + $0x1d90] sm:$0xff] }
 0x3c5   :  { %7320 = vmatprep.subr.bf16.mxu0 %v10048_v28  ;;  %v9586_v28 = vcombine.high %v571_v60, %v575_v62  ;;  %v1126_v16 = vld [vmem:[#allocation7 + $0x1db0] sm:$0xff] }
 0x3c7   :  { %7485 = vmatpush1.bf16.msra.mxu1 %v9537_v11  ;;  %v1094_v11 = vld [vmem:[#allocation7 + $0x1cb0] sm:$0xff] }
 0x3c8   :  { %7321 = vmatpush1.bf16.msra.mxu0 %v10047_v12  ;;  %7486 = vmatprep.subr.bf16.mxu1 %v9546_v13  ;;  %v9585_v12 = vcombine.low %v571_v60, %v575_v62  ;;  %v10095_v13 = vcombine.low %v1082_v0, %v1086_v2  ;;  %v10104_v17 = vcombine.high %v1090_v9, %v1094_v11  ;;  %v619_v60 = vld [vmem:[#allocation7 + $0xdd8] sm:$0xff]  ;;  %v1130_v2 = vld [vmem:[#allocation7 + $0x1dd0] sm:$0xff] }
 0x3c9   :  { %7322 = vmatprep.subr.bf16.mxu0 %v10056_v14  ;;  %v9594_v14 = vcombine.high %v579_v8, %v583_v57  ;;  %v623_v62 = vld [vmem:[#allocation7 + $0xdf8] sm:$0xff] }
 0x3cb   :  { %7487 = vmatpush1.bf16.msra.mxu1 %v9545_v22  ;;  %v1102_v22 = vld [vmem:[#allocation7 + $0x1cf0] sm:$0xff] }
 0x3cc   :  { %7323 = vmatpush1.bf16.msra.mxu0 %v10055_v23  ;;  %7488 = vmatprep.subr.bf16.mxu1 %v9554_v24  ;;  %v10103_v23 = vcombine.low %v1090_v9, %v1094_v11  ;;  %v9602_v24 = vcombine.high %v587_v18, %v591_v19  ;;  %v627_v11 = vld [vmem:[#allocation7 + $0xe18] sm:$0xff] }
 0x3cd   :  { %7324 = vmatprep.subr.bf16.mxu0 %v10064_v25  ;;  %v10112_v25 = vcombine.high %v1098_v20, %v1102_v22 }
 0x3cf   :  { %7489 = vmatpush1.bf16.msra.mxu1 %v9553_v35  ;;  %v9601_v35 = vcombine.low %v587_v18, %v591_v19 }
 0x3d0   :  { %7325 = vmatpush1.bf16.msra.mxu0 %v10063_v38  ;;  %7490 = vmatprep.subr.bf16.mxu1 %v9562_v58  ;;  %v10111_v38 = vcombine.low %v1098_v20, %v1102_v22  ;;  %v9610_v58 = vcombine.high %v595_v27, %v599_v29  ;;  %v635_v22 = vld [vmem:[#allocation7 + $0xe58] sm:$0xff] }
 0x3d1   :  { %7326 = vmatprep.subr.bf16.mxu0 %v10072_v42  ;;  %v603_v42 = vld [vmem:[#allocation7 + $0xd58] sm:$0xff] }
 0x3d2   :  { %v9617_v54 = vcombine.low %v603_v42, %v607_v43 }
 0x3d3   :  { %7491 = vmatpush1.bf16.msra.mxu1 %v9561_v63  ;;  %v10119_v63 = vcombine.low %v1106_v32, %v1110_v34 }
 0x3d4   :  { %7327 = vmatpush1.bf16.msra.mxu0 %v10071_v47  ;;  %7492 = vmatprep.subr.bf16.mxu1 %v9570_v48  ;;  %v9618_v47 = vcombine.high %v603_v42, %v607_v43  ;;  %v10128_v48 = vcombine.high %v1114_v44, %v1118_v39 }
 0x3d5   :  { %7328 = vmatprep.subr.bf16.mxu0 %v10080_v50  ;;  %v611_v50 = vld [vmem:[#allocation7 + $0xd98] sm:$0xff] }
 0x3d7   :  { %7493 = vmatpush1.bf16.msra.mxu1 %v9569_v55  ;;  %v10127_v55 = vcombine.low %v1114_v44, %v1118_v39  ;;  %v651_v39 = vld [vmem:[#allocation7 + $0xed8] sm:$0xff] }
 0x3d8   :  { %7329 = vmatpush1.bf16.msra.mxu0 %v10079_v61  ;;  %7503 = vmatprep.subr.bf16.mxu1 %v9578_v56  ;;  %v9626_v61 = vcombine.high %v611_v50, %v615_v52 }
 0x3d9   :  { %7339 = vmatprep.subr.bf16.mxu0 %v10088_v59  ;;  %v10136_v59 = vcombine.high %v1122_v53, %v1126_v16 }
 0x3da   :  { %7495 = vmatmul.mubr.bf16.vlgmr.msra.gmra.mrb[8].mxu1 %v11135_v21  ;;  %v9593_v21 = vcombine.low %v579_v8, %v583_v57  ;;  %v10135_v8 = vcombine.low %v1122_v53, %v1126_v16  ;;  %v9634_v57 = vcombine.high %v619_v60, %v623_v62  ;;  %v659_v16 = vld [vmem:[#allocation7 + $0xf18] sm:$0xff] }
 0x3db   :  { %7331 = vmatmul.mubr.bf16.vlgmr.msra.gmra.mrb[4].mxu0 %v11171_v3  ;;  %7504 = vmatpush1.bf16.msra.mxu1 %v9577_v4  ;;  %v1134_v4 = vld [vmem:[#allocation7 + $0x1df0] sm:$0xff] }
 0x3dc   :  { %7340 = vmatpush1.bf16.msra.mxu0 %v10087_v5  ;;  %7505 = vmatprep.subr.bf16.mxu1 %v9586_v28  ;;  %v9625_v28 = vcombine.low %v611_v50, %v615_v52  ;;  %v10144_v9 = vcombine.high %v1130_v2, %v1134_v4  ;;  %v10143_v18 = vcombine.low %v1130_v2, %v1134_v4  ;;  %v667_v4 = vld [vmem:[#allocation7 + $0xf58] sm:$0xff] }
 0x3dd   :  { %7341 = vmatprep.subr.bf16.mxu0 %v10096_v6  ;;  %7371 = vmatprep.mubr.bf16.mxu0 %v11173_v10 }
 0x3de   :  { %7535 = vmatprep.mubr.bf16.mxu1 %v11140_v31  ;;  %v10120_v31 = vcombine.high %v1106_v32, %v1110_v34  ;;  %v643_v34 = vld [vmem:[#allocation7 + $0xe98] sm:$0xff] }
 0x3df   :  { %7506 = vmatpush1.bf16.msra.mxu1 %v9585_v12  ;;  %v631_v12 = vld [vmem:[#allocation7 + $0xe38] sm:$0xff] }
 0x3e0   :  { %7342 = vmatpush1.bf16.msra.mxu0 %v10095_v13  ;;  %7507 = vmatprep.subr.bf16.mxu1 %v9594_v14  ;;  %v1138_v13 = vld [vmem:[#allocation7 + $0x1e10] sm:$0xff]  ;;  %v9642_v19 = vcombine.high %v627_v11, %v631_v12 }
 0x3e1   :  { %7343 = vmatprep.subr.bf16.mxu0 %v10104_v17  ;;  %v1142_v14 = vld [vmem:[#allocation7 + $0x1e30] sm:$0xff]  ;;  %v9633_v17 = vcombine.low %v619_v60, %v623_v62 }
 0x3e2   :  { %v10152_v20 = vcombine.high %v1138_v13, %v1142_v14  ;;  %v10151_v27 = vcombine.low %v1138_v13, %v1142_v14  ;;  %v679_v13 = vld [vmem:[#allocation7 + $0xfb8] sm:$0xff]  ;;  %v1186_v14 = vld [vmem:[#allocation7 + $0x1f90] sm:$0xff] }
 0x3e3   :  { %7508 = vmatpush1.bf16.msra.mxu1 %v9593_v21  ;;  %v639_v21 = vld [vmem:[#allocation7 + $0xe78] sm:$0xff] }
 0x3e4   :  { %7344 = vmatpush1.bf16.msra.mxu0 %v10103_v23  ;;  %7509 = vmatprep.subr.bf16.mxu1 %v9602_v24  ;;  %v1146_v23 = vld [vmem:[#allocation7 + $0x1e50] sm:$0xff]  ;;  %v9650_v29 = vcombine.high %v635_v22, %v639_v21 }
 0x3e5   :  { %7345 = vmatprep.subr.bf16.mxu0 %v10112_v25  ;;  %v1150_v24 = vld [vmem:[#allocation7 + $0x1e70] sm:$0xff]  ;;  %v9641_v25 = vcombine.low %v627_v11, %v631_v12  ;;  %v675_v12 = vld [vmem:[#allocation7 + $0xf98] sm:$0xff] }
 0x3e6   :  { %v10160_v32 = vcombine.high %v1146_v23, %v1150_v24  ;;  %v10159_v42 = vcombine.low %v1146_v23, %v1150_v24  ;;  %v687_v23 = vld [vmem:[#allocation7 + $0xff8] sm:$0xff]  ;;  %v1194_v24 = vld [vmem:[#allocation7 + $0x1fd0] sm:$0xff] }
 0x3e7   :  { %7510 = vmatpush1.bf16.msra.mxu1 %v9601_v35  ;;  %v647_v35 = vld [vmem:[#allocation7 + $0xeb8] sm:$0xff] }
 0x3e8   :  { %7346 = vmatpush1.bf16.msra.mxu0 %v10111_v38  ;;  %7511 = vmatprep.subr.bf16.mxu1 %v9610_v58  ;;  %v1154_v38 = vld [vmem:[#allocation7 + $0x1e90] sm:$0xff]  ;;  %v9658_v43 = vcombine.high %v643_v34, %v647_v35 }
 0x3e9   :  { %7347 = vmatprep.subr.bf16.mxu0 %v10120_v31  ;;  %v1158_v58 = vld [vmem:[#allocation7 + $0x1eb0] sm:$0xff]  ;;  %v9649_v31 = vcombine.low %v635_v22, %v639_v21  ;;  %v683_v21 = vld [vmem:[#allocation7 + $0xfd8] sm:$0xff] }
 0x3ea   :  { %v10168_v44 = vcombine.high %v1154_v38, %v1158_v58  ;;  %v10167_v50 = vcombine.low %v1154_v38, %v1158_v58  ;;  %v695_v38 = vld [vmem:[#allocation7 + $0x1038] sm:$0xff]  ;;  %v9697_v58 = vcombine.low %v683_v21, %v687_v23 }
 0x3eb   :  { %7512 = vmatpush1.bf16.msra.mxu1 %v9609_v45  ;;  %v655_v45 = vld [vmem:[#allocation7 + $0xef8] sm:$0xff] }
 0x3ec   :  { %7348 = vmatpush1.bf16.msra.mxu0 %v10119_v63  ;;  %7513 = vmatprep.subr.bf16.mxu1 %v9618_v47  ;;  %v1162_v63 = vld [vmem:[#allocation7 + $0x1ed0] sm:$0xff]  ;;  %v9666_v52 = vcombine.high %v651_v39, %v655_v45 }
 0x3ed   :  { %v11236_v56 = vpop.f32.mrb[4].mxu1  ;;  %7349 = vmatprep.subr.bf16.mxu0 %v10128_v48  ;;  %v1166_v47 = vld [vmem:[#allocation7 + $0x1ef0] sm:$0xff]  ;;  %v9657_v48 = vcombine.low %v643_v34, %v647_v35  ;;  %v691_v35 = vld [vmem:[#allocation7 + $0x1018] sm:$0xff] }
 0x3ee   :  { %v11238_v0 = vpop.f32.mrb[5].mxu1  ;;  %v10176_v53 = vcombine.high %v1162_v63, %v1166_v47  ;;  %v10175_v60 = vcombine.low %v1162_v63, %v1166_v47  ;;  %v707_v63 = vld [vmem:[#allocation7 + $0x1098] sm:$0xff] }
 0x3ef   :  { %v7049_v5 = vpop.f32.mrb[6].mxu1  ;;  %7514 = vmatpush1.bf16.msra.mxu1 %v9617_v54  ;;  %v663_v54 = vld [vmem:[#allocation7 + $0xf38] sm:$0xff] }
 0x3f0   :  { %7350 = vmatpush1.bf16.msra.mxu0 %v10127_v55  ;;  %v7050_v6 = vpop.f32.mrb[7].mxu1  ;;  %7515 = vmatprep.subr.bf16.mxu1 %v9626_v61  ;;  %v1170_v55 = vld [vmem:[#allocation7 + $0x1f10] sm:$0xff]  ;;  %v9674_v62 = vcombine.high %v659_v16, %v663_v54  ;;  %v671_v5 = vld [vmem:[#allocation7 + $0xf78] sm:$0xff] }
 0x3f1   :  { %7351 = vmatprep.subr.bf16.mxu0 %v10136_v59  ;;  %v1174_v61 = vld [vmem:[#allocation7 + $0x1f30] sm:$0xff]  ;;  %v9665_v59 = vcombine.low %v651_v39, %v655_v45  ;;  %v9705_v39 = vcombine.low %v691_v35, %v695_v38  ;;  %v711_v47 = vld [vmem:[#allocation7 + $0x10b8] sm:$0xff] }
 0x3f2   :  { %v10184_v2 = vcombine.high %v1170_v55, %v1174_v61  ;;  %v1182_v6 = vld [vmem:[#allocation7 + $0x1f70] sm:$0xff] }
 0x3f3   :  { %7516 = vmatpush1.bf16.msra.mxu1 %v9625_v28  ;;  %v1178_v28 = vld [vmem:[#allocation7 + $0x1f50] sm:$0xff] }
 0x3f4   :  { %7352 = vmatpush1.bf16.msra.mxu0 %v10135_v8  ;;  %7517 = vmatprep.subr.bf16.mxu1 %v9634_v57  ;;  %v9673_v8 = vcombine.low %v659_v16, %v663_v54  ;;  %v10183_v57 = vcombine.low %v1170_v55, %v1174_v61  ;;  %v10192_v11 = vcombine.high %v1178_v28, %v1182_v6  ;;  %v723_v55 = vld [vmem:[#allocation7 + $0x1118] sm:$0xff] }
 0x3f5   :  { %7353 = vmatprep.subr.bf16.mxu0 %v10144_v9  ;;  %v9682_v9 = vcombine.high %v667_v4, %v671_v5  ;;  %v9721_v16 = vcombine.low %v707_v63, %v711_v47  ;;  %v727_v61 = vld [vmem:[#allocation7 + $0x1138] sm:$0xff] }
 0x3f7   :  { %7518 = vmatpush1.bf16.msra.mxu1 %v9633_v17  ;;  %v1190_v17 = vld [vmem:[#allocation7 + $0x1fb0] sm:$0xff] }
 0x3f8   :  { %7354 = vmatpush1.bf16.msra.mxu0 %v10143_v18  ;;  %7519 = vmatprep.subr.bf16.mxu1 %v9642_v19  ;;  %v9681_v18 = vcombine.low %v667_v4, %v671_v5  ;;  %v10191_v19 = vcombine.low %v1178_v28, %v1182_v6  ;;  %v10200_v22 = vcombine.high %v1186_v14, %v1190_v17  ;;  %v739_v5 = vld [vmem:[#allocation7 + $0x1198] sm:$0xff] }
 0x3f9   :  { %7355 = vmatprep.subr.bf16.mxu0 %v10152_v20  ;;  %v9690_v20 = vcombine.high %v675_v12, %v679_v13 }
 0x3fb   :  { %7520 = vmatpush1.bf16.msra.mxu1 %v9641_v25  ;;  %v1198_v25 = vld [vmem:[#allocation7 + $0x1ff0] sm:$0xff] }
 0x3fc   :  { %7356 = vmatpush1.bf16.msra.mxu0 %v10151_v27  ;;  %7521 = vmatprep.subr.bf16.mxu1 %v9650_v29  ;;  %v9689_v27 = vcombine.low %v675_v12, %v679_v13  ;;  %v10199_v29 = vcombine.low %v1186_v14, %v1190_v17  ;;  %v10208_v34 = vcombine.high %v1194_v24, %v1198_v25  ;;  %v755_v12 = vld [vmem:[#allocation7 + $0x1218] sm:$0xff] }
 0x3fd   :  { %7357 = vmatprep.subr.bf16.mxu0 %v10160_v32  ;;  %v9698_v32 = vcombine.high %v683_v21, %v687_v23  ;;  %v759_v13 = vld [vmem:[#allocation7 + $0x1238] sm:$0xff] }
 0x3fe   :  { %v9770_v17 = vcombine.high %v755_v12, %v759_v13  ;;  %v771_v21 = vld [vmem:[#allocation7 + $0x1298] sm:$0xff] }
 0x3ff   :  { %7522 = vmatpush1.bf16.msra.mxu1 %v9649_v31  ;;  %v10207_v31 = vcombine.low %v1194_v24, %v1198_v25  ;;  %v775_v23 = vld [vmem:[#allocation7 + $0x12b8] sm:$0xff] }
 0x400   :  { %7358 = vmatpush1.bf16.msra.mxu0 %v10159_v42  ;;  %7523 = vmatprep.subr.bf16.mxu1 %v9658_v43  ;;  %v9706_v42 = vcombine.high %v691_v35, %v695_v38  ;;  %v699_v43 = vld [vmem:[#allocation7 + $0x1058] sm:$0xff]  ;;  %v9786_v25 = vcombine.high %v771_v21, %v775_v23 }
 0x401   :  { %7359 = vmatprep.subr.bf16.mxu0 %v10168_v44  ;;  %v703_v44 = vld [vmem:[#allocation7 + $0x1078] sm:$0xff] }
 0x402   :  { %v9714_v45 = vcombine.high %v699_v43, %v703_v44  ;;  %v787_v35 = vld [vmem:[#allocation7 + $0x1318] sm:$0xff] }
 0x403   :  { %7524 = vmatpush1.bf16.msra.mxu1 %v9657_v48  ;;  %v9713_v48 = vcombine.low %v699_v43, %v703_v44  ;;  %v791_v38 = vld [vmem:[#allocation7 + $0x1338] sm:$0xff] }
 0x404   :  { %7360 = vmatpush1.bf16.msra.mxu0 %v10167_v50  ;;  %7525 = vmatprep.subr.bf16.mxu1 %v9666_v52  ;;  %v9722_v50 = vcombine.high %v707_v63, %v711_v47  ;;  %v715_v52 = vld [vmem:[#allocation7 + $0x10d8] sm:$0xff]  ;;  %v9801_v44 = vcombine.low %v787_v35, %v791_v38 }
 0x405   :  { %7361 = vmatprep.subr.bf16.mxu0 %v10176_v53  ;;  %v719_v53 = vld [vmem:[#allocation7 + $0x10f8] sm:$0xff] }
 0x406   :  { %v9730_v54 = vcombine.high %v715_v52, %v719_v53  ;;  %v799_v43 = vld [vmem:[#allocation7 + $0x1378] sm:$0xff] }
 0x407   :  { %7526 = vmatpush1.bf16.msra.mxu1 %v9665_v59  ;;  %v9729_v59 = vcombine.low %v715_v52, %v719_v53  ;;  %v807_v63 = vld [vmem:[#allocation7 + $0x13b8] sm:$0xff] }
 0x408   :  { %7362 = vmatpush1.bf16.msra.mxu0 %v10175_v60  ;;  %7527 = vmatprep.subr.bf16.mxu1 %v9674_v62  ;;  %v731_v60 = vld [vmem:[#allocation7 + $0x1158] sm:$0xff] }
 0x409   :  { %7363 = vmatprep.subr.bf16.mxu0 %v10184_v2  ;;  %v735_v62 = vld [vmem:[#allocation7 + $0x1178] sm:$0xff]  ;;  %v9737_v2 = vcombine.low %v723_v55, %v727_v61 }
 0x40a   :  { %v9746_v4 = vcombine.high %v731_v60, %v735_v62  ;;  %v9745_v28 = vcombine.low %v731_v60, %v735_v62  ;;  %v815_v52 = vld [vmem:[#allocation7 + $0x13f8] sm:$0xff] }
 0x40b   :  { %7528 = vmatpush1.bf16.msra.mxu1 %v9673_v8  ;;  %v747_v8 = vld [vmem:[#allocation7 + $0x11d8] sm:$0xff] }
 0x40c   :  { %7364 = vmatpush1.bf16.msra.mxu0 %v10183_v57  ;;  %7529 = vmatprep.subr.bf16.mxu1 %v9682_v9  ;;  %v751_v57 = vld [vmem:[#allocation7 + $0x11f8] sm:$0xff] }
 0x40d   :  { %7365 = vmatprep.subr.bf16.mxu0 %v10192_v11  ;;  %v9762_v11 = vcombine.high %v747_v8, %v751_v57  ;;  %v9761_v14 = vcombine.low %v747_v8, %v751_v57  ;;  %v831_v60 = vld [vmem:[#allocation7 + $0x1478] sm:$0xff] }
 0x40e   :  { %v847_v8 = vld [vmem:[#allocation7 + $0x14f8] sm:$0xff] }
 0x40f   :  { %7530 = vmatpush1.bf16.msra.mxu1 %v9681_v18  ;;  %v763_v18 = vld [vmem:[#allocation7 + $0x1258] sm:$0xff] }
 0x410   :  { %7366 = vmatpush1.bf16.msra.mxu0 %v10191_v19  ;;  %7531 = vmatprep.subr.bf16.mxu1 %v9690_v20  ;;  %v767_v19 = vld [vmem:[#allocation7 + $0x1278] sm:$0xff]  ;;  %v9769_v20 = vcombine.low %v755_v12, %v759_v13 }
 0x411   :  { %7367 = vmatprep.subr.bf16.mxu0 %v10200_v22  ;;  %v9778_v22 = vcombine.high %v763_v18, %v767_v19  ;;  %v9777_v24 = vcombine.low %v763_v18, %v767_v19  ;;  %v855_v12 = vld [vmem:[#allocation7 + $0x1538] sm:$0xff] }
 0x412   :  { %v867_v19 = vld [vmem:[#allocation7 + $0x1598] sm:$0xff] }
 0x413   :  { %7532 = vmatpush1.bf16.msra.mxu1 %v9689_v27  ;;  %v779_v27 = vld [vmem:[#allocation7 + $0x12d8] sm:$0xff] }
 0x414   :  { %7368 = vmatpush1.bf16.msra.mxu0 %v10199_v29  ;;  %7533 = vmatprep.subr.bf16.mxu1 %v9698_v32  ;;  %v783_v29 = vld [vmem:[#allocation7 + $0x12f8] sm:$0xff]  ;;  %v9785_v32 = vcombine.low %v771_v21, %v775_v23 }
 0x415   :  { %7369 = vmatprep.subr.bf16.mxu0 %v10208_v34  ;;  %v9794_v34 = vcombine.high %v779_v27, %v783_v29  ;;  %v875_v23 = vld [vmem:[#allocation7 + $0x15d8] sm:$0xff] }
 0x417   :  { %7534 = vmatpush1.bf16.msra.mxu1 %v9697_v58  ;;  %v9793_v58 = vcombine.low %v779_v27, %v783_v29  ;;  %v883_v29 = vld [vmem:[#allocation7 + $0x1618] sm:$0xff] }
 0x418   :  { %7370 = vmatpush1.bf16.msra.mxu0 %v10207_v31  ;;  %7544 = vmatprep.subr.bf16.mxu1 %v9706_v42  ;;  %v9802_v31 = vcombine.high %v787_v35, %v791_v38  ;;  %v795_v42 = vld [vmem:[#allocation7 + $0x1358] sm:$0xff] }
 0x419   :  { %v9809_v47 = vcombine.low %v795_v42, %v799_v43  ;;  %v891_v38 = vld [vmem:[#allocation7 + $0x1658] sm:$0xff] }
 0x41a   :  { %7536 = vmatmul.mubr.bf16.vlgmr.msra.gmra.mrb[8].mxu1 %v11147_v41  ;;  %v9738_v41 = vcombine.high %v723_v55, %v727_v61  ;;  %v823_v55 = vld [vmem:[#allocation7 + $0x1438] sm:$0xff] }
 0x41b   :  { %7372 = vmatmul.mubr.bf16.vlgmr.msra.gmra.mrb[4].mxu0 %v11183_v51  ;;  %7545 = vmatpush1.bf16.msra.mxu1 %v9705_v39  ;;  %v9810_v39 = vcombine.high %v795_v42, %v799_v43  ;;  %v899_v43 = vld [vmem:[#allocation7 + $0x1698] sm:$0xff] }
 0x41c   :  { %7546 = vmatprep.subr.bf16.mxu1 %v9714_v45  ;;  %7576 = vmatprep.mubr.bf16.mxu1 %v11149_v49  ;;  %v743_v49 = vld [vmem:[#allocation7 + $0x11b8] sm:$0xff] }
 0x41d   :  { %v9754_v6 = vcombine.high %v739_v5, %v743_v49  ;;  %v9753_v9 = vcombine.low %v739_v5, %v743_v49  ;;  %v803_v45 = vld [vmem:[#allocation7 + $0x1398] sm:$0xff] }
 0x41e   :  { %v9817_v53 = vcombine.low %v803_v45, %v807_v63  ;;  %v839_v5 = vld [vmem:[#allocation7 + $0x14b8] sm:$0xff] }
 0x41f   :  { %7547 = vmatpush1.bf16.msra.mxu1 %v9713_v48  ;;  %v9818_v48 = vcombine.high %v803_v45, %v807_v63  ;;  %v907_v63 = vld [vmem:[#allocation7 + $0x16d8] sm:$0xff] }
 0x420   :  { %7548 = vmatprep.subr.bf16.mxu1 %v9722_v50  ;;  %v811_v50 = vld [vmem:[#allocation7 + $0x13d8] sm:$0xff] }
 0x421   :  { %v9825_v61 = vcombine.low %v811_v50, %v815_v52 }
 0x423   :  { %7549 = vmatpush1.bf16.msra.mxu1 %v9721_v16  ;;  %v9826_v16 = vcombine.high %v811_v50, %v815_v52  ;;  %v915_v52 = vld [vmem:[#allocation7 + $0x1718] sm:$0xff] }
 0x424   :  { %7550 = vmatprep.subr.bf16.mxu1 %v9730_v54  ;;  %v819_v54 = vld [vmem:[#allocation7 + $0x1418] sm:$0xff] }
 0x425   :  { %v9833_v62 = vcombine.low %v819_v54, %v823_v55 }
 0x427   :  { %7551 = vmatpush1.bf16.msra.mxu1 %v9729_v59  ;;  %v9834_v59 = vcombine.high %v819_v54, %v823_v55  ;;  %v923_v55 = vld [vmem:[#allocation7 + $0x1758] sm:$0xff] }
 0x428   :  { %7552 = vmatprep.subr.bf16.mxu1 %v9738_v41  ;;  %v827_v41 = vld [vmem:[#allocation7 + $0x1458] sm:$0xff] }
 0x429   :  { %v9841_v49 = vcombine.low %v827_v41, %v831_v60 }
 0x42b   :  { %7553 = vmatpush1.bf16.msra.mxu1 %v9737_v2  ;;  %v9842_v2 = vcombine.high %v827_v41, %v831_v60  ;;  %v931_v60 = vld [vmem:[#allocation7 + $0x1798] sm:$0xff] }
 0x42c   :  { %7554 = vmatprep.subr.bf16.mxu1 %v9746_v4  ;;  %v835_v4 = vld [vmem:[#allocation7 + $0x1498] sm:$0xff] }
 0x42d   :  { %v9849_v57 = vcombine.low %v835_v4, %v839_v5 }
 0x42f   :  { %7555 = vmatpush1.bf16.msra.mxu1 %v9745_v28  ;;  %v9850_v28 = vcombine.high %v835_v4, %v839_v5  ;;  %v939_v5 = vld [vmem:[#allocation7 + $0x17d8] sm:$0xff] }
 0x430   :  { %7556 = vmatprep.subr.bf16.mxu1 %v9754_v6  ;;  %v843_v6 = vld [vmem:[#allocation7 + $0x14d8] sm:$0xff] }
 0x431   :  { %v9857_v13 = vcombine.low %v843_v6, %v847_v8 }
 0x433   :  { %7557 = vmatpush1.bf16.msra.mxu1 %v9753_v9  ;;  %v9858_v9 = vcombine.high %v843_v6, %v847_v8  ;;  %v947_v8 = vld [vmem:[#allocation7 + $0x1818] sm:$0xff] }
 0x434   :  { %7558 = vmatprep.subr.bf16.mxu1 %v9762_v11  ;;  %v851_v11 = vld [vmem:[#allocation7 + $0x1518] sm:$0xff] }
 0x435   :  { %v9865_v18 = vcombine.low %v851_v11, %v855_v12 }
 0x437   :  { %7559 = vmatpush1.bf16.msra.mxu1 %v9761_v14  ;;  %v9866_v14 = vcombine.high %v851_v11, %v855_v12  ;;  %v955_v12 = vld [vmem:[#allocation7 + $0x1858] sm:$0xff] }
 0x438   :  { %7560 = vmatprep.subr.bf16.mxu1 %v9770_v17  ;;  %v859_v17 = vld [vmem:[#allocation7 + $0x1558] sm:$0xff] }
 0x43b   :  { %7561 = vmatpush1.bf16.msra.mxu1 %v9769_v20  ;;  %v871_v20 = vld [vmem:[#allocation7 + $0x15b8] sm:$0xff] }
 0x43c   :  { %7562 = vmatprep.subr.bf16.mxu1 %v9778_v22  ;;  %v9882_v21 = vcombine.high %v867_v19, %v871_v20 }
 0x43f   :  { %7563 = vmatpush1.bf16.msra.mxu1 %v9777_v24  ;;  %v879_v24 = vld [vmem:[#allocation7 + $0x15f8] sm:$0xff] }
 0x440   :  { %7564 = vmatprep.subr.bf16.mxu1 %v9786_v25  ;;  %v9881_v25 = vcombine.low %v867_v19, %v871_v20  ;;  %v9890_v27 = vcombine.high %v875_v23, %v879_v24  ;;  %v971_v20 = vld [vmem:[#allocation7 + $0x18d8] sm:$0xff] }
 0x443   :  { %7565 = vmatpush1.bf16.msra.mxu1 %v9785_v32  ;;  %v887_v32 = vld [vmem:[#allocation7 + $0x1638] sm:$0xff] }
 0x444   :  { %7566 = vmatprep.subr.bf16.mxu1 %v9794_v34  ;;  %v9889_v34 = vcombine.low %v875_v23, %v879_v24  ;;  %v9898_v35 = vcombine.high %v883_v29, %v887_v32  ;;  %v979_v24 = vld [vmem:[#allocation7 + $0x1918] sm:$0xff] }
 0x447   :  { %7567 = vmatpush1.bf16.msra.mxu1 %v9793_v58  ;;  %v895_v58 = vld [vmem:[#allocation7 + $0x1678] sm:$0xff] }
 0x448   :  { %7568 = vmatprep.subr.bf16.mxu1 %v9802_v31  ;;  %v9897_v31 = vcombine.low %v883_v29, %v887_v32  ;;  %v9906_v42 = vcombine.high %v891_v38, %v895_v58  ;;  %v987_v32 = vld [vmem:[#allocation7 + $0x1958] sm:$0xff] }
 0x44b   :  { %7569 = vmatpush1.bf16.msra.mxu1 %v9801_v44  ;;  %v903_v44 = vld [vmem:[#allocation7 + $0x16b8] sm:$0xff] }
 0x44c   :  { %7570 = vmatprep.subr.bf16.mxu1 %v9810_v39  ;;  %v9905_v39 = vcombine.low %v891_v38, %v895_v58  ;;  %v9914_v45 = vcombine.high %v899_v43, %v903_v44  ;;  %v999_v38 = vld [vmem:[#allocation7 + $0x19b8] sm:$0xff] }
 0x44f   :  { %7571 = vmatpush1.bf16.msra.mxu1 %v9809_v47  ;;  %v911_v47 = vld [vmem:[#allocation7 + $0x16f8] sm:$0xff] }
 0x450   :  { %7572 = vmatprep.subr.bf16.mxu1 %v9818_v48  ;;  %v9913_v48 = vcombine.low %v899_v43, %v903_v44  ;;  %v9922_v50 = vcombine.high %v907_v63, %v911_v47  ;;  %v1007_v43 = vld [vmem:[#allocation7 + $0x19f8] sm:$0xff] }
 0x453   :  { %7573 = vmatpush1.bf16.msra.mxu1 %v9817_v53  ;;  %v919_v53 = vld [vmem:[#allocation7 + $0x1738] sm:$0xff] }
 0x454   :  { %7574 = vmatprep.subr.bf16.mxu1 %v9826_v16  ;;  %v9921_v16 = vcombine.low %v907_v63, %v911_v47  ;;  %v9930_v54 = vcombine.high %v915_v52, %v919_v53  ;;  %v1015_v63 = vld [vmem:[#allocation7 + $0x1a38] sm:$0xff] }
 0x457   :  { %7575 = vmatpush1.bf16.msra.mxu1 %v9825_v61  ;;  %v927_v61 = vld [vmem:[#allocation7 + $0x1778] sm:$0xff] }
 0x458   :  { %7585 = vmatprep.subr.bf16.mxu1 %v9834_v59  ;;  %v9929_v59 = vcombine.low %v915_v52, %v919_v53  ;;  %v9938_v41 = vcombine.high %v923_v55, %v927_v61  ;;  %v1023_v52 = vld [vmem:[#allocation7 + $0x1a78] sm:$0xff] }
 0x45a   :  { %7577 = vmatmul.mubr.bf16.vlgmr.msra.gmra.mrb[8].mxu1 %v11155_v1  ;;  %v863_v1 = vld [vmem:[#allocation7 + $0x1578] sm:$0xff] }
 0x45b   :  { %7586 = vmatpush1.bf16.msra.mxu1 %v9833_v62  ;;  %7617 = vmatprep.mubr.bf16.mxu1 %v11157_v7  ;;  %v9874_v7 = vcombine.high %v859_v17, %v863_v1  ;;  %v9873_v22 = vcombine.low %v859_v17, %v863_v1  ;;  %v935_v62 = vld [vmem:[#allocation7 + $0x17b8] sm:$0xff] }
 0x45c   :  { %7587 = vmatprep.subr.bf16.mxu1 %v9842_v2  ;;  %v9937_v2 = vcombine.low %v923_v55, %v927_v61  ;;  %v9946_v4 = vcombine.high %v931_v60, %v935_v62  ;;  %v963_v1 = vld [vmem:[#allocation7 + $0x1898] sm:$0xff] }
 0x45d   :  { %v1031_v55 = vld [vmem:[#allocation7 + $0x1ab8] sm:$0xff] }
 0x45f   :  { %7588 = vmatpush1.bf16.msra.mxu1 %v9841_v49  ;;  %v943_v49 = vld [vmem:[#allocation7 + $0x17f8] sm:$0xff] }
 0x460   :  { %7589 = vmatprep.subr.bf16.mxu1 %v9850_v28  ;;  %v9945_v28 = vcombine.low %v931_v60, %v935_v62  ;;  %v9954_v6 = vcombine.high %v939_v5, %v943_v49  ;;  %v1039_v60 = vld [vmem:[#allocation7 + $0x1af8] sm:$0xff] }
 0x463   :  { %7590 = vmatpush1.bf16.msra.mxu1 %v9849_v57  ;;  %v951_v57 = vld [vmem:[#allocation7 + $0x1838] sm:$0xff] }
 0x464   :  { %7591 = vmatprep.subr.bf16.mxu1 %v9858_v9  ;;  %v9953_v9 = vcombine.low %v939_v5, %v943_v49  ;;  %v9962_v11 = vcombine.high %v947_v8, %v951_v57  ;;  %v1047_v5 = vld [vmem:[#allocation7 + $0x1b38] sm:$0xff] }
 0x467   :  { %7592 = vmatpush1.bf16.msra.mxu1 %v9857_v13  ;;  %v959_v13 = vld [vmem:[#allocation7 + $0x1878] sm:$0xff] }
 0x468   :  { %7593 = vmatprep.subr.bf16.mxu1 %v9866_v14  ;;  %v9961_v14 = vcombine.low %v947_v8, %v951_v57  ;;  %v9970_v17 = vcombine.high %v955_v12, %v959_v13  ;;  %v1055_v8 = vld [vmem:[#allocation7 + $0x1b78] sm:$0xff] }
 0x46b   :  { %7594 = vmatpush1.bf16.msra.mxu1 %v9865_v18  ;;  %v967_v18 = vld [vmem:[#allocation7 + $0x18b8] sm:$0xff] }
 0x46c   :  { %7595 = vmatprep.subr.bf16.mxu1 %v9874_v7  ;;  %v9969_v7 = vcombine.low %v955_v12, %v959_v13  ;;  %v9978_v19 = vcombine.high %v963_v1, %v967_v18  ;;  %v1063_v12 = vld [vmem:[#allocation7 + $0x1bb8] sm:$0xff] }
 0x46f   :  { %7596 = vmatpush1.bf16.msra.mxu1 %v9873_v22  ;;  %v975_v22 = vld [vmem:[#allocation7 + $0x18f8] sm:$0xff] }
 0x470   :  { %7597 = vmatprep.subr.bf16.mxu1 %v9882_v21  ;;  %v9977_v21 = vcombine.low %v963_v1, %v967_v18  ;;  %v9986_v23 = vcombine.high %v971_v20, %v975_v22  ;;  %v1071_v1 = vld [vmem:[#allocation7 + $0x1bf8] sm:$0xff] }
 0x473   :  { %7598 = vmatpush1.bf16.msra.mxu1 %v9881_v25  ;;  %v983_v25 = vld [vmem:[#allocation7 + $0x1938] sm:$0xff] }
 0x474   :  { %7599 = vmatprep.subr.bf16.mxu1 %v9890_v27  ;;  %v9985_v27 = vcombine.low %v971_v20, %v975_v22  ;;  %v9994_v29 = vcombine.high %v979_v24, %v983_v25  ;;  %v1079_v20 = vld [vmem:[#allocation7 + $0x1c38] sm:$0xff] }
 0x477   :  { %7600 = vmatpush1.bf16.msra.mxu1 %v9889_v34  ;;  %v9993_v34 = vcombine.low %v979_v24, %v983_v25  ;;  %v1087_v24 = vld [vmem:[#allocation7 + $0x1c78] sm:$0xff] }
 0x478   :  { %7601 = vmatprep.subr.bf16.mxu1 %v9898_v35  ;;  %v995_v35 = vld [vmem:[#allocation7 + $0x1998] sm:$0xff] }
 0x479   :  { %v10009_v44 = vcombine.low %v995_v35, %v999_v38 }
 0x47b   :  { %7602 = vmatpush1.bf16.msra.mxu1 %v9897_v31  ;;  %v10010_v31 = vcombine.high %v995_v35, %v999_v38  ;;  %v1103_v35 = vld [vmem:[#allocation7 + $0x1cf8] sm:$0xff] }
 0x47c   :  { %7603 = vmatprep.subr.bf16.mxu1 %v9906_v42  ;;  %v1003_v42 = vld [vmem:[#allocation7 + $0x19d8] sm:$0xff] }
 0x47d   :  { %v10017_v47 = vcombine.low %v1003_v42, %v1007_v43 }
 0x47f   :  { %7604 = vmatpush1.bf16.msra.mxu1 %v9905_v39  ;;  %v10018_v39 = vcombine.high %v1003_v42, %v1007_v43  ;;  %v1111_v42 = vld [vmem:[#allocation7 + $0x1d38] sm:$0xff] }
 0x480   :  { %7605 = vmatprep.subr.bf16.mxu1 %v9914_v45  ;;  %v1011_v45 = vld [vmem:[#allocation7 + $0x1a18] sm:$0xff] }
 0x481   :  { %v10025_v53 = vcombine.low %v1011_v45, %v1015_v63 }
 0x483   :  { %7606 = vmatpush1.bf16.msra.mxu1 %v9913_v48  ;;  %v10026_v48 = vcombine.high %v1011_v45, %v1015_v63  ;;  %v1123_v63 = vld [vmem:[#allocation7 + $0x1d98] sm:$0xff] }
 0x484   :  { %7607 = vmatprep.subr.bf16.mxu1 %v9922_v50  ;;  %v1019_v50 = vld [vmem:[#allocation7 + $0x1a58] sm:$0xff] }
 0x485   :  { %v10033_v61 = vcombine.low %v1019_v50, %v1023_v52 }
 0x487   :  { %7608 = vmatpush1.bf16.msra.mxu1 %v9921_v16  ;;  %v10034_v16 = vcombine.high %v1019_v50, %v1023_v52  ;;  %v1131_v52 = vld [vmem:[#allocation7 + $0x1dd8] sm:$0xff] }
 0x488   :  { %7609 = vmatprep.subr.bf16.mxu1 %v9930_v54  ;;  %v1027_v54 = vld [vmem:[#allocation7 + $0x1a98] sm:$0xff] }
 0x489   :  { %v10041_v62 = vcombine.low %v1027_v54, %v1031_v55 }
 0x48b   :  { %7610 = vmatpush1.bf16.msra.mxu1 %v9929_v59  ;;  %v10042_v59 = vcombine.high %v1027_v54, %v1031_v55 }
 0x48c   :  { %7611 = vmatprep.subr.bf16.mxu1 %v9938_v41  ;;  %v1035_v41 = vld [vmem:[#allocation7 + $0x1ad8] sm:$0xff] }
 0x48d   :  { %v10049_v49 = vcombine.low %v1035_v41, %v1039_v60 }
 0x48f   :  { %7612 = vmatpush1.bf16.msra.mxu1 %v9937_v2  ;;  %v10050_v2 = vcombine.high %v1035_v41, %v1039_v60  ;;  %v1139_v60 = vld [vmem:[#allocation7 + $0x1e18] sm:$0xff] }
 0x490   :  { %7613 = vmatprep.subr.bf16.mxu1 %v9946_v4  ;;  %v1043_v4 = vld [vmem:[#allocation7 + $0x1b18] sm:$0xff] }
 0x491   :  { %v10057_v57 = vcombine.low %v1043_v4, %v1047_v5 }
 0x493   :  { %7614 = vmatpush1.bf16.msra.mxu1 %v9945_v28  ;;  %v10058_v28 = vcombine.high %v1043_v4, %v1047_v5  ;;  %v1147_v5 = vld [vmem:[#allocation7 + $0x1e58] sm:$0xff] }
 0x494   :  { %7615 = vmatprep.subr.bf16.mxu1 %v9954_v6  ;;  %v1051_v6 = vld [vmem:[#allocation7 + $0x1b58] sm:$0xff] }
 0x495   :  { %v10065_v13 = vcombine.low %v1051_v6, %v1055_v8 }
 0x497   :  { %7616 = vmatpush1.bf16.msra.mxu1 %v9953_v9  ;;  %v10066_v9 = vcombine.high %v1051_v6, %v1055_v8  ;;  %v1155_v8 = vld [vmem:[#allocation7 + $0x1e98] sm:$0xff] }
 0x498   :  { %7626 = vmatprep.subr.bf16.mxu1 %v9962_v11  ;;  %v1059_v11 = vld [vmem:[#allocation7 + $0x1b98] sm:$0xff] }
 0x499   :  { %v10073_v18 = vcombine.low %v1059_v11, %v1063_v12 }
 0x49a   :  { %7618 = vmatmul.mubr.bf16.vlgmr.msra.gmra.mrb[8].mxu1 %v11163_v30  ;;  %v991_v30 = vld [vmem:[#allocation7 + $0x1978] sm:$0xff] }
 0x49b   :  { %7627 = vmatpush1.bf16.msra.mxu1 %v9961_v14  ;;  %7658 = vmatprep.mubr.bf16.mxu1 %v11165_v37  ;;  %v10002_v37 = vcombine.high %v987_v32, %v991_v30  ;;  %v10001_v58 = vcombine.low %v987_v32, %v991_v30  ;;  %v10074_v14 = vcombine.high %v1059_v11, %v1063_v12  ;;  %v1095_v32 = vld [vmem:[#allocation7 + $0x1cb8] sm:$0xff] }
 0x49c   :  { %7628 = vmatprep.subr.bf16.mxu1 %v9970_v17  ;;  %v1067_v17 = vld [vmem:[#allocation7 + $0x1bd8] sm:$0xff] }
 0x49d   :  { %v10081_v22 = vcombine.low %v1067_v17, %v1071_v1  ;;  %v1163_v12 = vld [vmem:[#allocation7 + $0x1ed8] sm:$0xff] }
 0x49f   :  { %7629 = vmatpush1.bf16.msra.mxu1 %v9969_v7  ;;  %v10082_v7 = vcombine.high %v1067_v17, %v1071_v1  ;;  %v1171_v1 = vld [vmem:[#allocation7 + $0x1f18] sm:$0xff] }
 0x4a0   :  { %7630 = vmatprep.subr.bf16.mxu1 %v9978_v19  ;;  %v1075_v19 = vld [vmem:[#allocation7 + $0x1c18] sm:$0xff] }
 0x4a1   :  { %v10089_v25 = vcombine.low %v1075_v19, %v1079_v20 }
 0x4a3   :  { %7631 = vmatpush1.bf16.msra.mxu1 %v9977_v21  ;;  %v10090_v21 = vcombine.high %v1075_v19, %v1079_v20  ;;  %v1179_v20 = vld [vmem:[#allocation7 + $0x1f58] sm:$0xff] }
 0x4a4   :  { %7632 = vmatprep.subr.bf16.mxu1 %v9986_v23  ;;  %v1083_v23 = vld [vmem:[#allocation7 + $0x1c58] sm:$0xff] }
 0x4a5   :  { %v10097_v30 = vcombine.low %v1083_v23, %v1087_v24 }
 0x4a7   :  { %7633 = vmatpush1.bf16.msra.mxu1 %v9985_v27  ;;  %v10098_v27 = vcombine.high %v1083_v23, %v1087_v24  ;;  %v1187_v24 = vld [vmem:[#allocation7 + $0x1f98] sm:$0xff] }
 0x4a8   :  { %7634 = vmatprep.subr.bf16.mxu1 %v9994_v29  ;;  %v1091_v29 = vld [vmem:[#allocation7 + $0x1c98] sm:$0xff] }
 0x4a9   :  { %v10105_v38 = vcombine.low %v1091_v29, %v1095_v32 }
 0x4ab   :  { %7635 = vmatpush1.bf16.msra.mxu1 %v9993_v34  ;;  %v10106_v34 = vcombine.high %v1091_v29, %v1095_v32  ;;  %v1195_v32 = vld [vmem:[#allocation7 + $0x1fd8] sm:$0xff] }
 0x4ac   :  { %7636 = vmatprep.subr.bf16.mxu1 %v10002_v37  ;;  %v1099_v37 = vld [vmem:[#allocation7 + $0x1cd8] sm:$0xff] }
 0x4ad   :  { %v10113_v43 = vcombine.low %v1099_v37, %v1103_v35 }
 0x4af   :  { %7637 = vmatpush1.bf16.msra.mxu1 %v10001_v58  ;;  %v10114_v58 = vcombine.high %v1099_v37, %v1103_v35 }
 0x4b0   :  { %7638 = vmatprep.subr.bf16.mxu1 %v10010_v31  ;;  %v1107_v31 = vld [vmem:[#allocation7 + $0x1d18] sm:$0xff] }
 0x4b1   :  { %v10121_v45 = vcombine.low %v1107_v31, %v1111_v42 }
 0x4b3   :  { %7639 = vmatpush1.bf16.msra.mxu1 %v10009_v44  ;;  %v10122_v44 = vcombine.high %v1107_v31, %v1111_v42  ;;  %v11258_v31 = vld [vmem:[#allocation12 + $0x10] sm:$0x77] }
 0x4b4   :  { %7640 = vmatprep.subr.bf16.mxu1 %v10018_v39  ;;  %v1115_v39 = vld [vmem:[#allocation7 + $0x1d58] sm:$0xff] }
 0x4b7   :  { %7641 = vmatpush1.bf16.msra.mxu1 %v10017_v47  ;;  %v1127_v47 = vld [vmem:[#allocation7 + $0x1db8] sm:$0xff] }
 0x4b8   :  { %7642 = vmatprep.subr.bf16.mxu1 %v10026_v48  ;;  %v10138_v50 = vcombine.high %v1123_v63, %v1127_v47  ;;  %v10137_v55 = vcombine.low %v1123_v63, %v1127_v47  ;;  %v11274_v63 = vld [vmem:[#allocation12 + $0x18] sm:$0x77] }
 0x4bb   :  { %7643 = vmatpush1.bf16.msra.mxu1 %v10025_v53  ;;  %v1135_v53 = vld [vmem:[#allocation7 + $0x1df8] sm:$0xff] }
 0x4bc   :  { %7644 = vmatprep.subr.bf16.mxu1 %v10034_v16 }
 0x4bf   :  { %7645 = vmatpush1.bf16.msra.mxu1 %v10033_v61 }
 0x4c0   :  { %7646 = vmatprep.subr.bf16.mxu1 %v10042_v59  ;;  %v10146_v59 = vcombine.high %v1131_v52, %v1135_v53 }
 0x4c3   :  { %7647 = vmatpush1.bf16.msra.mxu1 %v10041_v62  ;;  %v1143_v62 = vld [vmem:[#allocation7 + $0x1e38] sm:$0xff] }
 0x4c4   :  { %7648 = vmatprep.subr.bf16.mxu1 %v10050_v2  ;;  %v10145_v2 = vcombine.low %v1131_v52, %v1135_v53  ;;  %v10154_v4 = vcombine.high %v1139_v60, %v1143_v62  ;;  %v1231_v52 = vrot.slane %v11274_v63, %v11205_v40  ;;  %v1235_v53 = vrot.slane %v11274_v63, %v11208_v46 }
 0x4c7   :  { %7649 = vmatpush1.bf16.msra.mxu1 %v10049_v49  ;;  %v1151_v49 = vld [vmem:[#allocation7 + $0x1e78] sm:$0xff] }
 0x4c8   :  { %7650 = vmatprep.subr.bf16.mxu1 %v10058_v28  ;;  %v10153_v28 = vcombine.low %v1139_v60, %v1143_v62  ;;  %v10162_v6 = vcombine.high %v1147_v5, %v1151_v49 }
 0x4cb   :  { %7651 = vmatpush1.bf16.msra.mxu1 %v10057_v57  ;;  %v1159_v57 = vld [vmem:[#allocation7 + $0x1eb8] sm:$0xff] }
 0x4cc   :  { %7652 = vmatprep.subr.bf16.mxu1 %v10066_v9  ;;  %v10161_v9 = vcombine.low %v1147_v5, %v1151_v49  ;;  %v10170_v11 = vcombine.high %v1155_v8, %v1159_v57 }
 0x4cf   :  { %7653 = vmatpush1.bf16.msra.mxu1 %v10065_v13  ;;  %v1167_v13 = vld [vmem:[#allocation7 + $0x1ef8] sm:$0xff] }
 0x4d0   :  { %7654 = vmatprep.subr.bf16.mxu1 %v10074_v14  ;;  %v10169_v14 = vcombine.low %v1155_v8, %v1159_v57  ;;  %v10178_v17 = vcombine.high %v1163_v12, %v1167_v13  ;;  %v10529_v8 = vld [vmem:[#allocation9] ss:$8 sps:$4 sm:$0xff]   ;;  %v10534_v57 = vld [vmem:[#allocation9 + $0x14] ss:$8 sps:$4 sm:$0xff]  }
 0x4d3   :  { %7655 = vmatpush1.bf16.msra.mxu1 %v10073_v18  ;;  %v1175_v18 = vld [vmem:[#allocation7 + $0x1f38] sm:$0xff] }
 0x4d4   :  { %7656 = vmatprep.subr.bf16.mxu1 %v10082_v7  ;;  %v10177_v7 = vcombine.low %v1163_v12, %v1167_v13  ;;  %v10186_v19 = vcombine.high %v1171_v1, %v1175_v18  ;;  %v10535_v12 = vld [vmem:[#allocation9 + $0x20] ss:$8 sps:$4 sm:$0xff]   ;;  %v10540_v13 = vld [vmem:[#allocation9 + $0x34] ss:$8 sps:$4 sm:$0xff]  }
 0x4d7   :  { %7657 = vmatpush1.bf16.msra.mxu1 %v10081_v22  ;;  %v1183_v22 = vld [vmem:[#allocation7 + $0x1f78] sm:$0xff] }
 0x4d8   :  { %7667 = vmatprep.subr.bf16.mxu1 %v10090_v21  ;;  %v10185_v21 = vcombine.low %v1171_v1, %v1175_v18  ;;  %v10194_v23 = vcombine.high %v1179_v20, %v1183_v22  ;;  %v10541_v1 = vld [vmem:[#allocation9 + $0x40] ss:$8 sps:$4 sm:$0xff]   ;;  %v10546_v18 = vld [vmem:[#allocation9 + $0x54] ss:$8 sps:$4 sm:$0xff]  }
 0x4da   :  { %7659 = vmatmul.mubr.bf16.vlgmr.msra.gmra.mrb[8].mxu1 %v11171_v3  ;;  %v1119_v3 = vld [vmem:[#allocation7 + $0x1d78] sm:$0xff] }
 0x4db   :  { %7668 = vmatpush1.bf16.msra.mxu1 %v10089_v25  ;;  %7699 = vmatprep.mubr.bf16.mxu1 %v11173_v10  ;;  %v10130_v10 = vcombine.high %v1115_v39, %v1119_v3  ;;  %v10129_v48 = vcombine.low %v1115_v39, %v1119_v3  ;;  %v1191_v25 = vld [vmem:[#allocation7 + $0x1fb8] sm:$0xff]  ;;  %v7708_v3 = vadd.f32 %v11218_v36, %v11216_v33 }
 0x4dc   :  { %7669 = vmatprep.subr.bf16.mxu1 %v10098_v27  ;;  %v10193_v27 = vcombine.low %v1179_v20, %v1183_v22  ;;  %v10202_v29 = vcombine.high %v1187_v24, %v1191_v25  ;;  %v10547_v20 = vld [vmem:[#allocation9 + $0x60] ss:$8 sps:$4 sm:$0xff]   ;;  %v10552_v22 = vld [vmem:[#allocation9 + $0x74] ss:$8 sps:$4 sm:$0xff]  }
 0x4df   :  { %7670 = vmatpush1.bf16.msra.mxu1 %v10097_v30  ;;  %v1199_v30 = vld [vmem:[#allocation7 + $0x1ff8] sm:$0xff] }
 0x4e0   :  { %7671 = vmatprep.subr.bf16.mxu1 %v10106_v34  ;;  %v10201_v34 = vcombine.low %v1187_v24, %v1191_v25  ;;  %v10210_v37 = vcombine.high %v1195_v32, %v1199_v30  ;;  %v10209_v35 = vcombine.low %v1195_v32, %v1199_v30  ;;  %v10553_v24 = vld [vmem:[#allocation9 + $0x80] ss:$8 sps:$4 sm:$0xff]   ;;  %v10558_v25 = vld [vmem:[#allocation9 + $0x94] ss:$8 sps:$4 sm:$0xff]  }
 0x4e3   :  { %7672 = vmatpush1.bf16.msra.mxu1 %v10105_v38  ;;  %v11254_v38 = vld [vmem:[#allocation12 + $0x8] sm:$0x77] }
 0x4e4   :  { %7673 = vmatprep.subr.bf16.mxu1 %v10114_v58  ;;  %v1215_v58 = vrot.slane %v11254_v38, %v11205_v40 }
 0x4e6   :  { %v1255_v42 = vrot.slane %v1215_v58, %v11205_v40 }
 0x4e7   :  { %7674 = vmatpush1.bf16.msra.mxu1 %v10113_v43  ;;  %v1219_v43 = vrot.slane %v11254_v38, %v11208_v46 }
 0x4e8   :  { %7675 = vmatprep.subr.bf16.mxu1 %v10122_v44  ;;  %v1223_v44 = vrot.slane %v11258_v31, %v11205_v40  ;;  %v11266_v39 = vadd.f32 %v11236_v56, %v1255_v42 }
 0x4ea   :  { %v7709_v47 = vadd.f32 %v11266_v39, %v7708_v3 }
 0x4eb   :  { %7676 = vmatpush1.bf16.msra.mxu1 %v10121_v45  ;;  %v1263_v45 = vrot.slane %v1223_v44, %v11205_v40 }
 0x4ec   :  { %7677 = vmatprep.subr.bf16.mxu1 %v10130_v10  ;;  %v1227_v10 = vrot.slane %v11258_v31, %v11208_v46 }
 0x4ee   :  { %v11249_v16 = vpop.f32.mrb[4].mxu0 }
 0x4ef   :  { %v11251_v54 = vpop.f32.mrb[5].mxu0  ;;  %7678 = vmatpush1.bf16.msra.mxu1 %v10129_v48  ;;  %v11281_v56 = vadd.f32 %v11249_v16, %v1263_v45  ;;  %v1275_v16 = vrot.slane %v1235_v53, %v11205_v40 }
 0x4f0   :  { %v7377_v61 = vpop.f32.mrb[6].mxu0  ;;  %7679 = vmatprep.subr.bf16.mxu1 %v10138_v50  ;;  %v1267_v50 = vrot.slane %v1227_v10, %v11205_v40 }
 0x4f1   :  { %v7378_v41 = vpop.f32.mrb[7].mxu0 }
 0x4f3   :  { %7680 = vmatpush1.bf16.msra.mxu1 %v10137_v55 }
 0x4f4   :  { %7681 = vmatprep.subr.bf16.mxu1 %v10146_v59  ;;  %v11291_v59 = vadd.f32 %v11251_v54, %v1267_v50  ;;  %v10531_v54 = vld [vmem:[#allocation9 + $0x4] ss:$8 sps:$4 sm:$0xff]  }
 0x4f5   :  { %8718 = vmatprep.subr.bf16.mxu0 %v10531_v54 }
 0x4f6   :  { %8719 = vmatpush1.bf16.msra.mxu0 %v10529_v8  ;;  %v10579_v8 = vld [vmem:[#allocation9 + $0x104] ss:$8 sps:$4 sm:$0xff]  }
 0x4f7   :  { %7682 = vmatpush1.bf16.msra.mxu1 %v10145_v2  ;;  %8720 = vmatprep.subr.bf16.mxu0 %v10534_v57 }
 0x4f8   :  { %7683 = vmatprep.subr.bf16.mxu1 %v10154_v4 }
 0x4fb   :  { %7684 = vmatpush1.bf16.msra.mxu1 %v10153_v28 }
 0x4fc   :  { %7685 = vmatprep.subr.bf16.mxu1 %v10162_v6 }
 0x4ff   :  { %7686 = vmatpush1.bf16.msra.mxu1 %v10161_v9  ;;  %v10532_v9 = vld [vmem:[#allocation9 + $0x10] ss:$8 sps:$4 sm:$0xff]  }
 0x500   :  { %7687 = vmatprep.subr.bf16.mxu1 %v10170_v11  ;;  %v10537_v11 = vld [vmem:[#allocation9 + $0x24] ss:$8 sps:$4 sm:$0xff]   ;;  %8721 = vmatpush1.bf16.msra.mxu0 %v10532_v9 }
 0x501   :  { %8722 = vmatprep.subr.bf16.mxu0 %v10537_v11  ;;  %v11339_v11 = vsub.s32 1, %v11200_v26 }
 0x503   :  { %7688 = vmatpush1.bf16.msra.mxu1 %v10169_v14  ;;  %v10538_v14 = vld [vmem:[#allocation9 + $0x30] ss:$8 sps:$4 sm:$0xff]  }
 0x504   :  { %7689 = vmatprep.subr.bf16.mxu1 %v10178_v17  ;;  %8723 = vmatpush1.bf16.msra.mxu0 %v10535_v12  ;;  %v10543_v17 = vld [vmem:[#allocation9 + $0x44] ss:$8 sps:$4 sm:$0xff]   ;;  %v11342_v12 = vsub.s32 5, %v11200_v26 }
 0x505   :  { %8724 = vmatprep.subr.bf16.mxu0 %v10540_v13  ;;  %v11345_v13 = vsub.s32 2, %v11200_v26 }
 0x507   :  { %7690 = vmatpush1.bf16.msra.mxu1 %v10177_v7  ;;  %v10544_v7 = vld [vmem:[#allocation9 + $0x50] ss:$8 sps:$4 sm:$0xff]  }
 0x508   :  { %7691 = vmatprep.subr.bf16.mxu1 %v10186_v19  ;;  %8725 = vmatpush1.bf16.msra.mxu0 %v10538_v14  ;;  %v10549_v19 = vld [vmem:[#allocation9 + $0x64] ss:$8 sps:$4 sm:$0xff]   ;;  %v11348_v14 = vsub.s32 6, %v11200_v26 }
 0x509   :  { %8726 = vmatprep.subr.bf16.mxu0 %v10543_v17  ;;  %v10741_v17 = vld [vmem:[#allocation12] sm:$0x77] }
 0x50b   :  { %7692 = vmatpush1.bf16.msra.mxu1 %v10185_v21  ;;  %v10550_v21 = vld [vmem:[#allocation9 + $0x70] ss:$8 sps:$4 sm:$0xff]  }
 0x50c   :  { %7693 = vmatprep.subr.bf16.mxu1 %v10194_v23  ;;  %8727 = vmatpush1.bf16.msra.mxu0 %v10541_v1  ;;  %v10555_v23 = vld [vmem:[#allocation9 + $0x84] ss:$8 sps:$4 sm:$0xff]   ;;  %v7762_v1 = vrot.slane %v10741_v17, %v11342_v12 }
 0x50d   :  { %8728 = vmatprep.subr.bf16.mxu0 %v10546_v18  ;;  %v7758_v18 = vrot.slane %v10741_v17, %v11339_v11 }
 0x50f   :  { %7694 = vmatpush1.bf16.msra.mxu1 %v10193_v27  ;;  %v10556_v27 = vld [vmem:[#allocation9 + $0x90] ss:$8 sps:$4 sm:$0xff]  }
 0x510   :  { %7695 = vmatprep.subr.bf16.mxu1 %v10202_v29  ;;  %8729 = vmatpush1.bf16.msra.mxu0 %v10544_v7  ;;  %v7770_v7 = vrot.slane %v11254_v38, %v11342_v12 }
 0x511   :  { %8730 = vmatprep.subr.bf16.mxu0 %v10549_v19  ;;  %v7842_v19 = vrot.slane %v10741_v17, %v11348_v14 }
 0x513   :  { %7696 = vmatpush1.bf16.msra.mxu1 %v10201_v34 }
 0x514   :  { %7697 = vmatprep.subr.bf16.mxu1 %v10210_v37  ;;  %8731 = vmatpush1.bf16.msra.mxu0 %v10547_v20  ;;  %v7838_v20 = vrot.slane %v10741_v17, %v11345_v13  ;;  %v10609_v17 = vld [vmem:[#allocation9 + $0x1a4] ss:$8 sps:$4 sm:$0xff]  }
 0x515   :  { %8732 = vmatprep.subr.bf16.mxu0 %v10552_v22  ;;  %v7850_v22 = vrot.slane %v11254_v38, %v11348_v14 }
 0x517   :  { %7698 = vmatpush1.bf16.msra.mxu1 %v10209_v35 }
 0x518   :  { %8733 = vmatpush1.bf16.msra.mxu0 %v10550_v21  ;;  %v7802_v21 = vrot.slane %v7762_v1, %v11339_v11  ;;  %v10607_v1 = vld [vmem:[#allocation9 + $0x1a0] ss:$8 sps:$4 sm:$0xff]  }
 0x519   :  { %8734 = vmatprep.subr.bf16.mxu0 %v10555_v23  ;;  %v7798_v23 = vrot.slane %v7758_v18, %v11339_v11  ;;  %v10612_v18 = vld [vmem:[#allocation9 + $0x1b4] ss:$8 sps:$4 sm:$0xff]  }
 0x51a   :  { %7700 = vmatmul.mubr.bf16.vlgmr.msra.gmra.mrb[8].mxu1 %v11183_v51  ;;  %v1259_v51 = vrot.slane %v1219_v43, %v11205_v40 }
 0x51c   :  { %v11278_v48 = vadd.f32 %v11238_v0, %v1259_v51  ;;  %v1271_v0 = vrot.slane %v1231_v52, %v11205_v40  ;;  %8735 = vmatpush1.bf16.msra.mxu0 %v10553_v24  ;;  %v7810_v24 = vrot.slane %v7770_v7, %v11339_v11  ;;  %v10610_v7 = vld [vmem:[#allocation9 + $0x1b0] ss:$8 sps:$4 sm:$0xff]  }
 0x51d   :  { %8736 = vmatprep.subr.bf16.mxu0 %v10558_v25 }
 0x51e   :  { %v7710_v55 = vadd.f32 %v11278_v48, %v7709_v47 }
 0x520   :  { %v7711_v61 = vadd.f32 %v11281_v56, %v7710_v55  ;;  %8737 = vmatpush1.bf16.msra.mxu0 %v10556_v27  ;;  %v7882_v27 = vrot.slane %v7842_v19, %v11345_v13  ;;  %v10615_v19 = vld [vmem:[#allocation9 + $0x1c4] ss:$8 sps:$4 sm:$0xff]  }
 0x522   :  { %v7712_v60 = vadd.f32 %v11291_v59, %v7711_v61 }
 0x5ed   :  { %v7701_v41 = vpop.f32.mrb[8].mxu1 }
 0x5ee   :  { %v10386_v62 = vadd.f32 %v7701_v41, %v1271_v0  ;;  %v7703_v2 = vpop.f32.mrb[9].mxu1  ;;  %v10559_v0 = vld [vmem:[#allocation9 + $0xa0] ss:$8 sps:$4 sm:$0xff]   ;;  %v10564_v41 = vld [vmem:[#allocation9 + $0xb4] ss:$8 sps:$4 sm:$0xff]  }
 0x5ef   :  { %v11296_v4 = vadd.f32 %v7703_v2, %v1275_v16  ;;  %v7705_v5 = vpop.f32.mrb[10].mxu1  ;;  %v10562_v16 = vld [vmem:[#allocation9 + $0xb0] ss:$8 sps:$4 sm:$0xff]   ;;  %v10570_v2 = vld [vmem:[#allocation9 + $0xd4] ss:$8 sps:$4 sm:$0xff]  }
 0x5f0   :  { %v7706_v49 = vpop.f32.mrb[11].mxu1  ;;  %v7713_v28 = vadd.f32 %v10386_v62, %v7712_v60  ;;  %v10567_v60 = vld [vmem:[#allocation9 + $0xc4] ss:$8 sps:$4 sm:$0xff]  }
 0x5f1   :  { %v10573_v5 = vld [vmem:[#allocation9 + $0xe4] ss:$8 sps:$4 sm:$0xff]   ;;  %v10571_v49 = vld [vmem:[#allocation9 + $0xe0] ss:$8 sps:$4 sm:$0xff]  }
 0x5f2   :  { %v7714_v6 = vadd.f32 %v11296_v4, %v7713_v28  ;;  %v10576_v28 = vld [vmem:[#allocation9 + $0xf4] ss:$8 sps:$4 sm:$0xff]  }
 0x5f4   :  { %7715 = vadd.xlane.f32.xlu0 %v7714_v6  ;;  %v10574_v6 = vld [vmem:[#allocation9 + $0xf0] ss:$8 sps:$4 sm:$0xff]  }
 0x681   :  { %v7716_v29 = vpop.xlane.xlu0 %7715 }
 0x682   :  { %v7718_v32 = vmul.f32 0.0009765625, %v7716_v29  ;;  %v7878_v29 = vrot.slane %v7838_v20, %v11345_v13  ;;  %v7766_v20 = vrot.slane %v11254_v38, %v11339_v11 }
 0x684   :  { %v11300_v30 = vsub.f32 %v11216_v33, %v7718_v32  ;;  %v11303_v34 = vsub.f32 %v11218_v36, %v7718_v32  ;;  %v11306_v37 = vsub.f32 %v11266_v39, %v7718_v32  ;;  %v11309_v35 = vsub.f32 %v11278_v48, %v7718_v32 }
 0x685   :  { %v11316_v43 = vsub.f32 %v11281_v56, %v7718_v32  ;;  %v11321_v44 = vsub.f32 %v11291_v59, %v7718_v32  ;;  %v11325_v3 = vsub.f32 %v10386_v62, %v7718_v32  ;;  %v11330_v47 = vsub.f32 %v11296_v4, %v7718_v32  ;;  %v10561_v59 = vld [vmem:[#allocation9 + $0xa4] ss:$8 sps:$4 sm:$0xff]   ;;  %v10565_v62 = vld [vmem:[#allocation9 + $0xc0] ss:$8 sps:$4 sm:$0xff]   ;;  %v10568_v4 = vld [vmem:[#allocation9 + $0xd0] ss:$8 sps:$4 sm:$0xff]  }
 0x686   :  { %v7727_v58 = vmul.f32 %v11300_v30, %v11300_v30  ;;  %v7728_v42 = vmul.f32 %v11303_v34, %v11303_v34  ;;  %v7729_v33 = vmul.f32 %v11306_v37, %v11306_v37  ;;  %v7730_v39 = vmul.f32 %v11309_v35, %v11309_v35  ;;  %8738 = vmatprep.subr.bf16.mxu0 %v10561_v59  ;;  %v10585_v59 = vld [vmem:[#allocation9 + $0x124] ss:$8 sps:$4 sm:$0xff]  }
 0x687   :  { %v7731_v45 = vmul.f32 %v11316_v43, %v11316_v43  ;;  %v7732_v48 = vmul.f32 %v11321_v44, %v11321_v44  ;;  %v7733_v50 = vmul.f32 %v11325_v3, %v11325_v3  ;;  %v7734_v53 = vmul.f32 %v11330_v47, %v11330_v47  ;;  %8739 = vmatpush1.bf16.msra.mxu0 %v10559_v0  ;;  %v10583_v0 = vld [vmem:[#allocation9 + $0x120] ss:$8 sps:$4 sm:$0xff]  }
 0x688   :  { %v7735_v36 = vadd.f32 %v7728_v42, %v7727_v58  ;;  %8740 = vmatprep.subr.bf16.mxu0 %v10564_v41  ;;  %v10586_v41 = vld [vmem:[#allocation9 + $0x130] ss:$8 sps:$4 sm:$0xff]  }
 0x68a   :  { %v7736_v51 = vadd.f32 %v7735_v36, %v7729_v33  ;;  %v7890_v33 = vrot.slane %v7850_v22, %v11345_v13  ;;  %v7778_v22 = vrot.slane %v11258_v31, %v11342_v12 }
 0x68b   :  { %8741 = vmatpush1.bf16.msra.mxu0 %v10562_v16  ;;  %v10588_v16 = vld [vmem:[#allocation9 + $0x134] ss:$8 sps:$4 sm:$0xff]  }
 0x68c   :  { %v7737_v10 = vadd.f32 %v7736_v51, %v7730_v39  ;;  %8742 = vmatprep.subr.bf16.mxu0 %v10567_v60  ;;  %v10591_v60 = vld [vmem:[#allocation9 + $0x144] ss:$8 sps:$4 sm:$0xff]  }
 0x68e   :  { %v7738_v56 = vadd.f32 %v7737_v10, %v7731_v45 }
 0x68f   :  { %8743 = vmatpush1.bf16.msra.mxu0 %v10565_v62  ;;  %v10589_v62 = vld [vmem:[#allocation9 + $0x140] ss:$8 sps:$4 sm:$0xff]  }
 0x690   :  { %v7739_v52 = vadd.f32 %v7738_v56, %v7732_v48  ;;  %8744 = vmatprep.subr.bf16.mxu0 %v10570_v2  ;;  %v10594_v2 = vld [vmem:[#allocation9 + $0x154] ss:$8 sps:$4 sm:$0xff]  }
 0x692   :  { %v7740_v55 = vadd.f32 %v7739_v52, %v7733_v50 }
 0x693   :  { %8745 = vmatpush1.bf16.msra.mxu0 %v10568_v4  ;;  %v10592_v4 = vld [vmem:[#allocation9 + $0x150] ss:$8 sps:$4 sm:$0xff]  }
 0x694   :  { %v7741_v61 = vadd.f32 %v7740_v55, %v7734_v53  ;;  %8746 = vmatprep.subr.bf16.mxu0 %v10573_v5  ;;  %v10577_v55 = vld [vmem:[#allocation9 + $0x100] ss:$8 sps:$4 sm:$0xff]   ;;  %v10597_v5 = vld [vmem:[#allocation9 + $0x164] ss:$8 sps:$4 sm:$0xff]  }
 0x696   :  { %7742 = vadd.xlane.f32.xlu0 %v7741_v61  ;;  %v10582_v61 = vld [vmem:[#allocation9 + $0x114] ss:$8 sps:$4 sm:$0xff]  }
 0x697   :  { %8747 = vmatpush1.bf16.msra.mxu0 %v10571_v49  ;;  %v10595_v49 = vld [vmem:[#allocation9 + $0x160] ss:$8 sps:$4 sm:$0xff]  }
 0x698   :  { %8748 = vmatprep.subr.bf16.mxu0 %v10576_v28  ;;  %v10600_v28 = vld [vmem:[#allocation9 + $0x174] ss:$8 sps:$4 sm:$0xff]  }
 0x69b   :  { %8749 = vmatpush1.bf16.msra.mxu0 %v10574_v6  ;;  %v10598_v6 = vld [vmem:[#allocation9 + $0x170] ss:$8 sps:$4 sm:$0xff]  }
 0x69c   :  { %8759 = vmatprep.subr.bf16.mxu0 %v10579_v8  ;;  %v10603_v8 = vld [vmem:[#allocation9 + $0x184] ss:$8 sps:$4 sm:$0xff]  }
 0x723   :  { %v7743_v54 = vpop.xlane.xlu0 %7742 }
 0x724   :  { %v7744_v57 = vmul.f32 0.0009765625, %v7743_v54  ;;  %v10601_v54 = vld [vmem:[#allocation9 + $0x180] ss:$8 sps:$4 sm:$0xff]  }
 0x726   :  { %v7745_v9 = vadd.f32 1e-05, %v7744_v57  ;;  %v10606_v57 = vld [vmem:[#allocation9 + $0x194] ss:$8 sps:$4 sm:$0xff]  }
 0x728   :  { %10737 = vrsqrt.f32 %v7745_v9  ;;  %v10604_v9 = vld [vmem:[#allocation9 + $0x190] ss:$8 sps:$4 sm:$0xff]  }
 0x732   :  { %v11361_v25 = vpop.eup %10737 }
 0x733   :  { %v7748_v32 = vmul.f32 %v11361_v25, %v11303_v34  ;;  %v7747_v58 = vmul.f32 %v11361_v25, %v11300_v30  ;;  %v7750_v42 = vmul.f32 %v11361_v25, %v11309_v35  ;;  %v10580_v35 = vld [vmem:[#allocation9 + $0x110] ss:$8 sps:$4 sm:$0xff]  }
 0x735   :  { %v7828_v36 = vmul.f32 %v7802_v21, %v7748_v32  ;;  %v7827_v39 = vmul.f32 %v7798_v23, %v7747_v58  ;;  %v7830_v51 = vmul.f32 %v7810_v24, %v7750_v42  ;;  %v10613_v21 = vld [vmem:[#allocation9 + $0x1c0] ss:$8 sps:$4 sm:$0xff]   ;;  %v10618_v23 = vld [vmem:[#allocation9 + $0x1d4] ss:$8 sps:$4 sm:$0xff]   ;;  %v7749_v24 = vmul.f32 %v11361_v25, %v11306_v37 }
 0x736   :  { %v7752_v32 = vmul.f32 %v11361_v25, %v11321_v44  ;;  %v7818_v58 = vrot.slane %v7778_v22, %v11339_v11  ;;  %v7858_v42 = vrot.slane %v11258_v31, %v11348_v14  ;;  %v7786_v22 = vrot.slane %v11274_v63, %v11342_v12 }
 0x737   :  { %v7908_v45 = vadd.f32 %v7882_v27, %v7828_v36  ;;  %v7907_v10 = vadd.f32 %v7878_v29, %v7827_v39  ;;  %v7910_v48 = vadd.f32 %v7890_v33, %v7830_v51  ;;  %v7806_v27 = vrot.slane %v7766_v20, %v11339_v11  ;;  %v10616_v33 = vld [vmem:[#allocation9 + $0x1d0] ss:$8 sps:$4 sm:$0xff]   ;;  %v10621_v36 = vld [vmem:[#allocation9 + $0x1e4] ss:$8 sps:$4 sm:$0xff]  }
 0x738   :  { %v7846_v29 = vrot.slane %v11254_v38, %v11345_v13  ;;  %v7832_v51 = vmul.f32 %v7818_v58, %v7752_v32  ;;  %v10619_v38 = vld [vmem:[#allocation9 + $0x1e0] ss:$8 sps:$4 sm:$0xff]   ;;  %v7774_v20 = vrot.slane %v11258_v31, %v11339_v11  ;;  %v7754_v32 = vmul.f32 %v11361_v25, %v11330_v47 }
 0x739   :  { %v7916_v56 = vmax.f32 %v7908_v45, 0.0  ;;  %v7915_v50 = vmax.f32 %v7907_v10, 0.0  ;;  %v7918_v52 = vmax.f32 %v7910_v48, 0.0  ;;  %v7829_v39 = vmul.f32 %v7806_v27, %v7749_v24  ;;  %v10624_v10 = vld [vmem:[#allocation9 + $0x1f4] ss:$8 sps:$4 sm:$0xff]  }
 0x73a   :  { %v7886_v37 = vrot.slane %v7846_v29, %v11345_v13  ;;  %v7898_v45 = vrot.slane %v7858_v42, %v11345_v13  ;;  %v7751_v24 = vmul.f32 %v11361_v25, %v11316_v43  ;;  %v7814_v27 = vrot.slane %v7774_v20, %v11339_v11 }
 0x73b   :  { %v7924_v53 = vpack.c.bf16 %v7916_v56, %v7916_v56  ;;  %v7923_v34 = vpack.c.bf16 %v7915_v50, %v7915_v50  ;;  %v7926_v30 = vpack.c.bf16 %v7918_v52, %v7918_v52  ;;  %v10622_v56 = vld [vmem:[#allocation9 + $0x1f0] ss:$8 sps:$4 sm:$0xff]   ;;  %v10627_v52 = vld [vmem:[#allocation9 + $0x204] ss:$8 sps:$4 sm:$0xff]   ;;  %v7854_v29 = vrot.slane %v11258_v31, %v11345_v13  ;;  %v10667_v31 = vld [vmem:[#allocation9 + $0x2e0] ss:$8 sps:$4 sm:$0xff]  }
 0x73c   :  { %v7909_v44 = vadd.f32 %v7886_v37, %v7829_v39  ;;  %v7912_v48 = vadd.f32 %v7898_v45, %v7832_v51  ;;  %v7826_v58 = vrot.slane %v7786_v22, %v11339_v11  ;;  %v7866_v42 = vrot.slane %v11274_v63, %v11348_v14  ;;  %v10672_v45 = vld [vmem:[#allocation9 + $0x2f4] ss:$8 sps:$4 sm:$0xff]  }
 0x73d   :  { %8750 = vmatprep.mubr.bf16.mxu0 %v7924_v53  ;;  %v7831_v39 = vmul.f32 %v7814_v27, %v7751_v24  ;;  %v7894_v43 = vrot.slane %v7854_v29, %v11345_v13  ;;  %v7753_v20 = vmul.f32 %v11361_v25, %v11325_v3  ;;  %v10717_v24 = vld [vmem:[#allocation9 + $0x3e4] ss:$8 sps:$4 sm:$0xff]  }
 0x73e   :  { %8751 = vmatmul.mubr.bf16.vlgmr.msra.gmra.mrb[8].mxu0 %v7923_v34  ;;  %v7917_v50 = vmax.f32 %v7909_v44, 0.0  ;;  %v7920_v53 = vmax.f32 %v7912_v48, 0.0  ;;  %v7834_v37 = vmul.f32 %v7826_v58, %v7754_v32  ;;  %v7906_v51 = vrot.slane %v7866_v42, %v11345_v13  ;;  %v10675_v48 = vld [vmem:[#allocation9 + $0x304] ss:$8 sps:$4 sm:$0xff]   ;;  %v10715_v32 = vld [vmem:[#allocation9 + $0x3e0] ss:$8 sps:$4 sm:$0xff]  }
 0x73f   :  { %8760 = vmatpush1.bf16.msra.mxu0 %v10577_v55  ;;  %8791 = vmatprep.mubr.bf16.mxu0 %v7926_v30  ;;  %v10625_v55 = vld [vmem:[#allocation9 + $0x200] ss:$8 sps:$4 sm:$0xff]   ;;  %v7911_v47 = vadd.f32 %v7894_v43, %v7831_v39  ;;  %v10720_v58 = vld [vmem:[#allocation9 + $0x3f4] ss:$8 sps:$4 sm:$0xff]  }
 0x740   :  { %8761 = vmatprep.subr.bf16.mxu0 %v10582_v61  ;;  %v7925_v34 = vpack.c.bf16 %v7917_v50, %v7917_v50  ;;  %v10630_v61 = vld [vmem:[#allocation9 + $0x214] ss:$8 sps:$4 sm:$0xff]   ;;  %v7928_v30 = vpack.c.bf16 %v7920_v53, %v7920_v53  ;;  %v10673_v50 = vld [vmem:[#allocation9 + $0x300] ss:$8 sps:$4 sm:$0xff]  }
 0x741   :  { %v7919_v44 = vmax.f32 %v7911_v47, 0.0  ;;  %v10678_v53 = vld [vmem:[#allocation9 + $0x314] ss:$8 sps:$4 sm:$0xff]  }
 0x743   :  { %8762 = vmatpush1.bf16.msra.mxu0 %v10580_v35  ;;  %v10628_v35 = vld [vmem:[#allocation9 + $0x210] ss:$8 sps:$4 sm:$0xff]  }
 0x744   :  { %8763 = vmatprep.subr.bf16.mxu0 %v10585_v59  ;;  %v10633_v59 = vld [vmem:[#allocation9 + $0x224] ss:$8 sps:$4 sm:$0xff]  }
 0x747   :  { %8764 = vmatpush1.bf16.msra.mxu0 %v10583_v0  ;;  %v10631_v0 = vld [vmem:[#allocation9 + $0x220] ss:$8 sps:$4 sm:$0xff]  }
 0x748   :  { %8765 = vmatprep.subr.bf16.mxu0 %v10588_v16  ;;  %v10636_v16 = vld [vmem:[#allocation9 + $0x234] ss:$8 sps:$4 sm:$0xff]  }
 0x74b   :  { %8766 = vmatpush1.bf16.msra.mxu0 %v10586_v41  ;;  %v10634_v41 = vld [vmem:[#allocation9 + $0x230] ss:$8 sps:$4 sm:$0xff]  }
 0x74c   :  { %8767 = vmatprep.subr.bf16.mxu0 %v10591_v60  ;;  %v10639_v60 = vld [vmem:[#allocation9 + $0x244] ss:$8 sps:$4 sm:$0xff]  }
 0x74f   :  { %8768 = vmatpush1.bf16.msra.mxu0 %v10589_v62  ;;  %v10637_v62 = vld [vmem:[#allocation9 + $0x240] ss:$8 sps:$4 sm:$0xff]  }
 0x750   :  { %8769 = vmatprep.subr.bf16.mxu0 %v10594_v2  ;;  %v10642_v2 = vld [vmem:[#allocation9 + $0x254] ss:$8 sps:$4 sm:$0xff]  }
 0x753   :  { %8770 = vmatpush1.bf16.msra.mxu0 %v10592_v4  ;;  %v10640_v4 = vld [vmem:[#allocation9 + $0x250] ss:$8 sps:$4 sm:$0xff]  }
 0x754   :  { %8771 = vmatprep.subr.bf16.mxu0 %v10597_v5  ;;  %v10645_v5 = vld [vmem:[#allocation9 + $0x264] ss:$8 sps:$4 sm:$0xff]  }
 0x757   :  { %8772 = vmatpush1.bf16.msra.mxu0 %v10595_v49  ;;  %v10643_v49 = vld [vmem:[#allocation9 + $0x260] ss:$8 sps:$4 sm:$0xff]  }
 0x758   :  { %8773 = vmatprep.subr.bf16.mxu0 %v10600_v28  ;;  %v10648_v28 = vld [vmem:[#allocation9 + $0x274] ss:$8 sps:$4 sm:$0xff]  }
 0x75b   :  { %8774 = vmatpush1.bf16.msra.mxu0 %v10598_v6  ;;  %v10646_v6 = vld [vmem:[#allocation9 + $0x270] ss:$8 sps:$4 sm:$0xff]  }
 0x75c   :  { %8775 = vmatprep.subr.bf16.mxu0 %v10603_v8  ;;  %v10651_v8 = vld [vmem:[#allocation9 + $0x284] ss:$8 sps:$4 sm:$0xff]  }
 0x75f   :  { %8776 = vmatpush1.bf16.msra.mxu0 %v10601_v54  ;;  %v10649_v54 = vld [vmem:[#allocation9 + $0x280] ss:$8 sps:$4 sm:$0xff]  }
 0x760   :  { %8777 = vmatprep.subr.bf16.mxu0 %v10606_v57  ;;  %v10654_v57 = vld [vmem:[#allocation9 + $0x294] ss:$8 sps:$4 sm:$0xff]  }
 0x763   :  { %8778 = vmatpush1.bf16.msra.mxu0 %v10604_v9  ;;  %v10652_v9 = vld [vmem:[#allocation9 + $0x290] ss:$8 sps:$4 sm:$0xff]  }
 0x764   :  { %8779 = vmatprep.subr.bf16.mxu0 %v10609_v17  ;;  %v10657_v17 = vld [vmem:[#allocation9 + $0x2a4] ss:$8 sps:$4 sm:$0xff]  }
 0x767   :  { %8780 = vmatpush1.bf16.msra.mxu0 %v10607_v1  ;;  %v10655_v1 = vld [vmem:[#allocation9 + $0x2a0] ss:$8 sps:$4 sm:$0xff]  }
 0x768   :  { %8781 = vmatprep.subr.bf16.mxu0 %v10612_v18  ;;  %v10660_v18 = vld [vmem:[#allocation9 + $0x2b4] ss:$8 sps:$4 sm:$0xff]  }
 0x76b   :  { %8782 = vmatpush1.bf16.msra.mxu0 %v10610_v7  ;;  %v10658_v7 = vld [vmem:[#allocation9 + $0x2b0] ss:$8 sps:$4 sm:$0xff]  }
 0x76c   :  { %8783 = vmatprep.subr.bf16.mxu0 %v10615_v19  ;;  %v10663_v19 = vld [vmem:[#allocation9 + $0x2c4] ss:$8 sps:$4 sm:$0xff]  }
 0x76f   :  { %8784 = vmatpush1.bf16.msra.mxu0 %v10613_v21  ;;  %v10661_v21 = vld [vmem:[#allocation9 + $0x2c0] ss:$8 sps:$4 sm:$0xff]  }
 0x770   :  { %8785 = vmatprep.subr.bf16.mxu0 %v10618_v23  ;;  %v10666_v23 = vld [vmem:[#allocation9 + $0x2d4] ss:$8 sps:$4 sm:$0xff]  }
 0x773   :  { %8786 = vmatpush1.bf16.msra.mxu0 %v10616_v33  ;;  %v10664_v33 = vld [vmem:[#allocation9 + $0x2d0] ss:$8 sps:$4 sm:$0xff]  }
 0x774   :  { %8787 = vmatprep.subr.bf16.mxu0 %v10621_v36  ;;  %v10669_v36 = vld [vmem:[#allocation9 + $0x2e4] ss:$8 sps:$4 sm:$0xff]  }
 0x777   :  { %8788 = vmatpush1.bf16.msra.mxu0 %v10619_v38  ;;  %v7914_v38 = vadd.f32 %v7906_v51, %v7834_v37 }
 0x778   :  { %8789 = vmatprep.subr.bf16.mxu0 %v10624_v10  ;;  %v10670_v10 = vld [vmem:[#allocation9 + $0x2f0] ss:$8 sps:$4 sm:$0xff]  }
 0x77b   :  { %8790 = vmatpush1.bf16.msra.mxu0 %v10622_v56  ;;  %v7922_v56 = vmax.f32 %v7914_v38, 0.0 }
 0x77c   :  { %8800 = vmatprep.subr.bf16.mxu0 %v10627_v52  ;;  %v7927_v52 = vpack.c.bf16 %v7919_v44, %v7919_v44 }
 0x77e   :  { %8792 = vmatmul.mubr.bf16.vlgmr.msra.gmra.mrb[8].mxu0 %v7925_v34  ;;  %v10676_v34 = vld [vmem:[#allocation9 + $0x310] ss:$8 sps:$4 sm:$0xff]  }
 0x77f   :  { %8801 = vmatpush1.bf16.msra.mxu0 %v10625_v55  ;;  %8832 = vmatprep.mubr.bf16.mxu0 %v7928_v30  ;;  %v7930_v55 = vpack.c.bf16 %v7922_v56, %v7922_v56  ;;  %v10679_v30 = vld [vmem:[#allocation9 + $0x320] ss:$8 sps:$4 sm:$0xff]  }
 0x780   :  { %8802 = vmatprep.subr.bf16.mxu0 %v10630_v61  ;;  %v10681_v61 = vld [vmem:[#allocation9 + $0x324] ss:$8 sps:$4 sm:$0xff]  }
 0x781   :  { %v10722_v56 = vld [vmem:[#allocation10] sm:$0xff]  }
 0x783   :  { %8803 = vmatpush1.bf16.msra.mxu0 %v10628_v35  ;;  %v10684_v35 = vld [vmem:[#allocation9 + $0x334] ss:$8 sps:$4 sm:$0xff]  }
 0x784   :  { %8804 = vmatprep.subr.bf16.mxu0 %v10633_v59  ;;  %v10682_v59 = vld [vmem:[#allocation9 + $0x330] ss:$8 sps:$4 sm:$0xff]  }
 0x787   :  { %8805 = vmatpush1.bf16.msra.mxu0 %v10631_v0  ;;  %v10687_v0 = vld [vmem:[#allocation9 + $0x344] ss:$8 sps:$4 sm:$0xff]  }
 0x788   :  { %8806 = vmatprep.subr.bf16.mxu0 %v10636_v16  ;;  %v10685_v16 = vld [vmem:[#allocation9 + $0x340] ss:$8 sps:$4 sm:$0xff]  }
 0x78b   :  { %8807 = vmatpush1.bf16.msra.mxu0 %v10634_v41  ;;  %v10690_v41 = vld [vmem:[#allocation9 + $0x354] ss:$8 sps:$4 sm:$0xff]  }
 0x78c   :  { %8808 = vmatprep.subr.bf16.mxu0 %v10639_v60  ;;  %v10688_v60 = vld [vmem:[#allocation9 + $0x350] ss:$8 sps:$4 sm:$0xff]  }
 0x78f   :  { %8809 = vmatpush1.bf16.msra.mxu0 %v10637_v62  ;;  %v10693_v62 = vld [vmem:[#allocation9 + $0x364] ss:$8 sps:$4 sm:$0xff]  }
 0x790   :  { %8810 = vmatprep.subr.bf16.mxu0 %v10642_v2  ;;  %v10691_v2 = vld [vmem:[#allocation9 + $0x360] ss:$8 sps:$4 sm:$0xff]  }
 0x793   :  { %8811 = vmatpush1.bf16.msra.mxu0 %v10640_v4  ;;  %v10696_v4 = vld [vmem:[#allocation9 + $0x374] ss:$8 sps:$4 sm:$0xff]  }
 0x794   :  { %8812 = vmatprep.subr.bf16.mxu0 %v10645_v5  ;;  %v10694_v5 = vld [vmem:[#allocation9 + $0x370] ss:$8 sps:$4 sm:$0xff]  }
 0x797   :  { %8813 = vmatpush1.bf16.msra.mxu0 %v10643_v49  ;;  %v10699_v49 = vld [vmem:[#allocation9 + $0x384] ss:$8 sps:$4 sm:$0xff]  }
 0x798   :  { %8814 = vmatprep.subr.bf16.mxu0 %v10648_v28  ;;  %v10697_v28 = vld [vmem:[#allocation9 + $0x380] ss:$8 sps:$4 sm:$0xff]  }
 0x79b   :  { %8815 = vmatpush1.bf16.msra.mxu0 %v10646_v6  ;;  %v10702_v6 = vld [vmem:[#allocation9 + $0x394] ss:$8 sps:$4 sm:$0xff]  }
 0x79c   :  { %8816 = vmatprep.subr.bf16.mxu0 %v10651_v8  ;;  %v10700_v8 = vld [vmem:[#allocation9 + $0x390] ss:$8 sps:$4 sm:$0xff]  }
 0x79f   :  { %8817 = vmatpush1.bf16.msra.mxu0 %v10649_v54  ;;  %v10705_v54 = vld [vmem:[#allocation9 + $0x3a4] ss:$8 sps:$4 sm:$0xff]  }
 0x7a0   :  { %8818 = vmatprep.subr.bf16.mxu0 %v10654_v57  ;;  %v10703_v57 = vld [vmem:[#allocation9 + $0x3a0] ss:$8 sps:$4 sm:$0xff]  }
 0x7a3   :  { %8819 = vmatpush1.bf16.msra.mxu0 %v10652_v9  ;;  %v10708_v9 = vld [vmem:[#allocation9 + $0x3b4] ss:$8 sps:$4 sm:$0xff]  }
 0x7a4   :  { %8820 = vmatprep.subr.bf16.mxu0 %v10657_v17  ;;  %v10706_v17 = vld [vmem:[#allocation9 + $0x3b0] ss:$8 sps:$4 sm:$0xff]  }
 0x7a7   :  { %8821 = vmatpush1.bf16.msra.mxu0 %v10655_v1  ;;  %v10711_v1 = vld [vmem:[#allocation9 + $0x3c4] ss:$8 sps:$4 sm:$0xff]  }
 0x7a8   :  { %8822 = vmatprep.subr.bf16.mxu0 %v10660_v18  ;;  %v7782_v18 = vrot.slane %v11274_v63, %v11339_v11 }
 0x7aa   :  { %v7822_v22 = vrot.slane %v7782_v18, %v11339_v11 }
 0x7ab   :  { %8823 = vmatpush1.bf16.msra.mxu0 %v10658_v7  ;;  %v10709_v7 = vld [vmem:[#allocation9 + $0x3c0] ss:$8 sps:$4 sm:$0xff]  }
 0x7ac   :  { %8824 = vmatprep.subr.bf16.mxu0 %v10663_v19  ;;  %v10714_v19 = vld [vmem:[#allocation9 + $0x3d4] ss:$8 sps:$4 sm:$0xff]   ;;  %v7833_v27 = vmul.f32 %v7822_v22, %v7753_v20 }
 0x7af   :  { %8825 = vmatpush1.bf16.msra.mxu0 %v10661_v21  ;;  %v7862_v21 = vrot.slane %v11274_v63, %v11345_v13  ;;  %v11412_v63 = vld [vmem:[#allocation13] sm:$0x77] }
 0x7b0   :  { %8826 = vmatprep.subr.bf16.mxu0 %v10666_v23  ;;  %v10712_v23 = vld [vmem:[#allocation9 + $0x3d0] ss:$8 sps:$4 sm:$0xff]   ;;  %v8067_v39 = vrot.slane %v11412_v63, %v11208_v46 }
 0x7b1   :  { %v7902_v29 = vrot.slane %v7862_v21, %v11345_v13 }
 0x7b2   :  { %v8077_v37 = vrot.slane %v8067_v39, %v11205_v40 }
 0x7b3   :  { %8827 = vmatpush1.bf16.msra.mxu0 %v10664_v33  ;;  %v7913_v42 = vadd.f32 %v7902_v29, %v7833_v27  ;;  %v10718_v33 = vld [vmem:[#allocation9 + $0x3f0] ss:$8 sps:$4 sm:$0xff]  }
 0x7b4   :  { %8828 = vmatprep.subr.bf16.mxu0 %v10669_v36  ;;  %v8063_v36 = vrot.slane %v11412_v63, %v11205_v40 }
 0x7b5   :  { %v7921_v3 = vmax.f32 %v7913_v42, 0.0 }
 0x7b6   :  { %v8073_v43 = vrot.slane %v8063_v36, %v11205_v40 }
 0x7b7   :  { %8829 = vmatpush1.bf16.msra.mxu0 %v10667_v31  ;;  %v7929_v25 = vpack.c.bf16 %v7921_v3, %v7921_v3  ;;  %v10339_v3 = vld [vmem:[#allocation15] ss:$0 sm:$0xff] }
 0x7b8   :  { %8830 = vmatprep.subr.bf16.mxu0 %v10672_v45 }
 0x7bb   :  { %8831 = vmatpush1.bf16.msra.mxu0 %v10670_v10 }
 0x7bc   :  { %8841 = vmatprep.subr.bf16.mxu0 %v10675_v48  ;;  %v10721_v48 = vld [vmem:[#allocation10 + $0x40] sm:$0xff]  }
 0x7bd   :  { %10356 = vmatprep.subr.bf16.mxu1 %v10721_v48 }
 0x7be   :  { %8833 = vmatmul.mubr.bf16.vlgmr.msra.gmra.mrb[8].mxu0 %v7927_v52  ;;  %10357 = vmatpush3.bf16.msra.mxu1 %v10722_v56  ;;  %v10724_v52 = vld [vmem:[#allocation10 + $0x8] sm:$0xff]  }
 0x7bf   :  { %8842 = vmatpush1.bf16.msra.mxu0 %v10673_v50  ;;  %8873 = vmatprep.mubr.bf16.mxu0 %v7930_v55  ;;  %v10723_v50 = vld [vmem:[#allocation10 + $0x48] sm:$0xff]  }
 0x7c0   :  { %8843 = vmatprep.subr.bf16.mxu0 %v10678_v53  ;;  %10358 = vmatprep.subr.bf16.mxu1 %v10723_v50 }
 0x7c2   :  { %10359 = vmatpush3.bf16.msra.mxu1 %v10724_v52 }
 0x7c3   :  { %8844 = vmatpush1.bf16.msra.mxu0 %v10676_v34 }
 0x7c4   :  { %8845 = vmatprep.subr.bf16.mxu0 %v10681_v61 }
 0x7c7   :  { %8846 = vmatpush1.bf16.msra.mxu0 %v10679_v30 }
 0x7c8   :  { %8847 = vmatprep.subr.bf16.mxu0 %v10684_v35  ;;  %v10725_v35 = vld [vmem:[#allocation10 + $0x50] sm:$0xff]  }
 0x7c9   :  { %10360 = vmatprep.subr.bf16.mxu1 %v10725_v35 }
 0x7cb   :  { %8848 = vmatpush1.bf16.msra.mxu0 %v10682_v59  ;;  %v10726_v59 = vld [vmem:[#allocation10 + $0x10] sm:$0xff]  }
 0x7cc   :  { %8849 = vmatprep.subr.bf16.mxu0 %v10687_v0  ;;  %10361 = vmatpush3.bf16.msra.mxu1 %v10726_v59  ;;  %v10727_v0 = vld [vmem:[#allocation10 + $0x58] sm:$0xff]  }
 0x7cd   :  { %10362 = vmatprep.subr.bf16.mxu1 %v10727_v0 }
 0x7cf   :  { %8850 = vmatpush1.bf16.msra.mxu0 %v10685_v16  ;;  %v10728_v16 = vld [vmem:[#allocation10 + $0x18] sm:$0xff]  }
 0x7d0   :  { %8851 = vmatprep.subr.bf16.mxu0 %v10690_v41  ;;  %10363 = vmatpush3.bf16.msra.mxu1 %v10728_v16  ;;  %v10729_v41 = vld [vmem:[#allocation10 + $0x60] sm:$0xff]  }
 0x7d1   :  { %10364 = vmatprep.subr.bf16.mxu1 %v10729_v41 }
 0x7d3   :  { %8852 = vmatpush1.bf16.msra.mxu0 %v10688_v60  ;;  %v10730_v60 = vld [vmem:[#allocation10 + $0x20] sm:$0xff]  }
 0x7d4   :  { %8853 = vmatprep.subr.bf16.mxu0 %v10693_v62  ;;  %10365 = vmatpush3.bf16.msra.mxu1 %v10730_v60  ;;  %v10731_v62 = vld [vmem:[#allocation10 + $0x68] sm:$0xff]  }
 0x7d5   :  { %10366 = vmatprep.subr.bf16.mxu1 %v10731_v62 }
 0x7d7   :  { %8854 = vmatpush1.bf16.msra.mxu0 %v10691_v2  ;;  %v10732_v2 = vld [vmem:[#allocation10 + $0x28] sm:$0xff]  }
 0x7d8   :  { %8855 = vmatprep.subr.bf16.mxu0 %v10696_v4  ;;  %10367 = vmatpush3.bf16.msra.mxu1 %v10732_v2  ;;  %v10733_v4 = vld [vmem:[#allocation10 + $0x70] sm:$0xff]  }
 0x7d9   :  { %10368 = vmatprep.subr.bf16.mxu1 %v10733_v4 }
 0x7db   :  { %8856 = vmatpush1.bf16.msra.mxu0 %v10694_v5  ;;  %v10734_v5 = vld [vmem:[#allocation10 + $0x30] sm:$0xff]  }
 0x7dc   :  { %8857 = vmatprep.subr.bf16.mxu0 %v10699_v49  ;;  %v10735_v49 = vld [vmem:[#allocation10 + $0x78] sm:$0xff]   ;;  %10369 = vmatpush3.bf16.msra.mxu1 %v10734_v5 }
 0x7dd   :  { %10370 = vmatprep.subr.bf16.mxu1 %v10735_v49 }
 0x7df   :  { %8858 = vmatpush1.bf16.msra.mxu0 %v10697_v28  ;;  %v10736_v28 = vld [vmem:[#allocation10 + $0x38] sm:$0xff]  }
 0x7e0   :  { %8859 = vmatprep.subr.bf16.mxu0 %v10702_v6  ;;  %10371 = vmatpush3.bf16.msra.mxu1 %v10736_v28 }
 0x7e3   :  { %8860 = vmatpush1.bf16.msra.mxu0 %v10700_v8 }
 0x7e4   :  { %8861 = vmatprep.subr.bf16.mxu0 %v10705_v54 }
 0x7e7   :  { %8862 = vmatpush1.bf16.msra.mxu0 %v10703_v57  ;;  %v8906_v57 = vrot.slane %v11412_v63, %v11342_v12 }
 0x7e8   :  { %8863 = vmatprep.subr.bf16.mxu0 %v10708_v9  ;;  %v8902_v9 = vrot.slane %v11412_v63, %v11339_v11 }
 0x7e9   :  { %v8916_v18 = vrot.slane %v8906_v57, %v11339_v11 }
 0x7eb   :  { %8864 = vmatpush1.bf16.msra.mxu0 %v10706_v17  ;;  %v8926_v17 = vrot.slane %v11412_v63, %v11348_v14 }
 0x7ec   :  { %8865 = vmatprep.subr.bf16.mxu0 %v10711_v1  ;;  %v8922_v1 = vrot.slane %v11412_v63, %v11345_v13  ;;  %v10978_v63 = vmov 2.5  }
 0x7ed   :  { %v8936_v21 = vrot.slane %v8926_v17, %v11345_v13 }
 0x7ee   :  { %v8932_v12 = vrot.slane %v8922_v1, %v11345_v13 }
 0x7ef   :  { %8866 = vmatpush1.bf16.msra.mxu0 %v10709_v7  ;;  %v8912_v7 = vrot.slane %v8902_v9, %v11339_v11 }
 0x7f0   :  { %8867 = vmatprep.subr.bf16.mxu0 %v10714_v19 }
 0x7f3   :  { %8868 = vmatpush1.bf16.msra.mxu0 %v10712_v23 }
 0x7f4   :  { %8869 = vmatprep.subr.bf16.mxu0 %v10717_v24 }
 0x7f7   :  { %8870 = vmatpush1.bf16.msra.mxu0 %v10715_v32 }
 0x7f8   :  { %8871 = vmatprep.subr.bf16.mxu0 %v10720_v58 }
 0x7fb   :  { %8872 = vmatpush1.bf16.msra.mxu0 %v10718_v33  ;;  %v9125_v33 = vand.u32 127, %v1204_v15 }
 0x7fd   :  { %vm9127_vm0 = vcmp.lt.s32.totalorder %v9125_v33, 3  ;;  %vm9126_vm1 = vcmp.eq.s32.totalorder %v9125_v33, 0  ;;  %vm9131_vm3 = vcmp.lt.s32.totalorder %v9125_v33, 6 }
 0x7fe   :  { %8874 = vmatmul.mubr.bf16.vlgmr.msra.gmra.mrb[8].mxu0 %v7929_v25  ;;  %v9128_v36 = vsel %vm9127_vm0, 2.0, %v10978_v63  ;;  %vm9132_vm4 = vmand %vm9130_vm2, %vm9131_vm3 }
 0x8d1   :  { %v8875_v51 = vpop.f32.mrb[8].mxu0 }
 0x8d2   :  { %v10388_v31 = vadd.f32 %v8875_v51, %v8073_v43  ;;  %v8877_v45 = vpop.f32.mrb[9].mxu0 }
 0x8d3   :  { %v10389_v47 = vadd.f32 %v8877_v45, %v8077_v37  ;;  %v8879_v38 = vpop.f32.mrb[10].mxu0  ;;  %v9134_v37 = vld [vmem:[#allocation16] sm:$0xff] }
 0x8d4   :  { %v8880_v10 = vpop.f32.mrb[11].mxu0 }
 0x8d5   :  { %v8882_v44 = vadd.f32 %v10389_v47, %v10388_v31 }
 0x8d7   :  { %8883 = vadd.xlane.f32.xlu1 %v8882_v44 }
 0x964   :  { %v8884_v46 = vpop.xlane.xlu1 %8883 }
 0x965   :  { %v8886_v53 = vmul.f32 0.00390625, %v8884_v46 }
 0x967   :  { %v8887_v55 = vsub.f32 %v10388_v31, %v8886_v53  ;;  %v8888_v40 = vsub.f32 %v10389_v47, %v8886_v53  ;;  %v9129_v31 = vsel %vm9126_vm1, 1.0, %v9128_v36 }
 0x968   :  { %v9133_v15 = vsel %vm9132_vm4, %v9129_v31, 0.0 }
 0x969   :  { %v8889_v34 = vmul.f32 %v8887_v55, %v8887_v55  ;;  %v8890_v61 = vmul.f32 %v8888_v40, %v8888_v40 }
 0x96b   :  { %v8891_v30 = vadd.f32 %v8890_v61, %v8889_v34 }
 0x96d   :  { %8892 = vadd.xlane.f32.xlu1 %v8891_v30 }
 0x9fa   :  { %v8893_v6 = vpop.xlane.xlu1 %8892 }
 0x9fb   :  { %v8894_v8 = vmul.f32 0.00390625, %v8893_v6 }
 0x9fd   :  { %v8895_v54 = vadd.f32 1e-05, %v8894_v8 }
 0x9ff   :  { %10739 = vrsqrt.f32 %v8895_v54 }
 0xa09   :  { %v10740_v19 = vpop.eup %10739 }
 0xa0a   :  { %v8897_v20 = vmul.f32 %v10740_v19, %v8887_v55  ;;  %v8898_v22 = vmul.f32 %v10740_v19, %v8888_v40 }
 0xa0c   :  { %v8918_v23 = vmul.f32 %v8916_v18, %v8898_v22  ;;  %v8917_v24 = vmul.f32 %v8912_v7, %v8897_v20 }
 0xa0e   :  { %v8938_v27 = vadd.f32 %v8936_v21, %v8918_v23  ;;  %v8937_v29 = vadd.f32 %v8932_v12, %v8917_v24 }
 0xa10   :  { %v8940_v32 = vmax.f32 %v8938_v27, 0.0  ;;  %v8939_v14 = vmax.f32 %v8937_v29, 0.0 }
 0xa12   :  { %v8942_v58 = vpack.c.bf16 %v8940_v32, %v8940_v32  ;;  %v8941_v42 = vpack.c.bf16 %v8939_v14, %v8939_v14 }
 0xa14   :  { %9110 = vmatprep.mubr.bf16.mxu1 %v8942_v58 }
 0xa15   :  { %9111 = vmatmul.mubr.bf16.vlgmr.msra.gmra.mrb[12].mxu1 %v8941_v42 }
 0xae8   :  { %v10372_v11 = vpop.f32.mrb[12].mxu1 }
 0xae9   :  { %v10373_v25 = vpop.f32.mrb[13].mxu1 }
 0xaea   :  { %v10374_v13 = vadd.f32 %v10373_v25, %v10372_v11  ;;  %v10375_v39 = vpop.f32.mrb[14].mxu1 }
 0xaeb   :  { %v10376_v43 = vpop.f32.mrb[15].mxu1 }
 0xaec   :  { %v9113_v51 = vadd.f32 %v10374_v13, %v10339_v3 }
 0xaee   :  { %9118 = vst [vmem:[#allocation18] sm:$0xff] %v9113_v51  ;;  %v9135_v45 = vsub.f32 %v9113_v51, %v9134_v37 }
 0xaf0   :  { %v9137_v47 = vmul.f32 %v9135_v45, %v9135_v45 }
 0xaf2   :  { %v9138_v38 = vmul.f32 %v9137_v47, %v9133_v15 }
 0xaf4   :  { %9139 = vadd.xlane.f32.xlu0 %v9138_v38 }
 0xaf5   :  { %10929 = shalt.err (!%p10926_p12)
}
 0xaf6   :  { %s10930_s16 = scalar_lea.hbm %s11466_s8, 128 }
 0xaf7   :  { %p10931_p13 = scmp.ne.s32.totalorder %s11466_s8, %s10930_s16  ;;  %p10934_p0 = scmp.lt.u32.totalorder %s10930_s16, %s11466_s8 }
 0xaf9   :  { %p10936_p1 = pnand %p10934_p0, %p10931_p13 }
 0xafb   :  { %10939 = shalt.err (!%p10936_p1)
}
 0xafc   :  { %9164 = dma.vmem_to_hbm [thread:$0]  %s9162_s5, 128, %s11466_s8, [#allocation5]  }
 0xafd   :  { %s10940_s18 = scalar_lea.hbm %s11467_s9, 16 }
 0xafe   :  { %p10941_p2 = scmp.ne.s32.totalorder %s11467_s9, %s10940_s18  ;;  %p10944_p3 = scmp.lt.u32.totalorder %s10940_s18, %s11467_s9 }
 0xb00   :  { %p10946_p4 = pnand %p10944_p3, %p10941_p2 }
 0xb81   :  { %v9140_v26 = vpop.xlane.xlu0 %9139 }
 0xb82   :  { %v9141_v10 = vrot.slane %v9140_v26, 4 }
 0xb84   :  { %v9142_v44 = vadd.f32 %v9141_v10, %v9140_v26 }
 0xb86   :  { %v9143_v48 = vrot.slane %v9142_v44, 2 }
 0xb88   :  { %v9144_v56 = vadd.f32 %v9143_v48, %v9142_v44 }
 0xb8a   :  { %v9145_v50 = vrot.slane %v9144_v56, 1 }
 0xb8c   :  { %v9146_v52 = vadd.f32 %v9145_v50, %v9144_v56 }
 0xb8e   :  { %10510 = vpush %v9146_v52 }
 0xbbf   :  { %s10511_s25 = spop %10510 }
 0xbc0   :  { %s9148_s26 = smul.f32 0.083333336, %s10511_s25 }
 0xbc2   :  { %9154 = sst [smem:[#allocation19]] %s9148_s26 }
 0xbc3   :  { %10949 = shalt.err (!%p10946_p4)
}
 0xbc4   :  { %s10980_s28 = smov [#allocation19]  }
 0xbc5   :  { %9172 = dma.smem_to_hbm %s10980_s28, 16, %s11467_s9, [#allocation6]  }
 0xbc6   :  { %10960 = dma.done.wait [#allocation5], 128  }
 0xbc7   :  { %10961 = vsyncadd [#allocation5], 4294967168 }
 0xbc8   :  { %10962 = dma.done.wait [#allocation6], 16  }
 0xbc9   :  { %10963 = vsyncadd [#allocation6], 4294967280 }
 0xbca   :  { %9179 = sfence }
 0xbcb   :  { %9180 = vsyncpa [#allocation4], 1 }
 0xbcc   :  { %9181 = vsyncpa [#allocation8], 1 }
 0xbcd   :  { %9182 = vsyncpa [#allocation11], 1 }
 0xbce   :  { %9183 = vsyncpa [#allocation14], 1 }
 0xbcf   :  { %9184 = vsyncpa [#allocation17], 1 }
 0xbd0   :  { %9185 = vsyncpa [#allocation5], 1 }
 0xbd1   :  { %9186 = vsyncpa [#allocation6], 1 }

</bundles_post_ra>
